<compile_context>
chip_gen: v5e
topology: v5e:2x2
jax: 0.10.0
libtpu: 0.0.40
codegen_flags: <defaults>
</compile_context>

<pallas_src>
import jax
import jax.numpy as jnp
from jax.experimental import pallas as pl
from jax.experimental.pallas import tpu as pltpu


# ------------------------------ fused kernel --------------------------------

def double_conv_kernel(x_ref, w1_ref, b1_ref, w2_ref, b2_ref, o_ref,
                       pad1_ref, pad2_ref):
    # x_ref : (1, H, W, Cin)     one batch element, NHWC, f32
    # w1_ref: (9*Cin, Cmid)      conv1 weights, BN1 scale folded, bf16, (dy,dx,cin) order
    # b1_ref: (1, Cmid)          BN1 shift, f32
    # w2_ref: (Cout, 9*Cmid)     conv2 weights (transposed), BN2 scale folded, bf16
    # b2_ref: (Cout, 1)          BN2 shift, f32
    # o_ref : (1, Cout, H*W)     output (already NCHW-flattened), f32
    # pad1_ref: (H+2, W+2, Cin)  VMEM scratch: halo-padded input
    # pad2_ref: (H+2, W+2, Cmid) VMEM scratch: halo-padded intermediate activation
    H, W, Cin = x_ref.shape[1], x_ref.shape[2], x_ref.shape[3]
    Cmid = w1_ref.shape[1]
    HW = H * W

    # ---- conv1: halo-pad the input inside the kernel (no HBM pad round trip).
    # Re-zero every grid step (scratch is per-core; with a "parallel" batch axis
    # we must not rely on any particular step having initialized the borders).
    pad1_ref[...] = jnp.zeros_like(pad1_ref)
    pad1_ref[1:H + 1, 1:W + 1, :] = x_ref[0]

    # im2col: one (HW, 9*Cin) patch matrix -> a single MXU call with K = 9*Cin.
    patches1 = jnp.concatenate(
        [pad1_ref[dy:dy + H, dx:dx + W, :].reshape(HW, Cin)
         for dy in range(3) for dx in range(3)],
        axis=-1).astype(jnp.bfloat16)
    y1 = jnp.dot(patches1, w1_ref[...], preferred_element_type=jnp.float32)
    y1 = jnp.maximum(y1 + b1_ref[...], 0.0)          # folded-BN shift + ReLU (f32)

    # ---- conv2: intermediate stays in VMEM scratch (halo-padded), never hits HBM.
    pad2_ref[...] = jnp.zeros_like(pad2_ref)
    pad2_ref[1:H + 1, 1:W + 1, :] = y1.reshape(H, W, Cmid)

    patches2 = jnp.concatenate(
        [pad2_ref[dy:dy + H, dx:dx + W, :].reshape(HW, Cmid)
         for dy in range(3) for dx in range(3)],
        axis=-1).astype(jnp.bfloat16)
    # Transposed matmul: (Cout, 9*Cmid) . (HW, 9*Cmid)^T -> (Cout, HW).
    # Output is lane-dense (HW = 256 on the lane dim) and NCHW-ordered.
    y2 = jax.lax.dot_general(w2_ref[...], patches2,
                             (((1,), (1,)), ((), ())),
                             preferred_element_type=jnp.float32)
    o_ref[0] = jnp.maximum(y2 + b2_ref[...], 0.0)     # folded-BN shift + ReLU (f32)


# ------------------------------ wrapper --------------------------------------

def double_conv(x_nchw, params):
    """DoubleConv forward. x_nchw: (N, Cin, H, W) f32 -> (N, Cout, H, W) f32."""
    N, Cin, H, W = x_nchw.shape
    Cmid = params["w1"].shape[-1]
    Cout = params["w2"].shape[-1]

    # Fold BatchNorm scale (per output channel) into the conv weights; bf16 for MXU.
    # Weight flattening order (dy, dx, cin) matches the in-kernel patch concat order.
    w1f = (params["w1"] * params["s1"]).reshape(9 * Cin, Cmid).astype(jnp.bfloat16)
    w2f = (params["w2"] * params["s2"]).reshape(9 * Cmid, Cout)
    w2t = w2f.T.astype(jnp.bfloat16)                   # (Cout, 9*Cmid)
    b1 = params["sh1"].reshape(1, Cmid).astype(jnp.float32)
    b2 = params["sh2"].reshape(Cout, 1).astype(jnp.float32)

    x_nhwc = jnp.transpose(x_nchw, (0, 2, 3, 1))        # channels -> lane dim

    out = pl.pallas_call(
        double_conv_kernel,
        out_shape=jax.ShapeDtypeStruct((N, Cout, H * W), jnp.float32),
        grid=(N,),
        in_specs=[
            pl.BlockSpec((1, H, W, Cin), lambda n: (n, 0, 0, 0)),
            pl.BlockSpec((9 * Cin, Cmid), lambda n: (0, 0)),
            pl.BlockSpec((1, Cmid), lambda n: (0, 0)),
            pl.BlockSpec((Cout, 9 * Cmid), lambda n: (0, 0)),
            pl.BlockSpec((Cout, 1), lambda n: (0, 0)),
        ],
        out_specs=pl.BlockSpec((1, Cout, H * W), lambda n: (n, 0, 0)),
        scratch_shapes=[
            pltpu.VMEM((H + 2, W + 2, Cin), jnp.float32),   # padded input
            pltpu.VMEM((H + 2, W + 2, Cmid), jnp.float32),  # padded intermediate
        ],
        compiler_params=pltpu.CompilerParams(
            dimension_semantics=("parallel",)),             # shard batch on v7x 2 TCs
    )(x_nhwc, w1f, b1, w2t, b2)

    # (N, Cout, H*W) -> (N, Cout, H, W): contiguous reshape, already NCHW.
    return out.reshape(N, Cout, H, W)


# ------------------------------ reference & init -----------------------------

def double_conv_reference(x_nchw, params):
    """Pure-JAX/XLA reference with the same folded-BN + bf16-MXU numerics."""
    def conv(x, w_hwio):
        return jax.lax.conv_general_dilated(
            x.astype(jnp.bfloat16), w_hwio.astype(jnp.bfloat16),
            window_strides=(1, 1), padding="SAME",
            dimension_numbers=("NCHW", "HWIO", "NCHW"),
            preferred_element_type=jnp.float32)
    y = conv(x_nchw, params["w1"] * params["s1"])
    y = jnp.maximum(y + params["sh1"][None, :, None, None], 0.0)
    y = conv(y, params["w2"] * params["s2"])
    y = jnp.maximum(y + params["sh2"][None, :, None, None], 0.0)
    return y


def init_double_conv_params(key, cin, cout, eps=1e-5):
    """Synthetic Conv(no bias) + folded inference-form BatchNorm parameters."""
    ks = jax.random.split(key, 10)

    def he(k, ci, co):
        return (jax.random.normal(k, (3, 3, ci, co), jnp.float32)
                * (2.0 / (9 * ci)) ** 0.5)

    def bn(k0, k1, k2, k3, c):
        gamma = 1.0 + 0.1 * jax.random.normal(k0, (c,), jnp.float32)
        beta = 0.1 * jax.random.normal(k1, (c,), jnp.float32)
        mean = 0.1 * jax.random.normal(k2, (c,), jnp.float32)
        var = 0.5 + jax.random.uniform(k3, (c,), jnp.float32)
        scale = gamma / jnp.sqrt(var + eps)      # y = x*scale + shift
        shift = beta - mean * scale
        return scale, shift

    s1, sh1 = bn(ks[2], ks[3], ks[4], ks[5], cout)
    s2, sh2 = bn(ks[6], ks[7], ks[8], ks[9], cout)
    return {"w1": he(ks[0], cin, cout), "s1": s1, "sh1": sh1,
            "w2": he(ks[1], cout, cout), "s2": s2, "sh2": sh2}


# ------------------------------ main ------------------------------------------

if __name__ == "__main__":
    key = jax.random.PRNGKey(0)
    k_param, k_in = jax.random.split(key)

    N, CIN, COUT, H, W = 2, 4, 16, 16, 16
    params = init_double_conv_params(k_param, CIN, COUT)

    # PyTorch-style NCHW input.
    x = jax.random.normal(k_in, (N, CIN, H, W), jnp.float32)

    fwd = jax.jit(double_conv)
    out = fwd(x, params)
    jax.block_until_ready(out)

    assert out.shape == (N, COUT, H, W)
    assert bool(jnp.all(jnp.isfinite(out)))
    assert bool(jnp.all(out >= 0.0))            # ReLU output must be non-negative

    ref = double_conv_reference(x, params)
    max_err = float(jnp.max(jnp.abs(out - ref)))
    assert max_err < 1e-2, f"kernel/reference mismatch: max abs err = {max_err}"

    print("KERNEL_OK")
</pallas_src>

<mosaic_0001>
module attributes {stable_mosaic.version = 11 : i64} {
  func.func @double_conv_kernel(%arg0: i32, %arg1: memref<1x16x16x4xf32, #tpu.memory_space<vmem>>, %arg2: memref<36x16xbf16, #tpu.memory_space<vmem>>, %arg3: memref<1x16xf32, #tpu.memory_space<vmem>>, %arg4: memref<16x144xbf16, #tpu.memory_space<vmem>>, %arg5: memref<16x1xf32, #tpu.memory_space<vmem>>, %arg6: memref<1x16x256xf32, #tpu.memory_space<vmem>>, %arg7: memref<18x18x4xf32, #tpu.memory_space<vmem>>, %arg8: memref<18x18x16xf32, #tpu.memory_space<vmem>>) attributes {dimension_semantics = [#tpu.dimension_semantics<parallel>], iteration_bounds = array<i64: 2>, scalar_prefetch = 0 : i64, scratch_operands = 2 : i64, tpu.core_type = #tpu.core_type<tc>, window_params = [{transform_indices = @transform_0, window_bounds = array<i64: 1, 16, 16, 4>}, {pipeline_mode = #tpu.pipeline_mode<synchronous>, transform_indices = @transform_1, window_bounds = array<i64: 36, 16>}, {pipeline_mode = #tpu.pipeline_mode<synchronous>, transform_indices = @transform_2, window_bounds = array<i64: 1, 16>}, {pipeline_mode = #tpu.pipeline_mode<synchronous>, transform_indices = @transform_3, window_bounds = array<i64: 16, 144>}, {pipeline_mode = #tpu.pipeline_mode<synchronous>, transform_indices = @transform_4, window_bounds = array<i64: 16, 1>}, {transform_indices = @transform_5, window_bounds = array<i64: 1, 16, 256>}]} {
    %cst = arith.constant 0.000000e+00 : f32
    %0 = vector.broadcast %cst : f32 to vector<18x18x4xf32>
    %c0 = arith.constant 0 : index
    %c0_0 = arith.constant 0 : index
    %c0_1 = arith.constant 0 : index
    %1 = vector.load %arg7[%c0, %c0_0, %c0_1] : memref<18x18x4xf32, #tpu.memory_space<vmem>>, vector<18x18x4xf32>
    tpu.vector_store %arg7[%c0, %c0_0, %c0_1], %0 {strides = array<i32>} : memref<18x18x4xf32, #tpu.memory_space<vmem>>, vector<18x18x4xf32>,
    %c0_2 = arith.constant 0 : index
    %c0_3 = arith.constant 0 : index
    %c0_4 = arith.constant 0 : index
    %c0_5 = arith.constant 0 : index
    %2 = vector.load %arg1[%c0_2, %c0_3, %c0_4, %c0_5] : memref<1x16x16x4xf32, #tpu.memory_space<vmem>>, vector<1x16x16x4xf32>
    %3 = vector.shape_cast %2 : vector<1x16x16x4xf32> to vector<16x16x4xf32>
    %c1 = arith.constant 1 : index
    %c1_6 = arith.constant 1 : index
    %c0_7 = arith.constant 0 : index
    %4 = vector.load %arg7[%c1, %c1_6, %c0_7] : memref<18x18x4xf32, #tpu.memory_space<vmem>>, vector<16x16x4xf32>
    tpu.vector_store %arg7[%c1, %c1_6, %c0_7], %3 {strides = array<i32>} : memref<18x18x4xf32, #tpu.memory_space<vmem>>, vector<16x16x4xf32>,
    %c0_8 = arith.constant 0 : index
    %c0_9 = arith.constant 0 : index
    %c0_10 = arith.constant 0 : index
    %5 = vector.load %arg7[%c0_8, %c0_9, %c0_10] : memref<18x18x4xf32, #tpu.memory_space<vmem>>, vector<16x16x4xf32>
    %6 = vector.shape_cast %5 : vector<16x16x4xf32> to vector<256x4xf32>
    %c0_11 = arith.constant 0 : index
    %c1_12 = arith.constant 1 : index
    %c0_13 = arith.constant 0 : index
    %7 = vector.load %arg7[%c0_11, %c1_12, %c0_13] : memref<18x18x4xf32, #tpu.memory_space<vmem>>, vector<16x16x4xf32>
    %8 = vector.shape_cast %7 : vector<16x16x4xf32> to vector<256x4xf32>
    %c0_14 = arith.constant 0 : index
    %c2 = arith.constant 2 : index
    %c0_15 = arith.constant 0 : index
    %9 = vector.load %arg7[%c0_14, %c2, %c0_15] : memref<18x18x4xf32, #tpu.memory_space<vmem>>, vector<16x16x4xf32>
    %10 = vector.shape_cast %9 : vector<16x16x4xf32> to vector<256x4xf32>
    %c1_16 = arith.constant 1 : index
    %c0_17 = arith.constant 0 : index
    %c0_18 = arith.constant 0 : index
    %11 = vector.load %arg7[%c1_16, %c0_17, %c0_18] : memref<18x18x4xf32, #tpu.memory_space<vmem>>, vector<16x16x4xf32>
    %12 = vector.shape_cast %11 : vector<16x16x4xf32> to vector<256x4xf32>
    %c1_19 = arith.constant 1 : index
    %c1_20 = arith.constant 1 : index
    %c0_21 = arith.constant 0 : index
    %13 = vector.load %arg7[%c1_19, %c1_20, %c0_21] : memref<18x18x4xf32, #tpu.memory_space<vmem>>, vector<16x16x4xf32>
    %14 = vector.shape_cast %13 : vector<16x16x4xf32> to vector<256x4xf32>
    %c1_22 = arith.constant 1 : index
    %c2_23 = arith.constant 2 : index
    %c0_24 = arith.constant 0 : index
    %15 = vector.load %arg7[%c1_22, %c2_23, %c0_24] : memref<18x18x4xf32, #tpu.memory_space<vmem>>, vector<16x16x4xf32>
    %16 = vector.shape_cast %15 : vector<16x16x4xf32> to vector<256x4xf32>
    %c2_25 = arith.constant 2 : index
    %c0_26 = arith.constant 0 : index
    %c0_27 = arith.constant 0 : index
    %17 = vector.load %arg7[%c2_25, %c0_26, %c0_27] : memref<18x18x4xf32, #tpu.memory_space<vmem>>, vector<16x16x4xf32>
    %18 = vector.shape_cast %17 : vector<16x16x4xf32> to vector<256x4xf32>
    %c2_28 = arith.constant 2 : index
    %c1_29 = arith.constant 1 : index
    %c0_30 = arith.constant 0 : index
    %19 = vector.load %arg7[%c2_28, %c1_29, %c0_30] : memref<18x18x4xf32, #tpu.memory_space<vmem>>, vector<16x16x4xf32>
    %20 = vector.shape_cast %19 : vector<16x16x4xf32> to vector<256x4xf32>
    %c2_31 = arith.constant 2 : index
    %c2_32 = arith.constant 2 : index
    %c0_33 = arith.constant 0 : index
    %21 = vector.load %arg7[%c2_31, %c2_32, %c0_33] : memref<18x18x4xf32, #tpu.memory_space<vmem>>, vector<16x16x4xf32>
    %22 = vector.shape_cast %21 : vector<16x16x4xf32> to vector<256x4xf32>
    %23 = tpu.concatenate %6, %8, %10, %12, %14, %16, %18, %20, %22 in 1 : vector<256x4xf32>, vector<256x4xf32>, vector<256x4xf32>, vector<256x4xf32>, vector<256x4xf32>, vector<256x4xf32>, vector<256x4xf32>, vector<256x4xf32>, vector<256x4xf32> -> vector<256x36xf32>
    %24 = arith.truncf %23 : vector<256x36xf32> to vector<256x36xbf16>
    %c0_34 = arith.constant 0 : index
    %c0_35 = arith.constant 0 : index
    %25 = vector.load %arg2[%c0_34, %c0_35] : memref<36x16xbf16, #tpu.memory_space<vmem>>, vector<36x16xbf16>
    %cst_36 = arith.constant dense<0.000000e+00> : vector<256x16xf32>
    %26 = tpu.matmul %24, %25, %cst_36 {dimension_numbers = #tpu.dot_dimension_numbers<[1], [0], [0], [1], [0, 0, 1, 1], [], []>} : vector<256x36xbf16>, vector<36x16xbf16>, vector<256x16xf32> -> vector<256x16xf32>
    %c0_37 = arith.constant 0 : index
    %c0_38 = arith.constant 0 : index
    %27 = vector.load %arg3[%c0_37, %c0_38] : memref<1x16xf32, #tpu.memory_space<vmem>>, vector<1x16xf32>
    %28 = vector.broadcast %27 : vector<1x16xf32> to vector<256x16xf32>
    %29 = arith.addf %26, %28 : vector<256x16xf32>
    %cst_39 = arith.constant 0.000000e+00 : f32
    %30 = vector.broadcast %cst_39 : f32 to vector<256x16xf32>
    %31 = arith.maximumf %29, %30 : vector<256x16xf32>
    %cst_40 = arith.constant 0.000000e+00 : f32
    %32 = vector.broadcast %cst_40 : f32 to vector<18x18x16xf32>
    %c0_41 = arith.constant 0 : index
    %c0_42 = arith.constant 0 : index
    %c0_43 = arith.constant 0 : index
    %33 = vector.load %arg8[%c0_41, %c0_42, %c0_43] : memref<18x18x16xf32, #tpu.memory_space<vmem>>, vector<18x18x16xf32>
    tpu.vector_store %arg8[%c0_41, %c0_42, %c0_43], %32 {strides = array<i32>} : memref<18x18x16xf32, #tpu.memory_space<vmem>>, vector<18x18x16xf32>,
    %34 = vector.shape_cast %31 : vector<256x16xf32> to vector<16x16x16xf32>
    %c1_44 = arith.constant 1 : index
    %c1_45 = arith.constant 1 : index
    %c0_46 = arith.constant 0 : index
    %35 = vector.load %arg8[%c1_44, %c1_45, %c0_46] : memref<18x18x16xf32, #tpu.memory_space<vmem>>, vector<16x16x16xf32>
    tpu.vector_store %arg8[%c1_44, %c1_45, %c0_46], %34 {strides = array<i32>} : memref<18x18x16xf32, #tpu.memory_space<vmem>>, vector<16x16x16xf32>,
    %c0_47 = arith.constant 0 : index
    %c0_48 = arith.constant 0 : index
    %c0_49 = arith.constant 0 : index
    %36 = vector.load %arg8[%c0_47, %c0_48, %c0_49] : memref<18x18x16xf32, #tpu.memory_space<vmem>>, vector<16x16x16xf32>
    %37 = vector.shape_cast %36 : vector<16x16x16xf32> to vector<256x16xf32>
    %c0_50 = arith.constant 0 : index
    %c1_51 = arith.constant 1 : index
    %c0_52 = arith.constant 0 : index
    %38 = vector.load %arg8[%c0_50, %c1_51, %c0_52] : memref<18x18x16xf32, #tpu.memory_space<vmem>>, vector<16x16x16xf32>
    %39 = vector.shape_cast %38 : vector<16x16x16xf32> to vector<256x16xf32>
    %c0_53 = arith.constant 0 : index
    %c2_54 = arith.constant 2 : index
    %c0_55 = arith.constant 0 : index
    %40 = vector.load %arg8[%c0_53, %c2_54, %c0_55] : memref<18x18x16xf32, #tpu.memory_space<vmem>>, vector<16x16x16xf32>
    %41 = vector.shape_cast %40 : vector<16x16x16xf32> to vector<256x16xf32>
    %c1_56 = arith.constant 1 : index
    %c0_57 = arith.constant 0 : index
    %c0_58 = arith.constant 0 : index
    %42 = vector.load %arg8[%c1_56, %c0_57, %c0_58] : memref<18x18x16xf32, #tpu.memory_space<vmem>>, vector<16x16x16xf32>
    %43 = vector.shape_cast %42 : vector<16x16x16xf32> to vector<256x16xf32>
    %c1_59 = arith.constant 1 : index
    %c1_60 = arith.constant 1 : index
    %c0_61 = arith.constant 0 : index
    %44 = vector.load %arg8[%c1_59, %c1_60, %c0_61] : memref<18x18x16xf32, #tpu.memory_space<vmem>>, vector<16x16x16xf32>
    %45 = vector.shape_cast %44 : vector<16x16x16xf32> to vector<256x16xf32>
    %c1_62 = arith.constant 1 : index
    %c2_63 = arith.constant 2 : index
    %c0_64 = arith.constant 0 : index
    %46 = vector.load %arg8[%c1_62, %c2_63, %c0_64] : memref<18x18x16xf32, #tpu.memory_space<vmem>>, vector<16x16x16xf32>
    %47 = vector.shape_cast %46 : vector<16x16x16xf32> to vector<256x16xf32>
    %c2_65 = arith.constant 2 : index
    %c0_66 = arith.constant 0 : index
    %c0_67 = arith.constant 0 : index
    %48 = vector.load %arg8[%c2_65, %c0_66, %c0_67] : memref<18x18x16xf32, #tpu.memory_space<vmem>>, vector<16x16x16xf32>
    %49 = vector.shape_cast %48 : vector<16x16x16xf32> to vector<256x16xf32>
    %c2_68 = arith.constant 2 : index
    %c1_69 = arith.constant 1 : index
    %c0_70 = arith.constant 0 : index
    %50 = vector.load %arg8[%c2_68, %c1_69, %c0_70] : memref<18x18x16xf32, #tpu.memory_space<vmem>>, vector<16x16x16xf32>
    %51 = vector.shape_cast %50 : vector<16x16x16xf32> to vector<256x16xf32>
    %c2_71 = arith.constant 2 : index
    %c2_72 = arith.constant 2 : index
    %c0_73 = arith.constant 0 : index
    %52 = vector.load %arg8[%c2_71, %c2_72, %c0_73] : memref<18x18x16xf32, #tpu.memory_space<vmem>>, vector<16x16x16xf32>
    %53 = vector.shape_cast %52 : vector<16x16x16xf32> to vector<256x16xf32>
    %54 = tpu.concatenate %37, %39, %41, %43, %45, %47, %49, %51, %53 in 1 : vector<256x16xf32>, vector<256x16xf32>, vector<256x16xf32>, vector<256x16xf32>, vector<256x16xf32>, vector<256x16xf32>, vector<256x16xf32>, vector<256x16xf32>, vector<256x16xf32> -> vector<256x144xf32>
    %55 = arith.truncf %54 : vector<256x144xf32> to vector<256x144xbf16>
    %c0_74 = arith.constant 0 : index
    %c0_75 = arith.constant 0 : index
    %56 = vector.load %arg4[%c0_74, %c0_75] : memref<16x144xbf16, #tpu.memory_space<vmem>>, vector<16x144xbf16>
    %cst_76 = arith.constant dense<0.000000e+00> : vector<16x256xf32>
    %57 = tpu.matmul %56, %55, %cst_76 {dimension_numbers = #tpu.dot_dimension_numbers<[1], [1], [0], [0], [0, 0, 1, 0], [], []>} : vector<16x144xbf16>, vector<256x144xbf16>, vector<16x256xf32> -> vector<16x256xf32>
    %c0_77 = arith.constant 0 : index
    %c0_78 = arith.constant 0 : index
    %58 = vector.load %arg5[%c0_77, %c0_78] : memref<16x1xf32, #tpu.memory_space<vmem>>, vector<16x1xf32>
    %59 = vector.broadcast %58 : vector<16x1xf32> to vector<16x256xf32>
    %60 = arith.addf %57, %59 : vector<16x256xf32>
    %cst_79 = arith.constant 0.000000e+00 : f32
    %61 = vector.broadcast %cst_79 : f32 to vector<16x256xf32>
    %62 = arith.maximumf %60, %61 : vector<16x256xf32>
    %c0_80 = arith.constant 0 : index
    %c0_81 = arith.constant 0 : index
    %c0_82 = arith.constant 0 : index
    %63 = vector.load %arg6[%c0_80, %c0_81, %c0_82] : memref<1x16x256xf32, #tpu.memory_space<vmem>>, vector<1x16x256xf32>
    %64 = vector.shape_cast %63 : vector<1x16x256xf32> to vector<16x256xf32>
    %65 = vector.shape_cast %62 : vector<16x256xf32> to vector<1x16x256xf32>
    tpu.vector_store %arg6[%c0_80, %c0_81, %c0_82], %65 {strides = array<i32>} : memref<1x16x256xf32, #tpu.memory_space<vmem>>, vector<1x16x256xf32>,
    return
  }
  func.func @transform_0(%arg0: i32) -> (i32, i32, i32, i32) {
    %c0_i32 = arith.constant 0 : i32
    %c0_i32_0 = arith.constant 0 : i32
    %c0_i32_1 = arith.constant 0 : i32
    %c0_i32_2 = arith.constant 0 : i32
    return %arg0, %c0_i32, %c0_i32_0, %c0_i32_1 : i32, i32, i32, i32
  }
  func.func @transform_1(%arg0: i32) -> (i32, i32) {
    %c0_i32 = arith.constant 0 : i32
    %c0_i32_0 = arith.constant 0 : i32
    %c0_i32_1 = arith.constant 0 : i32
    return %c0_i32, %c0_i32_0 : i32, i32
  }
  func.func @transform_2(%arg0: i32) -> (i32, i32) {
    %c0_i32 = arith.constant 0 : i32
    %c0_i32_0 = arith.constant 0 : i32
    %c0_i32_1 = arith.constant 0 : i32
    return %c0_i32, %c0_i32_0 : i32, i32
  }
  func.func @transform_3(%arg0: i32) -> (i32, i32) {
    %c0_i32 = arith.constant 0 : i32
    %c0_i32_0 = arith.constant 0 : i32
    %c0_i32_1 = arith.constant 0 : i32
    return %c0_i32, %c0_i32_0 : i32, i32
  }
  func.func @transform_4(%arg0: i32) -> (i32, i32) {
    %c0_i32 = arith.constant 0 : i32
    %c0_i32_0 = arith.constant 0 : i32
    %c0_i32_1 = arith.constant 0 : i32
    return %c0_i32, %c0_i32_0 : i32, i32
  }
  func.func @transform_5(%arg0: i32) -> (i32, i32, i32) {
    %c0_i32 = arith.constant 0 : i32
    %c0_i32_0 = arith.constant 0 : i32
    %c0_i32_1 = arith.constant 0 : i32
    return %arg0, %c0_i32, %c0_i32_0 : i32, i32, i32
  }
}

</mosaic_0001>

<bundles_post_ra>
// kernel: double_conv.1
= control target key start
LH: loop header
LB: loop body
LE: loop exit
PB: predicated region body
PF: predicated region fallthrough
CT: control target
= control target key end

     0   :  { %s5206_s18 = smov 0   ;;  %s8077_s0 = inlined_call_operand.vmem [shape: f32[2,16,16,4], index: 0, kind: input, shape index: {}]   ;;  %s8078_s1 = inlined_call_operand.vmem [shape: bf16[36,16], index: 1, kind: input, shape index: {}]   ;;  %s8079_s2 = inlined_call_operand.vmem [shape: f32[1,16], index: 2, kind: input, shape index: {}]   ;;  %s8080_s3 = inlined_call_operand.vmem [shape: bf16[16,144], index: 3, kind: input, shape index: {}]   ;;  %s8081_s4 = inlined_call_operand.vmem [shape: f32[16,1], index: 4, kind: input, shape index: {}]   ;;  %s8082_s5 = inlined_call_operand.vmem [shape: f32[2,16,256], index: 5, kind: output, shape index: {}]  }
   0x1 LB: > { %s3864_s19 = sadd.s32 4294967295, %s5159_s18   ;;  %p3868_p0 = scmp.ge.s32.totalorder %s5159_s18, 1  ;;  %s5159_s18 = sphi %s5206_s18, %s15_s18  }
   0x2   : > { %p187_p1 = scmp.lt.s32.totalorder %s5159_s18, 3 }
   0x4   : > { %p188_p2 = pnand %p3868_p0, %p187_p1 }
   0x6   : > { %191 = sbr.rel (%p188_p2) target bundleno = 1318 (0x526), region = 40 }
   0xb   : > { %vm226_vm0 = vcmask 31744   ;;  %vm229_vm1 = vcmask 25600   ;;  %v8083_v0 = vmov 0.0   ;;  %s5162_s20 = smov 4   ;;  %p215_p3 = scmp.lt.s32.totalorder %s3864_s19, 1  ;;  %vm1758_vm2 = vcmask 130048  }
   0xc   : > { %227 = vst.msk [vmem:[#allocation2] sm:$0xff] %vm226_vm0, %v8083_v0  ;;  %s5163_s25 = smov 8   ;;  %s5164_s26 = smov 12   ;;  %vm1692_vm3 = vcmask 64512   ;;  %vm1725_vm4 = vcmask 97280   ;;  %vm1791_vm5 = vcmask 162816  }
   0xd   : > { %228 = vst.msk [vmem:[#allocation2 + $0x8] sm:$0xff] %vm226_vm0, %v8083_v0  ;;  %s8444_s19 = smov (!%p215_p3, %s3864_s19), 1  ;;  %s5165_s27 = smov 16   ;;  %vm1824_vm6 = vcmask 195584   ;;  %vm1857_vm7 = vcmask 228352   ;;  %vm2012_vm8 = vcmask 1041408  }
   0xe   : > { %230 = vst.msk [vmem:[#allocation2 + $0x10] sm:$0x3] %vm229_vm1, %v8083_v0  ;;  %s3909_s21 = sshll.u32 %s8444_s19, 8  ;;  %s5166_s28 = smov 20   ;;  %vm1890_vm9 = vcmask 261120   ;;  %vm1963_vm10 = vcmask 293888  }
   0xf   : > { %231 = vst.msk [vmem:[#allocation2 + $0x18] sm:$0xff] %vm226_vm0, %v8083_v0  ;;  %s5323_s24 = scalar_lea.vmem %s8077_s0, %s3909_s21  ;;  %s5167_s29 = smov 24   ;;  %vm2139_vm11 = vcmask 123904   ;;  %vm3474_vm12 = vcmask 392192   ;;  %vm3507_vm13 = vcmask 523264   ;;  %vm3540_vm14 = vcmask 654336  }
  0x10   : > { %232 = vst.msk [vmem:[#allocation2 + $0x20] sm:$0xff] %vm226_vm0, %v8083_v0  ;;  %v288_v4 = vld [vmem:[%s5323_s24 + $0x30] sm:$0xff]  ;;  %v289_v5 = vld [vmem:[%s5323_s24 + $0x38] sm:$0xff]  ;;  %v282_v8 = vld [vmem:[%s5323_s24] sm:$0xff]  ;;  %s5168_s30 = smov 28   ;;  %s5169_s6 = smov 32  }
  0x11   : > { %233 = vst.msk [vmem:[#allocation2 + $0x28] sm:$0x3] %vm229_vm1, %v8083_v0  ;;  %v284_v6 = vld [vmem:[%s5323_s24 + $0x10] sm:$0xff]  ;;  %v285_v7 = vld [vmem:[%s5323_s24 + $0x18] sm:$0xff]  ;;  %v283_v9 = vld [vmem:[%s5323_s24 + $0x8] sm:$0xff]  ;;  %s5170_s15 = smov 48  }
  0x12   : > { %234 = vst.msk [vmem:[#allocation2 + $0x30] sm:$0xff] %vm226_vm0, %v8083_v0  ;;  %v290_v10 = vld [vmem:[%s5323_s24 + $0x40] sm:$0xff]  ;;  %v291_v11 = vld [vmem:[%s5323_s24 + $0x48] sm:$0xff]  ;;  %v292_v15 = vld [vmem:[%s5323_s24 + $0x50] sm:$0xff]  ;;  %s5171_s16 = smov 64   ;;  %s5172_s17 = smov 80  }
  0x13   : > { %235 = vst.msk [vmem:[#allocation2 + $0x38] sm:$0xff] %vm226_vm0, %v8083_v0  ;;  %v286_v12 = vld [vmem:[%s5323_s24 + $0x20] sm:$0xff]  ;;  %v287_v13 = vld [vmem:[%s5323_s24 + $0x28] sm:$0xff]  ;;  %v293_v17 = vld [vmem:[%s5323_s24 + $0x58] sm:$0xff]  ;;  %s5174_s21 = smov 112   ;;  %vm3573_vm15 = vcmask 785408  }
  0x14   : > { %v379_v1 = vld [vmem:[#allocation2 + $0x1] sm:$0xff]  ;;  %236 = vst.msk [vmem:[#allocation2 + $0x40] sm:$0x3] %vm229_vm1, %v8083_v0  ;;  %v296_v20 = vld [vmem:[%s5323_s24 + $0x70] sm:$0xff]  ;;  %v297_v22 = vld [vmem:[%s5323_s24 + $0x78] sm:$0xff]  ;;  %s3910_s9 = sshll.u32 %s8444_s19, 5 }
  0x15   : > { %v380_v2 = vld [vmem:[#allocation2 + $0x9] sm:$0xff]  ;;  %237 = vst.msk [vmem:[#allocation2 + $0x48] sm:$0xff] %vm226_vm0, %v8083_v0  ;;  %v294_v25 = vld [vmem:[%s5323_s24 + $0x60] sm:$0xff]  ;;  %v301_v42 = vld [vmem:[%s5323_s24 + $0x98] sm:$0xff]  ;;  %s224_s12 = scalar_lea.vmem %s8082_s5, %s3910_s9 }
  0x16   : > { %v3944_v3 = vpack.i.bf16 %v380_v2, %v379_v1  ;;  %238 = vst.msk [vmem:[#allocation2 + $0x50] sm:$0xff] %vm226_vm0, %v8083_v0  ;;  %v295_v27 = vld [vmem:[%s5323_s24 + $0x68] sm:$0xff]  ;;  %v298_v30 = vld [vmem:[%s5323_s24 + $0x80] sm:$0xff]  ;;  %v300_v40 = vld [vmem:[%s5323_s24 + $0x90] sm:$0xff] }
  0x17   : > { %239 = vst.msk [vmem:[#allocation2 + $0x58] sm:$0x3] %vm229_vm1, %v8083_v0  ;;  %v299_v32 = vld [vmem:[%s5323_s24 + $0x88] sm:$0xff]  ;;  %v302_v35 = vld [vmem:[%s5323_s24 + $0xa0] sm:$0xff]  ;;  %v304_v44 = vld [vmem:[%s5323_s24 + $0xb0] sm:$0xff] }
  0x18   : > { %3945 = vrot.lane.b32.xlu0 %v3944_v3, %s5162_s20  ;;  %240 = vst.msk [vmem:[#allocation2 + $0x60] sm:$0xff] %vm226_vm0, %v8083_v0  ;;  %v303_v37 = vld [vmem:[%s5323_s24 + $0xa8] sm:$0xff]  ;;  %v305_v47 = vld [vmem:[%s5323_s24 + $0xb8] sm:$0xff]  ;;  %v308_v48 = vld [vmem:[%s5323_s24 + $0xd0] sm:$0xff] }
  0x19   : > { %241 = vst.msk [vmem:[#allocation2 + $0x68] sm:$0xff] %vm226_vm0, %v8083_v0  ;;  %v309_v51 = vld [vmem:[%s5323_s24 + $0xd8] sm:$0xff]  ;;  %v306_v53 = vld [vmem:[%s5323_s24 + $0xc0] sm:$0xff]  ;;  %v307_v56 = vld [vmem:[%s5323_s24 + $0xc8] sm:$0xff] }
  0x1a   : > { %242 = vst.msk [vmem:[#allocation2 + $0x70] sm:$0x3] %vm229_vm1, %v8083_v0  ;;  %v310_v58 = vld [vmem:[%s5323_s24 + $0xe0] sm:$0xff]  ;;  %v311_v59 = vld [vmem:[%s5323_s24 + $0xe8] sm:$0xff] }
  0x1b   : > { %243 = vst.msk [vmem:[#allocation2 + $0x78] sm:$0xff] %vm226_vm0, %v8083_v0 }
  0x1c   : > { %244 = vst.msk [vmem:[#allocation2 + $0x80] sm:$0xff] %vm226_vm0, %v8083_v0 }
  0x1d   : > { %245 = vst.msk [vmem:[#allocation2 + $0x88] sm:$0x3] %vm229_vm1, %v8083_v0 }
  0x1e   : > { %246 = vst.msk [vmem:[#allocation2 + $0x90] sm:$0xff] %vm226_vm0, %v8083_v0 }
  0x1f   : > { %247 = vst.msk [vmem:[#allocation2 + $0x98] sm:$0xff] %vm226_vm0, %v8083_v0 }
  0x20   : > { %248 = vst.msk [vmem:[#allocation2 + $0xa0] sm:$0x3] %vm229_vm1, %v8083_v0 }
  0x21   : > { %249 = vst.msk [vmem:[#allocation2 + $0xa8] sm:$0xff] %vm226_vm0, %v8083_v0 }
  0x22   : > { %250 = vst.msk [vmem:[#allocation2 + $0xb0] sm:$0xff] %vm226_vm0, %v8083_v0 }
  0x23   : > { %251 = vst.msk [vmem:[#allocation2 + $0xb8] sm:$0x3] %vm229_vm1, %v8083_v0 }
  0x24   : > { %252 = vst.msk [vmem:[#allocation2 + $0xc0] sm:$0xff] %vm226_vm0, %v8083_v0 }
  0x25   : > { %253 = vst.msk [vmem:[#allocation2 + $0xc8] sm:$0xff] %vm226_vm0, %v8083_v0 }
  0x26   : > { %254 = vst.msk [vmem:[#allocation2 + $0xd0] sm:$0x3] %vm229_vm1, %v8083_v0 }
  0x27   : > { %255 = vst.msk [vmem:[#allocation2 + $0xd8] sm:$0xff] %vm226_vm0, %v8083_v0 }
  0x28   : > { %256 = vst.msk [vmem:[#allocation2 + $0xe0] sm:$0xff] %vm226_vm0, %v8083_v0 }
  0x29   : > { %257 = vst.msk [vmem:[#allocation2 + $0xe8] sm:$0x3] %vm229_vm1, %v8083_v0 }
  0x2a   : > { %258 = vst.msk [vmem:[#allocation2 + $0xf0] sm:$0xff] %vm226_vm0, %v8083_v0 }
  0x2b   : > { %259 = vst.msk [vmem:[#allocation2 + $0xf8] sm:$0xff] %vm226_vm0, %v8083_v0 }
  0x2c   : > { %260 = vst.msk [vmem:[#allocation2 + $0x100] sm:$0x3] %vm229_vm1, %v8083_v0 }
  0x2d   : > { %261 = vst.msk [vmem:[#allocation2 + $0x108] sm:$0xff] %vm226_vm0, %v8083_v0 }
  0x2e   : > { %262 = vst.msk [vmem:[#allocation2 + $0x110] sm:$0xff] %vm226_vm0, %v8083_v0 }
  0x2f   : > { %263 = vst.msk [vmem:[#allocation2 + $0x118] sm:$0x3] %vm229_vm1, %v8083_v0 }
  0x30   : > { %264 = vst.msk [vmem:[#allocation2 + $0x120] sm:$0xff] %vm226_vm0, %v8083_v0 }
  0x31   : > { %265 = vst.msk [vmem:[#allocation2 + $0x128] sm:$0xff] %vm226_vm0, %v8083_v0 }
  0x32   : > { %266 = vst.msk [vmem:[#allocation2 + $0x130] sm:$0x3] %vm229_vm1, %v8083_v0 }
  0x33   : > { %267 = vst.msk [vmem:[#allocation2 + $0x138] sm:$0xff] %vm226_vm0, %v8083_v0 }
  0x34   : > { %268 = vst.msk [vmem:[#allocation2 + $0x140] sm:$0xff] %vm226_vm0, %v8083_v0 }
  0x35   : > { %269 = vst.msk [vmem:[#allocation2 + $0x148] sm:$0x3] %vm229_vm1, %v8083_v0 }
  0x36   : > { %270 = vst.msk [vmem:[#allocation2 + $0x150] sm:$0xff] %vm226_vm0, %v8083_v0 }
  0x37   : > { %271 = vst.msk [vmem:[#allocation2 + $0x158] sm:$0xff] %vm226_vm0, %v8083_v0 }
  0x38   : > { %272 = vst.msk [vmem:[#allocation2 + $0x160] sm:$0x3] %vm229_vm1, %v8083_v0 }
  0x39   : > { %273 = vst.msk [vmem:[#allocation2 + $0x168] sm:$0xff] %vm226_vm0, %v8083_v0 }
  0x3a   : > { %274 = vst.msk [vmem:[#allocation2 + $0x170] sm:$0xff] %vm226_vm0, %v8083_v0 }
  0x3b   : > { %275 = vst.msk [vmem:[#allocation2 + $0x178] sm:$0x3] %vm229_vm1, %v8083_v0 }
  0x3c   : > { %276 = vst.msk [vmem:[#allocation2 + $0x180] sm:$0xff] %vm226_vm0, %v8083_v0 }
  0x3d   : > { %277 = vst.msk [vmem:[#allocation2 + $0x188] sm:$0xff] %vm226_vm0, %v8083_v0 }
  0x3e   : > { %278 = vst.msk [vmem:[#allocation2 + $0x190] sm:$0x3] %vm229_vm1, %v8083_v0 }
  0x3f   : > { %279 = vst.msk [vmem:[#allocation2 + $0x198] sm:$0xff] %vm226_vm0, %v8083_v0 }
  0x40   : > { %280 = vst.msk [vmem:[#allocation2 + $0x1a0] sm:$0xff] %vm226_vm0, %v8083_v0 }
  0x41   : > { %281 = vst.msk [vmem:[#allocation2 + $0x1a8] sm:$0x3] %vm229_vm1, %v8083_v0 }
  0x42   : > { %321 = vst.msk [vmem:[#allocation2 + $0x61] sm:$0xff] %vm226_vm0, %v288_v4 }
  0x43   : > { %322 = vst.msk [vmem:[#allocation2 + $0x69] sm:$0xff] %vm226_vm0, %v289_v5 }
  0x44   : > { %317 = vst.msk [vmem:[#allocation2 + $0x31] sm:$0xff] %vm226_vm0, %v284_v6 }
  0x45   : > { %318 = vst.msk [vmem:[#allocation2 + $0x39] sm:$0xff] %vm226_vm0, %v285_v7 }
  0x46   : > { %315 = vst.msk [vmem:[#allocation2 + $0x19] sm:$0xff] %vm226_vm0, %v282_v8 }
  0x47   : > { %316 = vst.msk [vmem:[#allocation2 + $0x21] sm:$0xff] %vm226_vm0, %v283_v9 }
  0x48   : > { %323 = vst.msk [vmem:[#allocation2 + $0x79] sm:$0xff] %vm226_vm0, %v290_v10 }
  0x49   : > { %v387_v14 = vld [vmem:[#allocation2 + $0x61] sm:$0xff]  ;;  %324 = vst.msk [vmem:[#allocation2 + $0x81] sm:$0xff] %vm226_vm0, %v291_v11 }
  0x4a   : > { %v388_v16 = vld [vmem:[#allocation2 + $0x69] sm:$0xff]  ;;  %319 = vst.msk [vmem:[#allocation2 + $0x49] sm:$0xff] %vm226_vm0, %v286_v12 }
  0x4b   : > { %v5356_v18 = vpack.i.bf16 %v388_v16, %v387_v14  ;;  %v383_v19 = vld [vmem:[#allocation2 + $0x31] sm:$0xff]  ;;  %320 = vst.msk [vmem:[#allocation2 + $0x51] sm:$0xff] %vm226_vm0, %v287_v13 }
  0x4c   : > { %v384_v21 = vld [vmem:[#allocation2 + $0x39] sm:$0xff]  ;;  %325 = vst.msk [vmem:[#allocation2 + $0x91] sm:$0xff] %vm226_vm0, %v292_v15 }
  0x4d   : > { %3965 = vrot.lane.b32.xlu2 %v5356_v18, %s5162_s20  ;;  %v5364_v23 = vpack.i.bf16 %v384_v21, %v383_v19  ;;  %v381_v24 = vld [vmem:[#allocation2 + $0x19] sm:$0xff]  ;;  %326 = vst.msk [vmem:[#allocation2 + $0x99] sm:$0xff] %vm226_vm0, %v293_v17  ;;  %v411_v19 = vld [vmem:[#allocation2 + $0x2] sm:$0xff] }
  0x4e   : > { %v382_v26 = vld [vmem:[#allocation2 + $0x21] sm:$0xff]  ;;  %329 = vst.msk [vmem:[#allocation2 + $0xc1] sm:$0xff] %vm226_vm0, %v296_v20  ;;  %v412_v20 = vld [vmem:[#allocation2 + $0xa] sm:$0xff] }
  0x4f   : > { %3955 = vrot.lane.b32.xlu1 %v5364_v23, %s5162_s20  ;;  %v5372_v28 = vpack.i.bf16 %v382_v26, %v381_v24  ;;  %v389_v29 = vld [vmem:[#allocation2 + $0x79] sm:$0xff]  ;;  %330 = vst.msk [vmem:[#allocation2 + $0xc9] sm:$0xff] %vm226_vm0, %v297_v22  ;;  %v414_v17 = vld [vmem:[#allocation2 + $0x22] sm:$0xff] }
  0x50   : > { %v390_v31 = vld [vmem:[#allocation2 + $0x81] sm:$0xff]  ;;  %327 = vst.msk [vmem:[#allocation2 + $0xa9] sm:$0xff] %vm226_vm0, %v294_v25  ;;  %v415_v22 = vld [vmem:[#allocation2 + $0x32] sm:$0xff]  ;;  %v4024_v25 = vpack.i.bf16 %v412_v20, %v411_v19 }
  0x51   : > { %3950 = vrot.lane.b32.xlu0 %v5372_v28, %s5162_s20  ;;  %v5380_v33 = vpack.i.bf16 %v390_v31, %v389_v29  ;;  %v385_v34 = vld [vmem:[#allocation2 + $0x49] sm:$0xff]  ;;  %328 = vst.msk [vmem:[#allocation2 + $0xb1] sm:$0xff] %vm226_vm0, %v295_v27  ;;  %v413_v16 = vld [vmem:[#allocation2 + $0x1a] sm:$0xff] }
  0x52   : > { %v386_v36 = vld [vmem:[#allocation2 + $0x51] sm:$0xff]  ;;  %331 = vst.msk [vmem:[#allocation2 + $0xd9] sm:$0xff] %vm226_vm0, %v298_v30  ;;  %v5455_v21 = vpack.i.bf16 %v414_v17, %v413_v16  ;;  %v416_v24 = vld [vmem:[#allocation2 + $0x3a] sm:$0xff]  ;;  %v419_v27 = vld [vmem:[#allocation2 + $0x62] sm:$0xff] }
  0x53   : > { %v5386_v38 = vpack.i.bf16 %v386_v36, %v385_v34  ;;  %v391_v39 = vld [vmem:[#allocation2 + $0x91] sm:$0xff]  ;;  %332 = vst.msk [vmem:[#allocation2 + $0xe1] sm:$0xff] %vm226_vm0, %v299_v32  ;;  %v5459_v26 = vpack.i.bf16 %v416_v24, %v415_v22  ;;  %v421_v34 = vld [vmem:[#allocation2 + $0x7a] sm:$0xff] }
  0x54   : > { %v392_v41 = vld [vmem:[#allocation2 + $0x99] sm:$0xff]  ;;  %335 = vst.msk [vmem:[#allocation2 + $0x109] sm:$0xff] %vm226_vm0, %v302_v35  ;;  %v420_v29 = vld [vmem:[#allocation2 + $0x6a] sm:$0xff]  ;;  %v422_v35 = vld [vmem:[#allocation2 + $0x82] sm:$0xff] }
  0x55   : > { %3970 = vrot.lane.b32.xlu2 %v5380_v33, %s5162_s20  ;;  %v5394_v43 = vpack.i.bf16 %v392_v41, %v391_v39  ;;  %336 = vst.msk [vmem:[#allocation2 + $0x111] sm:$0xff] %vm226_vm0, %v303_v37  ;;  %v395_v45 = vld [vmem:[#allocation2 + $0xc1] sm:$0xff]  ;;  %v417_v30 = vld [vmem:[#allocation2 + $0x4a] sm:$0xff]  ;;  %v418_v31 = vld [vmem:[#allocation2 + $0x52] sm:$0xff]  ;;  %v5464_v32 = vpack.i.bf16 %v420_v29, %v419_v27  ;;  %v5470_v37 = vpack.i.bf16 %v422_v35, %v421_v34 }
  0x56   : > { %v396_v46 = vld [vmem:[#allocation2 + $0xc9] sm:$0xff]  ;;  %333 = vst.msk [vmem:[#allocation2 + $0xf1] sm:$0xff] %vm226_vm0, %v300_v40  ;;  %v5466_v36 = vpack.i.bf16 %v418_v31, %v417_v30  ;;  %v423_v41 = vld [vmem:[#allocation2 + $0x92] sm:$0xff]  ;;  %v5532_v29 = vld [vmem:[#allocation2 + $0x60] sm:$0xff] }
  0x57   : > { %3960 = vrot.lane.b32.xlu1 %v5386_v38, %s5162_s20  ;;  %334 = vst.msk [vmem:[#allocation2 + $0xf9] sm:$0xff] %vm226_vm0, %v301_v42  ;;  %v393_v49 = vld [vmem:[#allocation2 + $0xa9] sm:$0xff]  ;;  %v5408_v52 = vpack.i.bf16 %v396_v46, %v395_v45  ;;  %v424_v42 = vld [vmem:[#allocation2 + $0x9a] sm:$0xff] }
  0x58   : > { %v394_v50 = vld [vmem:[#allocation2 + $0xb1] sm:$0xff]  ;;  %337 = vst.msk [vmem:[#allocation2 + $0x121] sm:$0xff] %vm226_vm0, %v304_v44  ;;  %v427_v45 = vld [vmem:[#allocation2 + $0xc2] sm:$0xff] }
  0x59   : > { %3975 = vrot.lane.b32.xlu0 %v5394_v43, %s5162_s20  ;;  %338 = vst.msk [vmem:[#allocation2 + $0x129] sm:$0xff] %vm226_vm0, %v305_v47  ;;  %v397_v54 = vld [vmem:[#allocation2 + $0xd9] sm:$0xff]  ;;  %v5414_v57 = vpack.i.bf16 %v394_v50, %v393_v49  ;;  %v425_v39 = vld [vmem:[#allocation2 + $0xaa] sm:$0xff]  ;;  %v5478_v47 = vpack.i.bf16 %v424_v42, %v423_v41 }
  0x5a   : > { %v398_v55 = vld [vmem:[#allocation2 + $0xe1] sm:$0xff]  ;;  %341 = vst.msk [vmem:[#allocation2 + $0x151] sm:$0xff] %vm226_vm0, %v308_v48  ;;  %v426_v40 = vld [vmem:[#allocation2 + $0xb2] sm:$0xff]  ;;  %v428_v46 = vld [vmem:[#allocation2 + $0xca] sm:$0xff] }
  0x5b   : > { %342 = vst.msk [vmem:[#allocation2 + $0x159] sm:$0xff] %vm226_vm0, %v309_v51  ;;  %v5422_v60 = vpack.i.bf16 %v398_v55, %v397_v54  ;;  %v401_v61 = vld [vmem:[#allocation2 + $0x109] sm:$0xff]  ;;  %v5476_v44 = vpack.i.bf16 %v426_v40, %v425_v39  ;;  %v5482_v48 = vpack.i.bf16 %v428_v46, %v427_v45  ;;  %v429_v51 = vld [vmem:[#allocation2 + $0xda] sm:$0xff] }
  0x5c   : > { %339 = vst.msk [vmem:[#allocation2 + $0x139] sm:$0xff] %vm226_vm0, %v306_v53  ;;  %v402_v62 = vld [vmem:[#allocation2 + $0x111] sm:$0xff]  ;;  %v430_v53 = vld [vmem:[#allocation2 + $0xe2] sm:$0xff] }
  0x5d   : > { %3985 = vrot.lane.b32.xlu2 %v5408_v52, %s5162_s20  ;;  %340 = vst.msk [vmem:[#allocation2 + $0x141] sm:$0xff] %vm226_vm0, %v307_v56  ;;  %v399_v63 = vld [vmem:[#allocation2 + $0xf1] sm:$0xff]  ;;  %v5431_v2 = vpack.i.bf16 %v402_v62, %v401_v61  ;;  %v5534_v30 = vld [vmem:[#allocation2 + $0x68] sm:$0xff]  ;;  %v5551_v40 = vld [vmem:[#allocation2 + $0x80] sm:$0xff] }
  0x5e   : > { %343 = vst.msk [vmem:[#allocation2 + $0x169] sm:$0xff] %vm226_vm0, %v310_v58  ;;  %v400_v1 = vld [vmem:[#allocation2 + $0xf9] sm:$0xff]  ;;  %v433_v55 = vld [vmem:[#allocation2 + $0x10a] sm:$0xff]  ;;  %v5490_v58 = vpack.i.bf16 %v430_v53, %v429_v51  ;;  %v5547_v35 = vpack.i.bf16 %v5534_v30, %v5532_v29 }
  0x5f   : > { %3980 = vrot.lane.b32.xlu1 %v5414_v57, %s5162_s20  ;;  %344 = vst.msk [vmem:[#allocation2 + $0x171] sm:$0xff] %vm226_vm0, %v311_v59  ;;  %v403_v3 = vld [vmem:[#allocation2 + $0x121] sm:$0xff]  ;;  %v5433_v5 = vpack.i.bf16 %v400_v1, %v399_v63  ;;  %v431_v49 = vld [vmem:[#allocation2 + $0xf2] sm:$0xff] }
  0x60   : > { %v404_v4 = vld [vmem:[#allocation2 + $0x129] sm:$0xff]  ;;  %v432_v50 = vld [vmem:[#allocation2 + $0xfa] sm:$0xff]  ;;  %v434_v56 = vld [vmem:[#allocation2 + $0x112] sm:$0xff] }
  0x61   : > { %3990 = vrot.lane.b32.xlu0 %v5422_v60, %s5162_s20  ;;  %v5437_v6 = vpack.i.bf16 %v404_v4, %v403_v3  ;;  %v407_v7 = vld [vmem:[#allocation2 + $0x151] sm:$0xff]  ;;  %v5488_v54 = vpack.i.bf16 %v432_v50, %v431_v49  ;;  %v5494_v59 = vpack.i.bf16 %v434_v56, %v433_v55  ;;  %v435_v63 = vld [vmem:[#allocation2 + $0x122] sm:$0xff] }
  0x62   : > { %v408_v8 = vld [vmem:[#allocation2 + $0x159] sm:$0xff]  ;;  %v436_v1 = vld [vmem:[#allocation2 + $0x12a] sm:$0xff] }
  0x63   : > { %v405_v9 = vld [vmem:[#allocation2 + $0x139] sm:$0xff]  ;;  %v5443_v11 = vpack.i.bf16 %v408_v8, %v407_v7  ;;  %v5502_v8 = vpack.i.bf16 %v436_v1, %v435_v63  ;;  %v5518_v19 = vld [vmem:[#allocation2 + $0x30] sm:$0xff]  ;;  %v5539_v31 = vld [vmem:[#allocation2 + $0x48] sm:$0xff] }
  0x64   : > { %v406_v10 = vld [vmem:[#allocation2 + $0x141] sm:$0xff]  ;;  %v439_v4 = vld [vmem:[#allocation2 + $0x152] sm:$0xff]  ;;  %8195 = vst [vmem:[#allocation6_spill] sm:$0xff] %v5518_v19 }
  0x65   : > { %4000 = vrot.lane.b32.xlu2 %v5431_v2, %s5162_s20  ;;  %v409_v12 = vld [vmem:[#allocation2 + $0x169] sm:$0xff]  ;;  %v5445_v14 = vpack.i.bf16 %v406_v10, %v405_v9  ;;  %v437_v61 = vld [vmem:[#allocation2 + $0x13a] sm:$0xff]  ;;  %8197 = vst [vmem:[#allocation8_spill] sm:$0xff] %v5539_v31 }
  0x66   : > { %v410_v13 = vld [vmem:[#allocation2 + $0x171] sm:$0xff]  ;;  %v438_v62 = vld [vmem:[#allocation2 + $0x142] sm:$0xff]  ;;  %v440_v7 = vld [vmem:[#allocation2 + $0x15a] sm:$0xff] }
  0x67   : > { %3995 = vrot.lane.b32.xlu1 %v5433_v5, %s5162_s20  ;;  %v5449_v15 = vpack.i.bf16 %v410_v13, %v409_v12  ;;  %v5500_v3 = vpack.i.bf16 %v438_v62, %v437_v61  ;;  %v5506_v9 = vpack.i.bf16 %v440_v7, %v439_v4  ;;  %v5508_v10 = vld [vmem:[#allocation2 + $0x18] sm:$0xff]  ;;  %v5510_v12 = vld [vmem:[#allocation2 + $0x20] sm:$0xff]  ;;  %v441_v13 = vld [vmem:[#allocation2 + $0x16a] sm:$0xff] }
  0x68   : > { %8193 = vst [vmem:[#allocation4_spill] sm:$0xff] %v5508_v10  ;;  %v442_v16 = vld [vmem:[#allocation2 + $0x172] sm:$0xff]  ;;  %v4104_v17 = vpack.i.bf16 %v5510_v12, %v5508_v10  ;;  %v5563_v45 = vld [vmem:[#allocation2 + $0xa8] sm:$0xff]  ;;  %v5581_v55 = vld [vmem:[#allocation2 + $0xc0] sm:$0xff] }
  0x69   : > { %4005 = vrot.lane.b32.xlu0 %v5437_v6, %s5162_s20  ;;  %8194 = vst [vmem:[#allocation5_spill] sm:$0xff] %v5510_v12  ;;  %v5520_v20 = vld [vmem:[#allocation2 + $0x38] sm:$0xff]  ;;  %v5522_v22 = vpack.i.bf16 %v442_v16, %v441_v13  ;;  %v312_v24 = vld [vmem:[%s5323_s24 + $0xf0] sm:$0xff]  ;;  %v5583_v56 = vld [vmem:[#allocation2 + $0xc8] sm:$0xff] }
  0x6a   : > { %8196 = vst [vmem:[#allocation7_spill] sm:$0xff] %v5520_v20  ;;  %v313_v27 = vld [vmem:[%s5323_s24 + $0xf8] sm:$0xff]  ;;  %v5541_v34 = vld [vmem:[#allocation2 + $0x50] sm:$0xff]  ;;  %v5593_v62 = vpack.i.bf16 %v5583_v56, %v5581_v55  ;;  %v5605_v13 = vld [vmem:[#allocation2 + $0xe0] sm:$0xff] }
  0x6b   : > { %345 = vst.msk [vmem:[#allocation2 + $0x181] sm:$0xff] %vm226_vm0, %v312_v24  ;;  %v5549_v39 = vld [vmem:[#allocation2 + $0x78] sm:$0xff]  ;;  %v5555_v41 = vpack.i.bf16 %v5541_v34, %v5539_v31  ;;  %v5565_v46 = vld [vmem:[#allocation2 + $0xb0] sm:$0xff] }
  0x6c   : > { %346 = vst.msk [vmem:[#allocation2 + $0x189] sm:$0xff] %vm226_vm0, %v313_v27  ;;  %v5561_v42 = vpack.i.bf16 %v5551_v40, %v5549_v39  ;;  %v5571_v50 = vld [vmem:[#allocation2 + $0x90] sm:$0xff]  ;;  %v5573_v51 = vld [vmem:[#allocation2 + $0x98] sm:$0xff]  ;;  %v5579_v53 = vpack.i.bf16 %v5565_v46, %v5563_v45 }
  0x6d   : > { %4015 = vrot.lane.b32.xlu2 %v5443_v11, %s5162_s20  ;;  %8198 = vst [vmem:[#allocation9_spill] sm:$0xff] %v5541_v34  ;;  %v5587_v61 = vpack.i.bf16 %v5573_v51, %v5571_v50  ;;  %v5595_v63 = vld [vmem:[#allocation2 + $0xf0] sm:$0xff]  ;;  %v5597_v1 = vld [vmem:[#allocation2 + $0xf8] sm:$0xff] }
  0x6e   : > { %8199 = vst [vmem:[#allocation10_spill] sm:$0xff] %v5563_v45  ;;  %v5603_v7 = vld [vmem:[#allocation2 + $0xd8] sm:$0xff]  ;;  %v5611_v16 = vpack.i.bf16 %v5597_v1, %v5595_v63  ;;  %v5615_v24 = vld [vmem:[#allocation2 + $0x110] sm:$0xff] }
  0x6f   : > { %4010 = vrot.lane.b32.xlu1 %v5445_v14, %s5162_s20  ;;  %8200 = vst [vmem:[#allocation11_spill] sm:$0xff] %v5565_v46  ;;  %v5619_v27 = vpack.i.bf16 %v5605_v13, %v5603_v7  ;;  %v5627_v45 = vld [vmem:[#allocation2 + $0x138] sm:$0xff]  ;;  %v5629_v46 = vld [vmem:[#allocation2 + $0x140] sm:$0xff] }
  0x70   : > { %8201 = vst [vmem:[#allocation12_spill] sm:$0xff] %v5571_v50  ;;  %v5645_v50 = vpack.i.bf16 %v5629_v46, %v5627_v45  ;;  %v5649_v31 = vld [vmem:[#allocation2 + $0x158] sm:$0xff] }
  0x71   : > { %4020 = vrot.lane.b32.xlu0 %v5449_v15, %s5162_s20  ;;  %8202 = vst [vmem:[#allocation13_spill] sm:$0xff] %v5573_v51  ;;  %v5647_v51 = vld [vmem:[#allocation2 + $0x150] sm:$0xff]  ;;  %s5173_s20 = smov 96  }
  0x72   : > { %8203 = vst [vmem:[#allocation14_spill] sm:$0xff] %v5595_v63  ;;  %v5659_v12 = vpack.i.bf16 %v5649_v31, %v5647_v51 }
  0x73   : > { %8204 = vst [vmem:[#allocation15_spill] sm:$0xff] %v5597_v1  ;;  %v5635_v1 = vld [vmem:[#allocation2 + $0x120] sm:$0xff]  ;;  %v474_v10 = vld [vmem:[#allocation2 + $0x188] sm:$0xff] }
  0x74   : > { %8205 = vst [vmem:[#allocation16_spill] sm:$0xff] %v5603_v7  ;;  %v5637_v7 = vld [vmem:[#allocation2 + $0x128] sm:$0xff] }
  0x75   : > { %4030 = vrot.lane.b32.xlu2 %v5455_v21, %s5163_s25  ;;  %8206 = vst [vmem:[#allocation17_spill] sm:$0xff] %v5605_v13  ;;  %v5653_v34 = vpack.i.bf16 %v5637_v7, %v5635_v1 }
  0x76   : > { %8208 = vst [vmem:[#allocation19_spill] sm:$0xff] %v5615_v24 }
  0x77   : > { %4025 = vrot.lane.b32.xlu1 %v4024_v25, %s5163_s25  ;;  %v5528_v25 = vpack.i.bf16 %v5520_v20, %v5518_v19  ;;  %8209 = vst [vmem:[#allocation20_spill] sm:$0xff] %v5627_v45  ;;  %v473_v20 = vld [vmem:[#allocation2 + $0x180] sm:$0xff]  ;;  %v5667_v19 = vld [vmem:[#allocation2 + $0x170] sm:$0xff] }
  0x78   : > { %8210 = vst [vmem:[#allocation21_spill] sm:$0xff] %v5629_v46  ;;  %v5665_v46 = vld [vmem:[#allocation2 + $0x168] sm:$0xff] }
  0x79   : > { %4035 = vrot.lane.b32.xlu0 %v5459_v26, %s5163_s25  ;;  %8211 = vst [vmem:[#allocation22_spill] sm:$0xff] %v5635_v1 }
  0x7a   : > { %8212 = vst [vmem:[#allocation23_spill] sm:$0xff] %v5637_v7  ;;  %v5673_v7 = vpack.i.bf16 %v474_v10, %v473_v20 }
  0x7b   : > { %8213 = vst [vmem:[#allocation24_spill] sm:$0xff] %v5647_v51 }
  0x7c   : > { %8214 = vst [vmem:[#allocation25_spill] sm:$0xff] %v5649_v31  ;;  %v5679_v31 = vpack.i.bf16 %v5667_v19, %v5665_v46 }
  0x7d   : > { %4045 = vrot.lane.b32.xlu2 %v5464_v32, %s5163_s25  ;;  %8215 = vst [vmem:[#allocation26_spill] sm:$0xff] %v5665_v46 }
  0x7e   : > { %8216 = vst [vmem:[#allocation27_spill] sm:$0xff] %v5667_v19 }
  0x7f   : > { %4040 = vrot.lane.b32.xlu1 %v5466_v36, %s5163_s25 }
  0x81   : > { %4050 = vrot.lane.b32.xlu0 %v5470_v37, %s5163_s25 }
  0x85   : > { %4060 = vrot.lane.b32.xlu2 %v5476_v44, %s5163_s25 }
  0x87   : > { %4055 = vrot.lane.b32.xlu1 %v5478_v47, %s5163_s25 }
  0x89   : > { %4065 = vrot.lane.b32.xlu0 %v5482_v48, %s5163_s25 }
  0x8a   : > { %v5641_v13 = vpop.permute.xlu0 %3945 }
  0x8d   : > { %4075 = vrot.lane.b32.xlu2 %v5488_v54, %s5163_s25 }
  0x8f   : > { %4070 = vrot.lane.b32.xlu1 %v5490_v58, %s5163_s25 }
  0x91   : > { %4080 = vrot.lane.b32.xlu0 %v5494_v59, %s5163_s25 }
  0x95   : > { %4090 = vrot.lane.b32.xlu2 %v5500_v3, %s5163_s25 }
  0x97   : > { %4085 = vrot.lane.b32.xlu1 %v5502_v8, %s5163_s25 }
  0x99   : > { %4095 = vrot.lane.b32.xlu0 %v5506_v9, %s5163_s25 }
  0x9d   : > { %4105 = vrot.lane.b32.xlu2 %v4104_v17, %s5164_s26  ;;  %v5613_v17 = vld [vmem:[#allocation2 + $0x108] sm:$0xff] }
  0x9e   : > { %8207 = vst [vmem:[#allocation18_spill] sm:$0xff] %v5613_v17  ;;  %v5625_v0 = vpack.i.bf16 %v5615_v24, %v5613_v17 }
  0x9f   : > { %4100 = vrot.lane.b32.xlu1 %v5522_v22, %s5163_s25 }
  0xa1   : > { %4110 = vrot.lane.b32.xlu0 %v5528_v25, %s5164_s26 }
  0xa5   : > { %4120 = vrot.lane.b32.xlu2 %v5547_v35, %s5164_s26 }
  0xa7   : > { %4115 = vrot.lane.b32.xlu1 %v5555_v41, %s5164_s26  ;;  %v5569_v49 = vpop.permute.xlu2 %3965 }
  0xa9   : > { %4125 = vrot.lane.b32.xlu0 %v5561_v42, %s5164_s26 }
  0xad   : > { %4135 = vrot.lane.b32.xlu2 %v5579_v53, %s5164_s26 }
  0xaf   : > { %4130 = vrot.lane.b32.xlu1 %v5587_v61, %s5164_s26  ;;  %v5601_v4 = vpop.permute.xlu2 %3970 }
  0xb1   : > { %4140 = vrot.lane.b32.xlu0 %v5593_v62, %s5164_s26 }
  0xb5   : > { %4150 = vrot.lane.b32.xlu2 %v5611_v16, %s5164_s26 }
  0xb7   : > { %4145 = vrot.lane.b32.xlu1 %v5619_v27, %s5164_s26  ;;  %v5633_v63 = vpop.permute.xlu2 %3985 }
  0xb9   : > { %4155 = vrot.lane.b32.xlu0 %v5625_v0, %s5164_s26 }
  0xbd   : > { %4165 = vrot.lane.b32.xlu2 %v5645_v50, %s5164_s26 }
  0xbf   : > { %4160 = vrot.lane.b32.xlu1 %v5653_v34, %s5164_s26  ;;  %v5663_v45 = vpop.permute.xlu2 %4000 }
  0xc1   : > { %v5669_v1 = vpop.permute.xlu1 %3955  ;;  %4170 = vrot.lane.b32.xlu0 %v5659_v12, %s5164_s26 }
  0xc3   : > { %v5675_v51 = vpop.permute.xlu0 %3950 }
  0xc5   : > { %4180 = vrot.lane.b32.xlu2 %v5673_v7, %s5164_s26 }
  0xc7   : > { %4175 = vrot.lane.b32.xlu1 %v5679_v31, %s5164_s26  ;;  %v5685_v17 = vpop.permute.xlu2 %4015 }
  0xc9   : > { %v5687_v24 = vpop.permute.xlu1 %3960  ;;  %4185 = vrot.lane.b32.xlu0 %v5372_v28, %s5165_s27 }
  0xcb   : > { %v5691_v10 = vpop.permute.xlu0 %3975 }
  0xcd   : > { %4195 = vrot.lane.b32.xlu2 %v5386_v38, %s5165_s27 }
  0xcf   : > { %4190 = vrot.lane.b32.xlu1 %v5364_v23, %s5165_s27  ;;  %v5697_v20 = vpop.permute.xlu2 %4030 }
  0xd1   : > { %v5699_v46 = vpop.permute.xlu1 %3980  ;;  %4200 = vrot.lane.b32.xlu0 %v5356_v18, %s5165_s27 }
  0xd3   : > { %v5703_v19 = vpop.permute.xlu0 %3990 }
  0xd5   : > { %4210 = vrot.lane.b32.xlu2 %v5394_v43, %s5165_s27 }
  0xd7   : > { %4205 = vrot.lane.b32.xlu1 %v5380_v33, %s5165_s27  ;;  %v5709_v28 = vpop.permute.xlu2 %4045 }
  0xd9   : > { %v5711_v38 = vpop.permute.xlu1 %3995  ;;  %4215 = vrot.lane.b32.xlu0 %v5414_v57, %s5165_s27 }
  0xdb   : > { %v5715_v23 = vpop.permute.xlu0 %4005 }
  0xdd   : > { %4225 = vrot.lane.b32.xlu2 %v5422_v60, %s5165_s27 }
  0xdf   : > { %4220 = vrot.lane.b32.xlu1 %v5408_v52, %s5165_s27  ;;  %v5721_v18 = vpop.permute.xlu2 %4060  ;;  %v505_v52 = vld [vmem:[#allocation2 + $0x181] sm:$0xff] }
  0xe0   : > { %8217 = vst [vmem:[#allocation28_spill] sm:$0xff] %v5721_v18  ;;  %v506_v18 = vld [vmem:[#allocation2 + $0x189] sm:$0xff] }
  0xe1   : > { %v5723_v43 = vpop.permute.xlu1 %4010  ;;  %4230 = vrot.lane.b32.xlu0 %v5433_v5, %s5165_s27  ;;  %v5743_v5 = vpack.i.bf16 %v506_v18, %v505_v52 }
  0xe2   : > { %8218 = vst [vmem:[#allocation29_spill] sm:$0xff] %v5723_v43 }
  0xe3   : > { %v5727_v33 = vpop.permute.xlu0 %4020 }
  0xe5   : > { %4240 = vrot.lane.b32.xlu2 %v5437_v6, %s5165_s27 }
  0xe7   : > { %4235 = vrot.lane.b32.xlu1 %v5431_v2, %s5165_s27  ;;  %v5733_v57 = vpop.permute.xlu2 %4075 }
  0xe9   : > { %v5735_v60 = vpop.permute.xlu1 %4025  ;;  %4245 = vrot.lane.b32.xlu0 %v5445_v14, %s5165_s27 }
  0xeb   : > { %v5739_v43 = vpop.permute.xlu0 %4035 }
  0xed   : > { %4255 = vrot.lane.b32.xlu2 %v5449_v15, %s5165_s27 }
  0xef   : > { %4250 = vrot.lane.b32.xlu1 %v5443_v11, %s5165_s27  ;;  %v5747_v2 = vpop.permute.xlu2 %4090 }
  0xf1   : > { %v5749_v6 = vpop.permute.xlu1 %4040  ;;  %4260 = vrot.lane.b32.xlu0 %v5743_v5, %s5165_s27 }
  0xf3   : > { %v5753_v14 = vpop.permute.xlu0 %4050 }
  0xf5   : > { %4270 = vrot.lane.b32.xlu2 %v5459_v26, %s5166_s28 }
  0xf7   : > { %4265 = vrot.lane.b32.xlu1 %v5455_v21, %s5166_s28  ;;  %v5759_v15 = vpop.permute.xlu2 %4105 }
  0xf9   : > { %v5761_v18 = vpop.permute.xlu1 %4055  ;;  %4275 = vrot.lane.b32.xlu0 %v5466_v36, %s5166_s28 }
  0xfb   : > { %v5765_v11 = vpop.permute.xlu0 %4065 }
  0xfd   : > { %4285 = vrot.lane.b32.xlu2 %v5470_v37, %s5166_s28 }
  0xff   : > { %4280 = vrot.lane.b32.xlu1 %v5464_v32, %s5166_s28  ;;  %v5771_v52 = vpop.permute.xlu2 %4120 }
 0x100   : > { %8219 = vst [vmem:[#allocation30_spill] sm:$0xff] %v5771_v52 }
 0x101   : > { %v5773_v26 = vpop.permute.xlu1 %4070  ;;  %4290 = vrot.lane.b32.xlu0 %v5478_v47, %s5166_s28 }
 0x102   : > { %8220 = vst [vmem:[#allocation31_spill] sm:$0xff] %v5773_v26  ;;  %v8222_v26 = vmov 0.0  }
 0x103   : > { %v5777_v21 = vpop.permute.xlu0 %4080  ;;  %2137 = vst.msk [vmem:[#allocation3] sm:$0xff] %vm1758_vm2, %v8222_v26 }
 0x104   : > { %2138 = vst.msk [vmem:[#allocation3 + $0x8] sm:$0xff] %vm1758_vm2, %v8222_v26 }
 0x105   : > { %4300 = vrot.lane.b32.xlu2 %v5482_v48, %s5166_s28  ;;  %2141 = vst.msk [vmem:[#allocation3 + $0x18] sm:$0xff] %vm1758_vm2, %v8222_v26 }
 0x106   : > { %2142 = vst.msk [vmem:[#allocation3 + $0x20] sm:$0xff] %vm1758_vm2, %v8222_v26 }
 0x107   : > { %4295 = vrot.lane.b32.xlu1 %v5476_v44, %s5166_s28  ;;  %v5783_v36 = vpop.permute.xlu2 %4135  ;;  %2144 = vst.msk [vmem:[#allocation3 + $0x30] sm:$0xff] %vm1758_vm2, %v8222_v26 }
 0x108   : > { %2145 = vst.msk [vmem:[#allocation3 + $0x38] sm:$0xff] %vm1758_vm2, %v8222_v26 }
 0x109   : > { %v5785_v37 = vpop.permute.xlu1 %4085  ;;  %4305 = vrot.lane.b32.xlu0 %v5490_v58, %s5166_s28  ;;  %2147 = vst.msk [vmem:[#allocation3 + $0x48] sm:$0xff] %vm1758_vm2, %v8222_v26  ;;  %v537_v58 = vld [vmem:[#allocation2 + $0x182] sm:$0xff] }
 0x10a   : > { %8221 = vst [vmem:[#allocation32_spill] sm:$0xff] %v5785_v37 }
 0x10b   : > { %v5789_v32 = vpop.permute.xlu0 %4095  ;;  %2148 = vst.msk [vmem:[#allocation3 + $0x50] sm:$0xff] %vm1758_vm2, %v8222_v26 }
 0x10c   : > { %2150 = vst.msk [vmem:[#allocation3 + $0x60] sm:$0xff] %vm1758_vm2, %v8222_v26 }
 0x10d   : > { %4315 = vrot.lane.b32.xlu2 %v5494_v59, %s5166_s28  ;;  %2151 = vst.msk [vmem:[#allocation3 + $0x68] sm:$0xff] %vm1758_vm2, %v8222_v26  ;;  %v538_v59 = vld [vmem:[#allocation2 + $0x18a] sm:$0xff] }
 0x10e   : > { %2153 = vst.msk [vmem:[#allocation3 + $0x78] sm:$0xff] %vm1758_vm2, %v8222_v26 }
 0x10f   : > { %4310 = vrot.lane.b32.xlu1 %v5488_v54, %s5166_s28  ;;  %v5801_v44 = vpop.permute.xlu2 %4150  ;;  %2154 = vst.msk [vmem:[#allocation3 + $0x80] sm:$0xff] %vm1758_vm2, %v8222_v26 }
 0x110   : > { %8223 = vst [vmem:[#allocation33_spill] sm:$0xff] %v5801_v44  ;;  %v580_v44 = vld [vmem:[#allocation2 + $0x91] sm:$0xff] }
 0x111   : > { %v5807_v47 = vpop.permute.xlu1 %4100  ;;  %4320 = vrot.lane.b32.xlu0 %v5502_v8, %s5166_s28  ;;  %2156 = vst.msk [vmem:[#allocation3 + $0x90] sm:$0xff] %vm1758_vm2, %v8222_v26 }
 0x112   : > { %8224 = vst [vmem:[#allocation34_spill] sm:$0xff] %v5807_v47  ;;  %v581_v47 = vld [vmem:[#allocation2 + $0x99] sm:$0xff] }
 0x113   : > { %v5815_v48 = vpop.permute.xlu0 %4110  ;;  %2157 = vst.msk [vmem:[#allocation3 + $0x98] sm:$0xff] %vm1758_vm2, %v8222_v26 }
 0x114   : > { %8225 = vst [vmem:[#allocation35_spill] sm:$0xff] %v5815_v48 }
 0x115   : > { %4330 = vrot.lane.b32.xlu2 %v5506_v9, %s5166_s28  ;;  %2159 = vst.msk [vmem:[#allocation3 + $0xa8] sm:$0xff] %vm1758_vm2, %v8222_v26  ;;  %v5845_v9 = vpack.i.bf16 %v538_v59, %v537_v58 }
 0x116   : > { %2160 = vst.msk [vmem:[#allocation3 + $0xb0] sm:$0xff] %vm1758_vm2, %v8222_v26 }
 0x117   : > { %4325 = vrot.lane.b32.xlu1 %v5500_v3, %s5166_s28  ;;  %v5829_v54 = vpop.permute.xlu2 %4165  ;;  %2162 = vst.msk [vmem:[#allocation3 + $0xc0] sm:$0xff] %vm1758_vm2, %v8222_v26 }
 0x118   : > { %8226 = vst [vmem:[#allocation36_spill] sm:$0xff] %v5829_v54  ;;  %v574_v54 = vld [vmem:[#allocation2 + $0x49] sm:$0xff] }
 0x119   : > { %v5835_v8 = vpop.permute.xlu1 %4115  ;;  %4335 = vrot.lane.b32.xlu0 %v5522_v22, %s5166_s28  ;;  %2163 = vst.msk [vmem:[#allocation3 + $0xc8] sm:$0xff] %vm1758_vm2, %v8222_v26 }
 0x11a   : > { %8227 = vst [vmem:[#allocation37_spill] sm:$0xff] %v5835_v8 }
 0x11b   : > { %v5843_v3 = vpop.permute.xlu0 %4125  ;;  %2165 = vst.msk [vmem:[#allocation3 + $0xd8] sm:$0xff] %vm1758_vm2, %v8222_v26 }
 0x11c   : > { %2166 = vst.msk [vmem:[#allocation3 + $0xe0] sm:$0xff] %vm1758_vm2, %v8222_v26 }
 0x11d   : > { %4345 = vrot.lane.b32.xlu2 %v5528_v25, %s5167_s29  ;;  %2168 = vst.msk [vmem:[#allocation3 + $0xf0] sm:$0xff] %vm1758_vm2, %v8222_v26 }
 0x11e   : > { %2169 = vst.msk [vmem:[#allocation3 + $0xf8] sm:$0xff] %vm1758_vm2, %v8222_v26 }
 0x11f   : > { %4340 = vrot.lane.b32.xlu1 %v5845_v9, %s5166_s28  ;;  %v5859_v22 = vpop.permute.xlu2 %4180  ;;  %2171 = vst.msk [vmem:[#allocation3 + $0x108] sm:$0xff] %vm1758_vm2, %v8222_v26 }
 0x120   : > { %8228 = vst [vmem:[#allocation38_spill] sm:$0xff] %v5859_v22  ;;  %v577_v22 = vld [vmem:[#allocation2 + $0x69] sm:$0xff] }
 0x121   : > { %v5865_v58 = vpop.permute.xlu1 %4130  ;;  %4350 = vrot.lane.b32.xlu0 %v5555_v41, %s5167_s29  ;;  %2172 = vst.msk [vmem:[#allocation3 + $0x110] sm:$0xff] %vm1758_vm2, %v8222_v26 }
 0x122   : > { %2174 = vst.msk [vmem:[#allocation3 + $0x120] sm:$0xff] %vm1758_vm2, %v8222_v26 }
 0x123   : > { %v5873_v25 = vpop.permute.xlu0 %4140  ;;  %2175 = vst.msk [vmem:[#allocation3 + $0x128] sm:$0xff] %vm1758_vm2, %v8222_v26 }
 0x124   : > { %8229 = vst [vmem:[#allocation39_spill] sm:$0xff] %v5873_v25  ;;  %v593_v25 = vld [vmem:[#allocation2 + $0x129] sm:$0xff] }
 0x125   : > { %4360 = vrot.lane.b32.xlu2 %v5561_v42, %s5167_s29  ;;  %2177 = vst.msk [vmem:[#allocation3 + $0x138] sm:$0xff] %vm1758_vm2, %v8222_v26 }
 0x126   : > { %2178 = vst.msk [vmem:[#allocation3 + $0x140] sm:$0xff] %vm1758_vm2, %v8222_v26 }
 0x127   : > { %4355 = vrot.lane.b32.xlu1 %v5547_v35, %s5167_s29  ;;  %v5887_v41 = vpop.permute.xlu2 %4195  ;;  %2180 = vst.msk [vmem:[#allocation3 + $0x150] sm:$0xff] %vm1758_vm2, %v8222_v26 }
 0x128   : > { %8230 = vst [vmem:[#allocation40_spill] sm:$0xff] %v5887_v41 }
 0x129   : > { %v5893_v59 = vpop.permute.xlu1 %4145  ;;  %2181 = vst.msk [vmem:[#allocation3 + $0x158] sm:$0xff] %vm1758_vm2, %v8222_v26  ;;  %4365 = vrot.lane.b32.xlu0 %v5587_v61, %s5167_s29 }
 0x12a   : > { %8231 = vst [vmem:[#allocation41_spill] sm:$0xff] %v5893_v59  ;;  %v572_v59 = vld [vmem:[#allocation2 + $0x31] sm:$0xff] }
 0x12b   : > { %2183 = vst.msk [vmem:[#allocation3 + $0x168] sm:$0xff] %vm1758_vm2, %v8222_v26  ;;  %v5903_v35 = vpop.permute.xlu0 %4155 }
 0x12c   : > { %2184 = vst.msk [vmem:[#allocation3 + $0x170] sm:$0xff] %vm1758_vm2, %v8222_v26 }
 0x12d   : > { %8232 = vst [vmem:[#allocation42_spill] sm:$0xff] %v5903_v35  ;;  %4375 = vrot.lane.b32.xlu2 %v5593_v62, %s5167_s29 }
 0x12e   : > { %2186 = vst.msk [vmem:[#allocation3 + $0x180] sm:$0xff] %vm1758_vm2, %v8222_v26 }
 0x12f   : > { %2187 = vst.msk [vmem:[#allocation3 + $0x188] sm:$0xff] %vm1758_vm2, %v8222_v26  ;;  %4370 = vrot.lane.b32.xlu1 %v5579_v53, %s5167_s29  ;;  %v5917_v42 = vpop.permute.xlu2 %4210 }
 0x130   : > { %2189 = vst.msk [vmem:[#allocation3 + $0x198] sm:$0xff] %vm1758_vm2, %v8222_v26 }
 0x131   : > { %2190 = vst.msk [vmem:[#allocation3 + $0x1a0] sm:$0xff] %vm1758_vm2, %v8222_v26  ;;  %v5919_v61 = vpop.permute.xlu1 %4160  ;;  %4380 = vrot.lane.b32.xlu0 %v5619_v27, %s5167_s29  ;;  %v570_v27 = vld [vmem:[#allocation2 + $0x198] sm:$0xff] }
 0x133   : > { %v5923_v35 = vpop.permute.xlu0 %4170 }
 0x134   : > { %8233 = vst [vmem:[#allocation43_spill] sm:$0xff] %v5923_v35  ;;  %v571_v35 = vld [vmem:[#allocation2 + $0x1a0] sm:$0xff] }
 0x135   : > { %4390 = vrot.lane.b32.xlu2 %v5625_v0, %s5167_s29 }
 0x137   : > { %4385 = vrot.lane.b32.xlu1 %v5611_v16, %s5167_s29  ;;  %v5929_v62 = vpop.permute.xlu2 %4225 }
 0x138   : > { %8234 = vst [vmem:[#allocation44_spill] sm:$0xff] %v5929_v62  ;;  %v4419_v62 = vpack.i.bf16 %v571_v35, %v570_v27  ;;  %v578_v35 = vld [vmem:[#allocation2 + $0x79] sm:$0xff]  ;;  %v579_v27 = vld [vmem:[#allocation2 + $0x81] sm:$0xff] }
 0x139   : > { %v5931_v26 = vpop.permute.xlu1 %4175  ;;  %4395 = vrot.lane.b32.xlu0 %v5653_v34, %s5167_s29  ;;  %v573_v34 = vld [vmem:[#allocation2 + $0x39] sm:$0xff] }
 0x13b   : > { %v5935_v53 = vpop.permute.xlu0 %4185 }
 0x13c   : > { %8235 = vst [vmem:[#allocation45_spill] sm:$0xff] %v5935_v53  ;;  %v576_v53 = vld [vmem:[#allocation2 + $0x61] sm:$0xff] }
 0x13d   : > { %4405 = vrot.lane.b32.xlu2 %v5659_v12, %s5167_s29  ;;  %v4424_v12 = vpack.i.bf16 %v573_v34, %v572_v59  ;;  %v582_v34 = vld [vmem:[#allocation2 + $0xa9] sm:$0xff] }
 0x13f   : > { %4400 = vrot.lane.b32.xlu1 %v5645_v50, %s5167_s29  ;;  %v5941_v0 = vpop.permute.xlu2 %4240 }
 0x141   : > { %v5943_v16 = vpop.permute.xlu1 %4190  ;;  %4410 = vrot.lane.b32.xlu0 %v5679_v31, %s5167_s29  ;;  %v4434_v31 = vpack.i.bf16 %v577_v22, %v576_v53  ;;  %v584_v53 = vld [vmem:[#allocation2 + $0xc1] sm:$0xff] }
 0x142   : > { %8236 = vst [vmem:[#allocation46_spill] sm:$0xff] %v5943_v16  ;;  %v575_v16 = vld [vmem:[#allocation2 + $0x51] sm:$0xff] }
 0x143   : > { %v5947_v41 = vpop.permute.xlu0 %4200  ;;  %v4429_v59 = vpack.i.bf16 %v575_v16, %v574_v54  ;;  %v4444_v54 = vpack.i.bf16 %v581_v47, %v580_v44 }
 0x144   : > { %8237 = vst [vmem:[#allocation47_spill] sm:$0xff] %v5947_v41 }
 0x145   : > { %4420 = vrot.lane.b32.xlu2 %v4419_v62, %s5167_s29  ;;  %v4439_v62 = vpack.i.bf16 %v579_v27, %v578_v35  ;;  %v589_v35 = vld [vmem:[#allocation2 + $0xf9] sm:$0xff] }
 0x147   : > { %4415 = vrot.lane.b32.xlu1 %v5673_v7, %s5167_s29  ;;  %v5952_v50 = vpop.permute.xlu2 %4255  ;;  %v583_v7 = vld [vmem:[#allocation2 + $0xb1] sm:$0xff] }
 0x148   : > { %v4449_v22 = vpack.i.bf16 %v583_v7, %v582_v34  ;;  %v590_v34 = vld [vmem:[#allocation2 + $0x109] sm:$0xff]  ;;  %v591_v7 = vld [vmem:[#allocation2 + $0x111] sm:$0xff] }
 0x149   : > { %v5954_v8 = vpop.permute.xlu1 %4205  ;;  %4425 = vrot.lane.b32.xlu0 %v4424_v12, %s5168_s30  ;;  %v585_v12 = vld [vmem:[#allocation2 + $0xc9] sm:$0xff]  ;;  %v4469_v47 = vpack.i.bf16 %v591_v7, %v590_v34  ;;  %v599_v7 = vld [vmem:[#allocation2 + $0x171] sm:$0xff] }
 0x14a   : > { %v4454_v16 = vpack.i.bf16 %v585_v12, %v584_v53  ;;  %v595_v53 = vld [vmem:[#allocation2 + $0x141] sm:$0xff]  ;;  %v598_v34 = vld [vmem:[#allocation2 + $0x169] sm:$0xff] }
 0x14b   : > { %v5957_v41 = vpop.permute.xlu0 %4215 }
 0x14d   : > { %4435 = vrot.lane.b32.xlu2 %v4434_v31, %s5168_s30  ;;  %v588_v31 = vld [vmem:[#allocation2 + $0xf1] sm:$0xff] }
 0x14f   : > { %4430 = vrot.lane.b32.xlu1 %v4429_v59, %s5168_s30  ;;  %v5961_v48 = vpop.permute.xlu2 %4270  ;;  %v586_v59 = vld [vmem:[#allocation2 + $0xd9] sm:$0xff] }
 0x150   : > { %8238 = vst [vmem:[#allocation48_spill] sm:$0xff] %v5961_v48  ;;  %v587_v48 = vld [vmem:[#allocation2 + $0xe1] sm:$0xff] }
 0x151   : > { %v5963_v37 = vpop.permute.xlu1 %4220  ;;  %4440 = vrot.lane.b32.xlu0 %v4439_v62, %s5168_s30  ;;  %v4464_v62 = vpack.i.bf16 %v589_v35, %v588_v31  ;;  %v4459_v44 = vpack.i.bf16 %v587_v48, %v586_v59  ;;  %v596_v31 = vld [vmem:[#allocation2 + $0x151] sm:$0xff]  ;;  %v597_v35 = vld [vmem:[#allocation2 + $0x159] sm:$0xff] }
 0x152   : > { %8239 = vst [vmem:[#allocation49_spill] sm:$0xff] %v5963_v37  ;;  %v4484_v59 = vpack.i.bf16 %v597_v35, %v596_v31  ;;  %v604_v35 = vld [vmem:[#allocation2 + $0x32] sm:$0xff] }
 0x153   : > { %v5966_v52 = vpop.permute.xlu0 %4230 }
 0x154   : > { %8240 = vst [vmem:[#allocation50_spill] sm:$0xff] %v5966_v52 }
 0x155   : > { %4450 = vrot.lane.b32.xlu2 %v4449_v22, %s5168_s30  ;;  %v594_v22 = vld [vmem:[#allocation2 + $0x139] sm:$0xff] }
 0x157   : > { %4445 = vrot.lane.b32.xlu1 %v4444_v54, %s5168_s30  ;;  %v5970_v27 = vpop.permute.xlu2 %4285  ;;  %v592_v54 = vld [vmem:[#allocation2 + $0x121] sm:$0xff] }
 0x158   : > { %8241 = vst [vmem:[#allocation51_spill] sm:$0xff] %v5970_v27  ;;  %v4474_v48 = vpack.i.bf16 %v593_v25, %v592_v54  ;;  %v606_v54 = vld [vmem:[#allocation2 + $0x4a] sm:$0xff] }
 0x159   : > { %v5972_v37 = vpop.permute.xlu1 %4235  ;;  %4455 = vrot.lane.b32.xlu0 %v4454_v16, %s5168_s30  ;;  %v4479_v16 = vpack.i.bf16 %v595_v53, %v594_v22  ;;  %v603_v22 = vld [vmem:[#allocation2 + $0x1a1] sm:$0xff] }
 0x15a   : > { %8242 = vst [vmem:[#allocation52_spill] sm:$0xff] %v5972_v37 }
 0x15b   : > { %v5975_v52 = vpop.permute.xlu0 %4245 }
 0x15c   : > { %8243 = vst [vmem:[#allocation53_spill] sm:$0xff] %v5975_v52 }
 0x15d   : > { %4465 = vrot.lane.b32.xlu2 %v4464_v62, %s5168_s30 }
 0x15f   : > { %4460 = vrot.lane.b32.xlu1 %v4459_v44, %s5168_s30  ;;  %v5979_v12 = vpop.permute.xlu2 %4300 }
 0x160   : > { %8244 = vst [vmem:[#allocation54_spill] sm:$0xff] %v5979_v12  ;;  %v617_v12 = vld [vmem:[#allocation2 + $0xca] sm:$0xff] }
 0x161   : > { %v5981_v37 = vpop.permute.xlu1 %4250  ;;  %4470 = vrot.lane.b32.xlu0 %v4469_v47, %s5168_s30  ;;  %v602_v47 = vld [vmem:[#allocation2 + $0x199] sm:$0xff] }
 0x162   : > { %8245 = vst [vmem:[#allocation55_spill] sm:$0xff] %v5981_v37  ;;  %v4489_v37 = vpack.i.bf16 %v599_v7, %v598_v34  ;;  %v4499_v25 = vpack.i.bf16 %v603_v22, %v602_v47  ;;  %v612_v47 = vld [vmem:[#allocation2 + $0x92] sm:$0xff] }
 0x163   : > { %v5984_v52 = vpop.permute.xlu0 %4260 }
 0x164   : > { %8246 = vst [vmem:[#allocation56_spill] sm:$0xff] %v5984_v52 }
 0x165   : > { %4480 = vrot.lane.b32.xlu2 %v4479_v16, %s5168_s30  ;;  %v607_v16 = vld [vmem:[#allocation2 + $0x52] sm:$0xff] }
 0x167   : > { %4475 = vrot.lane.b32.xlu1 %v4474_v48, %s5168_s30  ;;  %v5988_v62 = vpop.permute.xlu2 %4315  ;;  %v605_v48 = vld [vmem:[#allocation2 + $0x3a] sm:$0xff] }
 0x168   : > { %8247 = vst [vmem:[#allocation57_spill] sm:$0xff] %v5988_v62  ;;  %v4504_v7 = vpack.i.bf16 %v605_v48, %v604_v35 }
 0x169   : > { %v5990_v44 = vpop.permute.xlu1 %4265  ;;  %4485 = vrot.lane.b32.xlu0 %v4484_v59, %s5168_s30  ;;  %v4509_v59 = vpack.i.bf16 %v607_v16, %v606_v54  ;;  %v614_v54 = vld [vmem:[#allocation2 + $0xaa] sm:$0xff]  ;;  %v615_v16 = vld [vmem:[#allocation2 + $0xb2] sm:$0xff] }
 0x16a   : > { %8248 = vst [vmem:[#allocation58_spill] sm:$0xff] %v5990_v44  ;;  %v608_v44 = vld [vmem:[#allocation2 + $0x62] sm:$0xff] }
 0x16b   : > { %v5993_v53 = vpop.permute.xlu0 %4275 }
 0x16c   : > { %8249 = vst [vmem:[#allocation59_spill] sm:$0xff] %v5993_v53  ;;  %v609_v53 = vld [vmem:[#allocation2 + $0x6a] sm:$0xff] }
 0x16d   : > { %4495 = vrot.lane.b32.xlu2 %v5743_v5, %s5168_s30  ;;  %v4514_v5 = vpack.i.bf16 %v609_v53, %v608_v44  ;;  %v4529_v44 = vpack.i.bf16 %v615_v16, %v614_v54  ;;  %v618_v53 = vld [vmem:[#allocation2 + $0xda] sm:$0xff]  ;;  %v625_v54 = vld [vmem:[#allocation2 + $0x12a] sm:$0xff] }
 0x16f   : > { %4490 = vrot.lane.b32.xlu1 %v4489_v37, %s5168_s30  ;;  %v5998_v31 = vpop.permute.xlu2 %4330  ;;  %v613_v37 = vld [vmem:[#allocation2 + $0x9a] sm:$0xff] }
 0x170   : > { %8250 = vst [vmem:[#allocation60_spill] sm:$0xff] %v5998_v31  ;;  %v610_v31 = vld [vmem:[#allocation2 + $0x7a] sm:$0xff] }
 0x171   : > { %v6000_v62 = vpop.permute.xlu1 %4280  ;;  %4500 = vrot.lane.b32.xlu0 %v4499_v25, %s5168_s30  ;;  %v4524_v25 = vpack.i.bf16 %v613_v37, %v612_v47  ;;  %v620_v47 = vld [vmem:[#allocation2 + $0xf2] sm:$0xff]  ;;  %v621_v37 = vld [vmem:[#allocation2 + $0xfa] sm:$0xff] }
 0x172   : > { %8251 = vst [vmem:[#allocation61_spill] sm:$0xff] %v6000_v62  ;;  %v611_v62 = vld [vmem:[#allocation2 + $0x82] sm:$0xff] }
 0x173   : > { %v6003_v34 = vpop.permute.xlu0 %4290  ;;  %v4519_v48 = vpack.i.bf16 %v611_v62, %v610_v31  ;;  %v4544_v31 = vpack.i.bf16 %v621_v37, %v620_v47  ;;  %v631_v47 = vld [vmem:[#allocation2 + $0x172] sm:$0xff] }
 0x175   : > { %4510 = vrot.lane.b32.xlu2 %v4509_v59, %s5169_s6  ;;  %v619_v59 = vld [vmem:[#allocation2 + $0xe2] sm:$0xff] }
 0x177   : > { %4505 = vrot.lane.b32.xlu1 %v4504_v7, %s5169_s6  ;;  %v6007_v22 = vpop.permute.xlu2 %4345 }
 0x178   : > { %8252 = vst [vmem:[#allocation62_spill] sm:$0xff] %v6007_v22  ;;  %v616_v22 = vld [vmem:[#allocation2 + $0xc2] sm:$0xff] }
 0x179   : > { %v6009_v52 = vpop.permute.xlu1 %4295  ;;  %4515 = vrot.lane.b32.xlu0 %v4514_v5, %s5169_s6  ;;  %v4539_v5 = vpack.i.bf16 %v619_v59, %v618_v53  ;;  %v4534_v62 = vpack.i.bf16 %v617_v12, %v616_v22  ;;  %v626_v53 = vld [vmem:[#allocation2 + $0x13a] sm:$0xff]  ;;  %v627_v59 = vld [vmem:[#allocation2 + $0x142] sm:$0xff] }
 0x17a   : > { %8253 = vst [vmem:[#allocation63_spill] sm:$0xff] %v6009_v52  ;;  %v4559_v22 = vpack.i.bf16 %v627_v59, %v626_v53  ;;  %v3967_v53 = vunpack.i.l.bf16 %v5569_v49  ;;  %v3973_v59 = vunpack.i.h.bf16 %v5601_v4 }
 0x17b   : > { %v6012_v35 = vpop.permute.xlu0 %4305 }
 0x17c   : > { %8254 = vst [vmem:[#allocation64_spill] sm:$0xff] %v6012_v35 }
 0x17d   : > { %4525 = vrot.lane.b32.xlu2 %v4524_v25, %s5169_s6  ;;  %v624_v25 = vld [vmem:[#allocation2 + $0x122] sm:$0xff] }
 0x17f   : > { %4520 = vrot.lane.b32.xlu1 %v4519_v48, %s5169_s6  ;;  %v6016_v7 = vpop.permute.xlu2 %4360  ;;  %v622_v48 = vld [vmem:[#allocation2 + $0x10a] sm:$0xff] }
 0x180   : > { %8255 = vst [vmem:[#allocation65_spill] sm:$0xff] %v6016_v7  ;;  %v623_v7 = vld [vmem:[#allocation2 + $0x112] sm:$0xff] }
 0x181   : > { %v6018_v52 = vpop.permute.xlu1 %4310  ;;  %4530 = vrot.lane.b32.xlu0 %v4529_v44, %s5169_s6  ;;  %v4554_v44 = vpack.i.bf16 %v625_v54, %v624_v25  ;;  %v4549_v12 = vpack.i.bf16 %v623_v7, %v622_v48  ;;  %v3948_v25 = vunpack.i.h.bf16 %v5641_v13  ;;  %v3947_v7 = vunpack.i.l.bf16 %v5641_v13 }
 0x182   : > { %8256 = vst [vmem:[#allocation66_spill] sm:$0xff] %v6018_v52 }
 0x183   : > { %v6021_v35 = vpop.permute.xlu0 %4320 }
 0x185   : > { %4540 = vrot.lane.b32.xlu2 %v4539_v5, %s5169_s6  ;;  %v630_v5 = vld [vmem:[#allocation2 + $0x16a] sm:$0xff] }
 0x187   : > { %4535 = vrot.lane.b32.xlu1 %v4534_v62, %s5169_s6  ;;  %v6025_v16 = vpop.permute.xlu2 %4375  ;;  %v628_v62 = vld [vmem:[#allocation2 + $0x152] sm:$0xff] }
 0x188   : > { %8257 = vst [vmem:[#allocation67_spill] sm:$0xff] %v6025_v16  ;;  %v629_v16 = vld [vmem:[#allocation2 + $0x15a] sm:$0xff] }
 0x189   : > { %v6027_v52 = vpop.permute.xlu1 %4325  ;;  %4545 = vrot.lane.b32.xlu0 %v4544_v31, %s5169_s6  ;;  %v4569_v31 = vpack.i.bf16 %v631_v47, %v630_v5  ;;  %v4564_v48 = vpack.i.bf16 %v629_v16, %v628_v62  ;;  %v6068_v47 = vsel %vm226_vm0, %v5551_v40, %v3973_v59  ;;  %v3987_v62 = vunpack.i.l.bf16 %v5633_v63 }
 0x18a   : > { %8258 = vst [vmem:[#allocation68_spill] sm:$0xff] %v6027_v52  ;;  %v3958_v40 = vunpack.i.h.bf16 %v5669_v1 }
 0x18b   : > { %v6030_v27 = vpop.permute.xlu0 %4335 }
 0x18d   : > { %4555 = vrot.lane.b32.xlu2 %v4554_v44, %s5169_s6  ;;  %v3968_v44 = vunpack.i.h.bf16 %v5569_v49  ;;  %v6060_v49 = vsel %vm226_vm0, %v5532_v29, %v3967_v53  ;;  %v4002_v29 = vunpack.i.l.bf16 %v5663_v45 }
 0x18f   : > { %4550 = vrot.lane.b32.xlu1 %v4549_v12, %s5169_s6  ;;  %v6034_v37 = vpop.permute.xlu2 %4390  ;;  %v348_v12 = vld [vmem:[#allocation2 + $0x8] sm:$0xff] }
 0x190   : > { %8259 = vst [vmem:[#allocation69_spill] sm:$0xff] %v6034_v37  ;;  %v347_v37 = vld [vmem:[#allocation2] sm:$0xff]  ;;  %v6050_v5 = vsel %vm226_vm0, %v348_v12, %v3948_v25  ;;  %v3962_v12 = vunpack.i.l.bf16 %v5687_v24 }
 0x191   : > { %v6036_v52 = vpop.permute.xlu1 %4340  ;;  %4560 = vrot.lane.b32.xlu0 %v4559_v22, %s5169_s6  ;;  %v3988_v22 = vunpack.i.h.bf16 %v5633_v63  ;;  %v6053_v13 = vsel %vm226_vm0, %v347_v37, %v3947_v7  ;;  %v634_v37 = vld [vmem:[#allocation2 + $0x19a] sm:$0xff]  ;;  %v4003_v7 = vunpack.i.h.bf16 %v5663_v45  ;;  %v3957_v63 = vunpack.i.l.bf16 %v5669_v1 }
 0x192   : > { %8260 = vst [vmem:[#allocation70_spill] sm:$0xff] %v6036_v52  ;;  %v3972_v52 = vunpack.i.l.bf16 %v5601_v4  ;;  %v6064_v4 = vsel %vm226_vm0, %v5534_v30, %v3968_v44  ;;  %v4018_v45 = vunpack.i.h.bf16 %v5685_v17  ;;  %v4017_v44 = vunpack.i.l.bf16 %v5685_v17 }
 0x193   : > { %v6041_v54 = vpop.permute.xlu0 %4350  ;;  %v6083_v30 = vsel %vm226_vm0, %v5583_v56, %v3988_v22  ;;  %v3963_v56 = vunpack.i.h.bf16 %v5687_v24  ;;  %v3978_v1 = vunpack.i.h.bf16 %v5691_v10  ;;  %v8266_v22 = vld [vmem:[#allocation19_spill] sm:$0xff] }
 0x194   : > { %8261 = vst [vmem:[#allocation71_spill] sm:$0xff] %v6041_v54  ;;  %v6073_v25 = vsel %vm226_vm0, %v5549_v39, %v3972_v52  ;;  %v3952_v39 = vunpack.i.l.bf16 %v5675_v51  ;;  %v3953_v52 = vunpack.i.h.bf16 %v5675_v51  ;;  %v6102_v51 = vsel %vm226_vm0, %v8266_v22, %v4003_v7  ;;  %v8270_v22 = vld [vmem:[#allocation7_spill] sm:$0xff] }
 0x195   : > { %4570 = vrot.lane.b32.xlu2 %v4569_v31, %s5169_s6  ;;  %v635_v31 = vld [vmem:[#allocation2 + $0x1a2] sm:$0xff]  ;;  %8264 = vst [vmem:[#allocation74_spill] sm:$0xff] %v6083_v30  ;;  %v3983_v54 = vunpack.i.h.bf16 %v5699_v46  ;;  %v4033_v7 = vunpack.i.h.bf16 %v5697_v20 }
 0x196   : > { %v4579_v59 = vpack.i.bf16 %v635_v31, %v634_v37  ;;  %v3977_v37 = vunpack.i.l.bf16 %v5691_v10  ;;  %v4032_v31 = vunpack.i.l.bf16 %v5697_v20  ;;  %v8275_v20 = vld [vmem:[#allocation9_spill] sm:$0xff] }
 0x197   : > { %4565 = vrot.lane.b32.xlu1 %v4564_v48, %s5169_s6  ;;  %v6056_v16 = vpop.permute.xlu2 %4405 }
 0x198   : > { %8262 = vst [vmem:[#allocation72_spill] sm:$0xff] %v6056_v16  ;;  %v8267_v16 = vld [vmem:[#allocation18_spill] sm:$0xff] }
 0x199   : > { %v6077_v48 = vpop.permute.xlu1 %4355  ;;  %4575 = vrot.lane.b32.xlu0 %v5845_v9, %s5169_s6  ;;  %v6095_v9 = vsel %vm226_vm0, %v5581_v55, %v3987_v62  ;;  %v6106_v17 = vsel %vm226_vm0, %v8267_v16, %v4002_v29  ;;  %v8268_v55 = vld [vmem:[#allocation6_spill] sm:$0xff]  ;;  %v8271_v16 = vld [vmem:[#allocation5_spill] sm:$0xff] }
 0x19a   : > { %8263 = vst [vmem:[#allocation73_spill] sm:$0xff] %v6077_v48  ;;  %v6112_v62 = vsel %vm226_vm0, %v8268_v55, %v3957_v63  ;;  %v8269_v48 = vld [vmem:[#allocation4_spill] sm:$0xff]  ;;  %v1663_v10 = vsel %vm226_vm0, %v8271_v16, %v3953_v52  ;;  %v8272_v29 = vld [vmem:[#allocation25_spill] sm:$0xff]  ;;  %v3982_v16 = vunpack.i.l.bf16 %v5699_v46  ;;  %v4048_v46 = vunpack.i.h.bf16 %v5709_v28 }
 0x19b   : > { %v6091_v53 = vpop.permute.xlu0 %4365  ;;  %8265 = vst [vmem:[#allocation75_spill] sm:$0xff] %v6095_v9  ;;  %v1662_v24 = vsel %vm226_vm0, %v8269_v48, %v3952_v39  ;;  %v6120_v9 = vsel %vm226_vm0, %v8270_v22, %v3958_v40  ;;  %v6126_v30 = vsel %vm226_vm0, %v8272_v29, %v4018_v45  ;;  %v8273_v63 = vld [vmem:[#allocation24_spill] sm:$0xff]  ;;  %v6137_v39 = vsel %vm226_vm0, %v8275_v20, %v3963_v56  ;;  %v8279_v52 = vld [vmem:[#allocation13_spill] sm:$0xff] }
 0x19c   : > { %v6130_v55 = vsel %vm226_vm0, %v8273_v63, %v4017_v44  ;;  %8276 = vst [vmem:[#allocation18_spill] sm:$0xff] %v6137_v39  ;;  %v8277_v40 = vld [vmem:[#allocation8_spill] sm:$0xff]  ;;  %v6145_v45 = vsel %vm226_vm0, %v8279_v52, %v3978_v1  ;;  %v3993_v56 = vunpack.i.h.bf16 %v5703_v19  ;;  %v3992_v63 = vunpack.i.l.bf16 %v5703_v19 }
 0x19d   : > { %v6141_v22 = vsel %vm226_vm0, %v8277_v40, %v3962_v12  ;;  %v8280_v44 = vld [vmem:[#allocation12_spill] sm:$0xff]  ;;  %v8282_v12 = vld [vmem:[#allocation11_spill] sm:$0xff]  ;;  %v6162_v1 = vsel %vm1692_vm3, %v1663_v10, %v4033_v7  ;;  %v3998_v52 = vunpack.i.h.bf16 %v5711_v38  ;;  %v4007_v19 = vunpack.i.l.bf16 %v5715_v23 }
 0x19e   : > { %8278 = vst [vmem:[#allocation6_spill] sm:$0xff] %v6141_v22  ;;  %v6150_v29 = vsel %vm226_vm0, %v8280_v44, %v3977_v37  ;;  %v1675_v40 = vsel %vm226_vm0, %v8282_v12, %v3983_v54  ;;  %v4047_v37 = vunpack.i.l.bf16 %v5709_v28  ;;  %v8286_v12 = vld [vmem:[#allocation29_spill] sm:$0xff]  ;;  %v8287_v10 = vld [vmem:[#allocation28_spill] sm:$0xff] }
 0x19f   : > { %4580 = vrot.lane.b32.xlu1 %v4579_v59, %s5169_s6  ;;  %v6133_v48 = vpop.permute.xlu2 %4420  ;;  %v6153_v59 = vsel %vm1692_vm3, %v1662_v24, %v4032_v31  ;;  %8283 = vst [vmem:[#allocation7_spill] sm:$0xff] %v6162_v1  ;;  %v3997_v31 = vunpack.i.l.bf16 %v5711_v38  ;;  %v4008_v24 = vunpack.i.h.bf16 %v5715_v23  ;;  %v4013_v7 = vunpack.i.h.bf16 %v8286_v12  ;;  %v8288_v28 = vld [vmem:[#allocation17_spill] sm:$0xff]  ;;  %v8290_v38 = vld [vmem:[#allocation16_spill] sm:$0xff] }
 0x1a0   : > { %8274 = vst [vmem:[#allocation19_spill] sm:$0xff] %v6133_v48  ;;  %v8285_v48 = vld [vmem:[#allocation10_spill] sm:$0xff]  ;;  %v4063_v1 = vunpack.i.h.bf16 %v8287_v10  ;;  %v6179_v39 = vsel %vm226_vm0, %v8288_v28, %v3993_v56  ;;  %v6183_v22 = vsel %vm226_vm0, %v8290_v38, %v3992_v63  ;;  %v4012_v23 = vunpack.i.l.bf16 %v8286_v12  ;;  %v8292_v56 = vld [vmem:[#allocation15_spill] sm:$0xff] }
 0x1a1   : > { %8281 = vst [vmem:[#allocation4_spill] sm:$0xff] %v6153_v59  ;;  %v6157_v20 = vpop.permute.xlu1 %4370  ;;  %v1674_v54 = vsel %vm226_vm0, %v8285_v48, %v3982_v16  ;;  %v4062_v59 = vunpack.i.l.bf16 %v8287_v10  ;;  %v6189_v48 = vsel %vm1692_vm3, %v6064_v4, %v4048_v46  ;;  %v6193_v16 = vsel %vm1692_vm3, %v6060_v49, %v4047_v37  ;;  %v8293_v63 = vld [vmem:[#allocation14_spill] sm:$0xff]  ;;  %v8294_v12 = vld [vmem:[#allocation23_spill] sm:$0xff]  ;;  %v8297_v49 = vld [vmem:[#allocation21_spill] sm:$0xff] }
 0x1a2   : > { %8289 = vst [vmem:[#allocation25_spill] sm:$0xff] %v6179_v39  ;;  %v4022_v10 = vunpack.i.l.bf16 %v5727_v33  ;;  %v1681_v28 = vsel %vm226_vm0, %v8292_v56, %v3998_v52  ;;  %v1680_v38 = vsel %vm226_vm0, %v8293_v63, %v3997_v31  ;;  %v6202_v39 = vsel %vm226_vm0, %v8294_v12, %v4008_v24  ;;  %v8298_v56 = vld [vmem:[#allocation20_spill] sm:$0xff]  ;;  %v8299_v63 = vld [vmem:[#allocation27_spill] sm:$0xff] }
 0x1a3   : > { %v6170_v44 = vpop.permute.xlu0 %4380  ;;  %8291 = vst [vmem:[#allocation24_spill] sm:$0xff] %v6183_v22  ;;  %v8295_v22 = vld [vmem:[#allocation22_spill] sm:$0xff]  ;;  %v6213_v37 = vsel %vm1692_vm3, %v1675_v40, %v4063_v1  ;;  %v6216_v52 = vsel %vm1692_vm3, %v1674_v54, %v4062_v59  ;;  %v4078_v31 = vunpack.i.h.bf16 %v5733_v57  ;;  %v1686_v24 = vsel %vm226_vm0, %v8298_v56, %v4012_v23 }
 0x1a4   : > { %8284 = vst [vmem:[#allocation5_spill] sm:$0xff] %v6170_v44  ;;  %v4023_v44 = vunpack.i.h.bf16 %v5727_v33  ;;  %v6206_v4 = vsel %vm226_vm0, %v8295_v22, %v4007_v19  ;;  %v1687_v33 = vsel %vm226_vm0, %v8297_v49, %v4013_v7  ;;  %v4053_v19 = vunpack.i.h.bf16 %v5753_v14  ;;  %v8302_v40 = vld [vmem:[#allocation26_spill] sm:$0xff] }
 0x1a5   : > { %v4052_v12 = vunpack.i.l.bf16 %v5753_v14  ;;  %v6231_v1 = vsel %vm226_vm0, %v8302_v40, %v4022_v10  ;;  %v4077_v59 = vunpack.i.l.bf16 %v5733_v57  ;;  %v4133_v54 = vunpack.i.h.bf16 %v5865_v58 }
 0x1a6   : > { %v6223_v22 = vsel %vm226_vm0, %v8299_v63, %v4023_v44  ;;  %8303 = vst [vmem:[#allocation12_spill] sm:$0xff] %v6231_v1  ;;  %v4132_v23 = vunpack.i.l.bf16 %v5865_v58  ;;  %v4028_v49 = vunpack.i.h.bf16 %v5735_v60  ;;  %v4027_v44 = vunpack.i.l.bf16 %v5735_v60 }
 0x1a7   : > { %v6208_v46 = vpop.permute.xlu2 %4435  ;;  %8300 = vst [vmem:[#allocation8_spill] sm:$0xff] %v6223_v22  ;;  %v4213_v56 = vunpack.i.h.bf16 %v5917_v42  ;;  %v4212_v14 = vunpack.i.l.bf16 %v5917_v42  ;;  %v4038_v10 = vunpack.i.h.bf16 %v5739_v43  ;;  %v4293_v57 = vunpack.i.h.bf16 %v6003_v34 }
 0x1a8   : > { %8296 = vst [vmem:[#allocation9_spill] sm:$0xff] %v6208_v46  ;;  %v6243_v46 = vsel %vm1692_vm3, %v1681_v28, %v4078_v31  ;;  %v4292_v40 = vunpack.i.l.bf16 %v6003_v34  ;;  %v1704_v58 = vsel %vm1692_vm3, %v6068_v47, %v4053_v19  ;;  %v1703_v60 = vsel %vm1692_vm3, %v6073_v25, %v4052_v12 }
 0x1a9   : > { %v6227_v7 = vpop.permute.xlu1 %4385  ;;  %8305 = vst [vmem:[#allocation10_spill] sm:$0xff] %v6243_v46  ;;  %v4372_v42 = vunpack.i.l.bf16 %v6157_v20  ;;  %v4093_v28 = vunpack.i.h.bf16 %v5747_v2  ;;  %v1736_v31 = vsel %vm1725_vm4, %v1703_v60, %v4132_v23  ;;  %v1737_v46 = vsel %vm1725_vm4, %v1704_v58, %v4133_v54 }
 0x1aa   : > { %8301 = vst [vmem:[#allocation13_spill] sm:$0xff] %v6227_v7  ;;  %v4373_v7 = vunpack.i.h.bf16 %v6157_v20  ;;  %v1769_v34 = vsel %vm1758_vm2, %v1736_v31, %v4212_v14  ;;  %v1770_v22 = vsel %vm1758_vm2, %v1737_v46, %v4213_v56  ;;  %v6268_v46 = vsel %vm1692_vm3, %v1680_v38, %v4077_v59 }
 0x1ab   : > { %v6240_v63 = vpop.permute.xlu0 %4395  ;;  %v1802_v25 = vsel %vm1791_vm5, %v1769_v34, %v4292_v40  ;;  %v1803_v19 = vsel %vm1791_vm5, %v1770_v22, %v4293_v57  ;;  %v4057_v56 = vunpack.i.l.bf16 %v5761_v18  ;;  %v6287_v38 = vsel %vm1692_vm3, %v6120_v9, %v4038_v10 }
 0x1ac   : > { %8304 = vst [vmem:[#allocation11_spill] sm:$0xff] %v6240_v63  ;;  %v4037_v63 = vunpack.i.l.bf16 %v5739_v43  ;;  %v4092_v43 = vunpack.i.l.bf16 %v5747_v2  ;;  %v1835_v1 = vsel %vm1824_vm6, %v1802_v25, %v4372_v42  ;;  %v1836_v23 = vsel %vm1824_vm6, %v1803_v19, %v4373_v7 }
 0x1ad   : > { %v6279_v2 = vsel %vm1692_vm3, %v6050_v5, %v4028_v49  ;;  %v6283_v7 = vsel %vm1692_vm3, %v6053_v13, %v4027_v44  ;;  %v4043_v57 = vunpack.i.h.bf16 %v5749_v6  ;;  %v4042_v40 = vunpack.i.l.bf16 %v5749_v6 }
 0x1ae   : > { %v6291_v59 = vsel %vm1692_vm3, %v6112_v62, %v4037_v63  ;;  %v6298_v5 = vsel %vm1692_vm3, %v1687_v33, %v4093_v28  ;;  %v4058_v13 = vunpack.i.h.bf16 %v5761_v18  ;;  %v6302_v49 = vsel %vm1692_vm3, %v1686_v24, %v4092_v43 }
 0x1af   : > { %v4451_v47 = vpop.permute.xlu2 %4450  ;;  %v4108_v9 = vunpack.i.h.bf16 %v5759_v15  ;;  %v4083_v44 = vunpack.i.h.bf16 %v5777_v21  ;;  %v4082_v62 = vunpack.i.l.bf16 %v5777_v21  ;;  %v1705_v63 = vsel %vm1692_vm3, %v6150_v29, %v4057_v56 }
 0x1b0   : > { %v4453_v20 = vunpack.i.h.bf16 %v4451_v47  ;;  %v4452_v12 = vunpack.i.l.bf16 %v4451_v47  ;;  %v4107_v10 = vunpack.i.l.bf16 %v5759_v15  ;;  %v4138_v58 = vunpack.i.h.bf16 %v5783_v36 }
 0x1b1   : > { %v6265_v54 = vpop.permute.xlu1 %4400  ;;  %v4137_v33 = vunpack.i.l.bf16 %v5783_v36  ;;  %v4098_v18 = vunpack.i.h.bf16 %v5789_v32  ;;  %v4097_v24 = vunpack.i.l.bf16 %v5789_v32  ;;  %v4128_v60 = vunpack.i.h.bf16 %v5843_v3 }
 0x1b2   : > { %v6272_v14 = vsel %vm1857_vm7, %v1835_v1, %v4452_v12  ;;  %v6275_v22 = vsel %vm1857_vm7, %v1836_v23, %v4453_v20  ;;  %v4127_v42 = vunpack.i.l.bf16 %v5843_v3  ;;  %v1706_v21 = vsel %vm1692_vm3, %v6145_v45, %v4058_v13 }
 0x1b3   : > { %v6293_v1 = vpop.permute.xlu0 %4410  ;;  %v4068_v29 = vunpack.i.h.bf16 %v5765_v11  ;;  %v4163_v31 = vunpack.i.h.bf16 %v5919_v61  ;;  %v4162_v34 = vunpack.i.l.bf16 %v5919_v61  ;;  %v1716_v36 = vsel %vm1692_vm3, %v6102_v51, %v4083_v44 }
 0x1b4   : > { %v1715_v32 = vsel %vm1692_vm3, %v6106_v17, %v4082_v62  ;;  %v4178_v47 = vunpack.i.h.bf16 %v5931_v26  ;;  %v4177_v3 = vunpack.i.l.bf16 %v5931_v26  ;;  %v1738_v45 = vsel %vm1725_vm4, %v1705_v63, %v4137_v33 }
 0x1b5   : > { %v1739_v19 = vsel %vm1725_vm4, %v1706_v21, %v4138_v58  ;;  %v4243_v20 = vunpack.i.h.bf16 %v5941_v0  ;;  %v4242_v61 = vunpack.i.l.bf16 %v5941_v0  ;;  %v1722_v51 = vsel %vm1692_vm3, %v6126_v30, %v4098_v18 }
 0x1b6   : > { %v1721_v17 = vsel %vm1692_vm3, %v6130_v55, %v4097_v24  ;;  %v1735_v12 = vsel %vm1725_vm4, %v6189_v48, %v4128_v60  ;;  %v1734_v26 = vsel %vm1725_vm4, %v6193_v16, %v4127_v42  ;;  %v1748_v23 = vsel %vm1725_vm4, %v1715_v32, %v4162_v34 }
 0x1b7   : > { %v6316_v28 = vpop.permute.xlu2 %4465  ;;  %v1749_v56 = vsel %vm1725_vm4, %v1716_v36, %v4163_v31  ;;  %v4323_v0 = vunpack.i.h.bf16 %v6021_v35  ;;  %v4322_v13 = vunpack.i.l.bf16 %v6021_v35  ;;  %v1754_v30 = vsel %vm1725_vm4, %v1721_v17, %v4177_v3  ;;  %v1943_v35 = vld [vmem:[%s8078_s1 + $0x10] sm:$0x3] }
 0x1b8   : > { %v1755_v55 = vsel %vm1725_vm4, %v1722_v51, %v4178_v47  ;;  %v4403_v44 = vunpack.i.h.bf16 %v6265_v54  ;;  %v4402_v48 = vunpack.i.l.bf16 %v6265_v54  ;;  %v1781_v16 = vsel %vm1758_vm2, %v1748_v23, %v4242_v61  ;;  %v8307_v23 = vld [vmem:[#allocation39_spill] sm:$0xff] }
 0x1b9   : > { %v6329_v25 = vpop.permute.xlu1 %4415  ;;  %v1782_v62 = vsel %vm1758_vm2, %v1749_v56, %v4243_v20  ;;  %v4258_v63 = vunpack.i.h.bf16 %v5952_v50  ;;  %v4257_v58 = vunpack.i.l.bf16 %v5952_v50  ;;  %v4208_v33 = vunpack.i.h.bf16 %v5954_v8 }
 0x1ba   : > { %v4207_v18 = vunpack.i.l.bf16 %v5954_v8  ;;  %v4218_v24 = vunpack.i.h.bf16 %v5957_v41  ;;  %v1957_v54 = vunpack.c.l.b16 %v1943_v35  ;;  %v1814_v42 = vsel %vm1791_vm5, %v1781_v16, %v4322_v13  ;;  %v8306_v8 = vld [vmem:[#allocation51_spill] sm:$0xff] }
 0x1bb   : > { %v6343_v43 = vpop.permute.xlu0 %4425  ;;  %v1815_v21 = vsel %vm1791_vm5, %v1782_v62, %v4323_v0  ;;  %v4217_v50 = vunpack.i.l.bf16 %v5957_v41  ;;  %v1847_v36 = vsel %vm1824_vm6, %v1814_v42, %v4402_v48  ;;  %v4288_v20 = vunpack.i.h.bf16 %v8306_v8 }
 0x1bc   : > { %v1848_v32 = vsel %vm1824_vm6, %v1815_v21, %v4403_v44  ;;  %v1960_v3 = vpack.c.b16 %v1957_v54, %v1957_v54  ;;  %v4287_v61 = vunpack.i.l.bf16 %v8306_v8  ;;  %v4143_v56 = vunpack.i.h.bf16 %v8307_v23 }
 0x1bd   : > { %v1787_v41 = vsel %vm1758_vm2, %v1754_v30, %v4257_v58  ;;  %v1788_v0 = vsel %vm1758_vm2, %v1755_v55, %v4258_v63  ;;  %v1767_v44 = vsel %vm1758_vm2, %v1734_v26, %v4207_v18  ;;  %v1768_v48 = vsel %vm1758_vm2, %v1735_v12, %v4208_v33 }
 0x1be   : > { %v4338_v16 = vunpack.i.h.bf16 %v6030_v27  ;;  %v4337_v62 = vunpack.i.l.bf16 %v6030_v27  ;;  %v1771_v35 = vsel %vm1758_vm2, %v1738_v45, %v4217_v50  ;;  %v4417_v54 = vunpack.i.l.bf16 %v6329_v25  ;;  %v3912_v27 = vld [vmem:[%s8078_s1 + $0x8] sm:$0xff]  ;;  %v8308_v45 = vld [vmem:[#allocation63_spill] sm:$0xff] }
 0x1bf   : > { %v4481_v60 = vpop.permute.xlu2 %4480  ;;  %v2014_v30 = vsel %vm2012_vm8, %v1960_v3, 0  ;;  %v4142_v55 = vunpack.i.l.bf16 %v8307_v23  ;;  %v1772_v63 = vsel %vm1758_vm2, %v1739_v19, %v4218_v24  ;;  %v1800_v58 = vsel %vm1791_vm5, %v1767_v44, %v4287_v61 }
 0x1c0   : > { %v4483_v31 = vunpack.i.h.bf16 %v4481_v60  ;;  %v4482_v34 = vunpack.i.l.bf16 %v4481_v60  ;;  %v4418_v60 = vunpack.i.h.bf16 %v6329_v25  ;;  %v1801_v26 = vsel %vm1791_vm5, %v1768_v48, %v4288_v20  ;;  %2021 = vmatpush.bf16.msra.mxu0 %v2014_v30  ;;  %3915 = vmatpush.bf16.msra.mxu2 %v2014_v30 }
 0x1c1   : > { %v6368_v47 = vpop.permute.xlu1 %4430  ;;  %v4298_v12 = vunpack.i.h.bf16 %v8308_v45  ;;  %v4297_v33 = vunpack.i.l.bf16 %v8308_v45  ;;  %v4368_v25 = vunpack.i.h.bf16 %v6091_v53  ;;  %v4367_v18 = vunpack.i.l.bf16 %v6091_v53  ;;  %3916 = vmatpush.bf16.msra.mxu3 %v2014_v30 }
 0x1c2   : > { %v6373_v51 = vsel %vm1857_vm7, %v1847_v36, %v4482_v34  ;;  %v6376_v17 = vsel %vm1857_vm7, %v1848_v32, %v4483_v31  ;;  %v1820_v19 = vsel %vm1791_vm5, %v1787_v41, %v4337_v62  ;;  %v1821_v24 = vsel %vm1791_vm5, %v1788_v0, %v4338_v16  ;;  %v8309_v34 = vld [vmem:[#allocation67_spill] sm:$0xff]  ;;  %v3911_v0 = vld [vmem:[%s8078_s1] sm:$0xff] }
 0x1c3   : > { %v6381_v13 = vpop.permute.xlu0 %4440  ;;  %v4378_v50 = vunpack.i.h.bf16 %v8309_v34  ;;  %v4377_v36 = vunpack.i.l.bf16 %v8309_v34  ;;  %v1853_v32 = vsel %vm1824_vm6, %v1820_v19, %v4417_v54  ;;  %v1854_v3 = vsel %vm1824_vm6, %v1821_v24, %v4418_v60  ;;  %v8310_v19 = vld [vmem:[#allocation49_spill] sm:$0xff] }
 0x1c4   : > { %2022 = vmatpush.bf16.msra.mxu0 %v3912_v27  ;;  %3917 = vmatpush.bf16.msra.mxu2 %v3912_v27  ;;  %v1804_v44 = vsel %vm1791_vm5, %v1771_v35, %v4297_v33  ;;  %v1805_v48 = vsel %vm1791_vm5, %v1772_v63, %v4298_v12  ;;  %v1833_v16 = vsel %vm1824_vm6, %v1800_v58, %v4367_v18  ;;  %v4223_v24 = vunpack.i.h.bf16 %v8310_v19  ;;  %v8311_v12 = vld [vmem:[#allocation54_spill] sm:$0xff]  ;;  %v8313_v34 = vld [vmem:[#allocation5_spill] sm:$0xff] }
 0x1c5   : > { %v1834_v62 = vsel %vm1824_vm6, %v1801_v26, %v4368_v25  ;;  %3918 = vmatpush.bf16.msra.mxu3 %v3912_v27  ;;  %v4222_v35 = vunpack.i.l.bf16 %v8310_v19  ;;  %v1837_v63 = vsel %vm1824_vm6, %v1804_v44, %v4377_v36  ;;  %v1838_v58 = vsel %vm1824_vm6, %v1805_v48, %v4378_v50 }
 0x1c6   : > { %v4303_v26 = vunpack.i.h.bf16 %v8311_v12  ;;  %v4302_v27 = vunpack.i.l.bf16 %v8311_v12  ;;  %v4067_v18 = vunpack.i.l.bf16 %v5765_v11  ;;  %v4383_v36 = vunpack.i.h.bf16 %v8313_v34 }
 0x1c7   : > { %v4496_v42 = vpop.permute.xlu2 %4495  ;;  %v4382_v50 = vunpack.i.l.bf16 %v8313_v34  ;;  %v1740_v44 = vsel %vm1725_vm4, %v6216_v52, %v4142_v55  ;;  %v6474_v12 = vsel %vm1725_vm4, %v6279_v2, %v4108_v9  ;;  %v6480_v6 = vsel %vm1725_vm4, %v6283_v7, %v4107_v10  ;;  %v8320_v9 = vld [vmem:[#allocation24_spill] sm:$0xff]  ;;  %v8321_v34 = vld [vmem:[#allocation25_spill] sm:$0xff] }
 0x1c8   : > { %v4498_v21 = vunpack.i.h.bf16 %v4496_v42  ;;  %v4497_v31 = vunpack.i.l.bf16 %v4496_v42  ;;  %2023 = vmatpush.bf16.msra.mxu0 %v3911_v0  ;;  %3919 = vmatpush.bf16.msra.mxu2 %v3911_v0  ;;  %vm3606_vm0 = vcmask 916480  }
 0x1c9   : > { %v4446_v8 = vpop.permute.xlu1 %4445  ;;  %3920 = vmatpush.bf16.msra.mxu3 %v3911_v0 }
 0x1ca   : > { %v4448_v20 = vunpack.i.h.bf16 %v4446_v8  ;;  %v4447_v61 = vunpack.i.l.bf16 %v4446_v8  ;;  %v6408_v53 = vsel %vm1857_vm7, %v1853_v32, %v4497_v31  ;;  %v6411_v41 = vsel %vm1857_vm7, %v1854_v3, %v4498_v21  ;;  %v8312_v21 = vld [vmem:[#allocation30_spill] sm:$0xff]  ;;  %v8314_v3 = vld [vmem:[#allocation31_spill] sm:$0xff] }
 0x1cb   : > { %v4456_v60 = vpop.permute.xlu0 %4455  ;;  %v4123_v31 = vunpack.i.h.bf16 %v8312_v21  ;;  %v4073_v8 = vunpack.i.h.bf16 %v8314_v3  ;;  %v4072_v48 = vunpack.i.l.bf16 %v8314_v3 }
 0x1cc   : > { %v6421_v54 = vsel %vm1857_vm7, %v1833_v16, %v4447_v61  ;;  %v6424_v30 = vsel %vm1857_vm7, %v1834_v62, %v4448_v20  ;;  %v4458_v45 = vunpack.i.h.bf16 %v4456_v60  ;;  %v4457_v42 = vunpack.i.l.bf16 %v4456_v60  ;;  %v8315_v16 = vld [vmem:[#allocation32_spill] sm:$0xff] }
 0x1cd   : > { %v4122_v20 = vunpack.i.l.bf16 %v8312_v21  ;;  %v1741_v61 = vsel %vm1725_vm4, %v6213_v37, %v4143_v56  ;;  %v4087_v62 = vunpack.i.l.bf16 %v8315_v16  ;;  %v1773_v60 = vsel %vm1758_vm2, %v1740_v44, %v4222_v35  ;;  %v8316_v37 = vld [vmem:[#allocation6_spill] sm:$0xff]  ;;  %v8319_v21 = vld [vmem:[#allocation75_spill] sm:$0xff] }
 0x1ce   : > { %v6433_v33 = vsel %vm1857_vm7, %v1837_v63, %v4457_v42  ;;  %v6436_v25 = vsel %vm1857_vm7, %v1838_v58, %v4458_v45  ;;  %v1774_v0 = vsel %vm1758_vm2, %v1741_v61, %v4223_v24  ;;  %v1806_v42 = vsel %vm1791_vm5, %v1773_v60, %v4302_v27  ;;  %v8317_v56 = vld [vmem:[#allocation18_spill] sm:$0xff]  ;;  %v8324_v60 = vld [vmem:[#allocation35_spill] sm:$0xff] }
 0x1cf   : > { %v6442_v32 = vpop.permute.xlu2 %4510  ;;  %v1807_v19 = vsel %vm1791_vm5, %v1774_v0, %v4303_v26  ;;  %v1699_v52 = vsel %vm1692_vm3, %v8316_v37, %v4042_v40  ;;  %v1700_v55 = vsel %vm1692_vm3, %v8317_v56, %v4043_v57  ;;  %v1839_v35 = vsel %vm1824_vm6, %v1806_v42, %v4382_v50  ;;  %v8318_v26 = vld [vmem:[#allocation74_spill] sm:$0xff]  ;;  %v8325_v42 = vld [vmem:[#allocation37_spill] sm:$0xff] }
 0x1d0   : > { %v1840_v24 = vsel %vm1824_vm6, %v1807_v19, %v4383_v36  ;;  %v6488_v27 = vsel %vm1692_vm3, %v8318_v26, %v4068_v29  ;;  %v6492_v2 = vsel %vm1692_vm3, %v8319_v21, %v4067_v18  ;;  %v6495_v15 = vsel %vm1725_vm4, %v1700_v55, %v4123_v31  ;;  %v8322_v50 = vld [vmem:[#allocation34_spill] sm:$0xff]  ;;  %v8323_v31 = vld [vmem:[#allocation33_spill] sm:$0xff]  ;;  %v8326_v19 = vld [vmem:[#allocation36_spill] sm:$0xff] }
 0x1d1   : > { %v4461_v45 = vpop.permute.xlu1 %4460  ;;  %v6498_v7 = vsel %vm1725_vm4, %v1699_v52, %v4122_v20  ;;  %v1711_v10 = vsel %vm1692_vm3, %v8320_v9, %v4072_v48  ;;  %v1712_v11 = vsel %vm1692_vm3, %v8321_v34, %v4073_v8  ;;  %v4088_v36 = vunpack.i.h.bf16 %v8315_v16  ;;  %v8327_v37 = vld [vmem:[#allocation38_spill] sm:$0xff]  ;;  %v8329_v34 = vld [vmem:[#allocation12_spill] sm:$0xff] }
 0x1d2   : > { %v4463_v23 = vunpack.i.h.bf16 %v4461_v45  ;;  %v4462_v63 = vunpack.i.l.bf16 %v4461_v45  ;;  %v1717_v29 = vsel %vm1692_vm3, %v6206_v4, %v4087_v62  ;;  %v4103_v18 = vunpack.i.h.bf16 %v8322_v50 }
 0x1d3   : > { %v6468_v58 = vpop.permute.xlu0 %4470  ;;  %v4102_v3 = vunpack.i.l.bf16 %v8322_v50  ;;  %v4153_v61 = vunpack.i.h.bf16 %v8323_v31  ;;  %v4152_v20 = vunpack.i.l.bf16 %v8323_v31  ;;  %v4113_v0 = vunpack.i.h.bf16 %v8324_v60  ;;  %v8330_v50 = vld [vmem:[#allocation8_spill] sm:$0xff] }
 0x1d4   : > { %v1872_v57 = vsel %vm1857_vm7, %v1839_v35, %v4462_v63  ;;  %v1873_v40 = vsel %vm1857_vm7, %v1840_v24, %v4463_v23  ;;  %v4112_v48 = vunpack.i.l.bf16 %v8324_v60  ;;  %v4118_v16 = vunpack.i.h.bf16 %v8325_v42 }
 0x1d5   : > { %v4168_v23 = vunpack.i.h.bf16 %v8326_v19  ;;  %v4167_v4 = vunpack.i.l.bf16 %v8326_v19  ;;  %v4117_v63 = vunpack.i.l.bf16 %v8325_v42  ;;  %v4182_v52 = vunpack.i.l.bf16 %v8327_v37  ;;  %v8335_v42 = vld [vmem:[#allocation56_spill] sm:$0xff] }
 0x1d6   : > { %v1718_v35 = vsel %vm1692_vm3, %v6202_v39, %v4088_v36  ;;  %v6531_v24 = vsel %vm1725_vm4, %v1711_v10, %v4152_v20  ;;  %v4183_v26 = vunpack.i.h.bf16 %v8327_v37  ;;  %v6543_v31 = vsel %vm1725_vm4, %v1712_v11, %v4153_v61  ;;  %v8331_v39 = vld [vmem:[#allocation4_spill] sm:$0xff]  ;;  %v8332_v36 = vld [vmem:[#allocation7_spill] sm:$0xff]  ;;  %v8336_v37 = vld [vmem:[#allocation70_spill] sm:$0xff] }
 0x1d7   : > { %v4526_v44 = vpop.permute.xlu2 %4525  ;;  %v6547_v10 = vsel %vm1725_vm4, %v8331_v39, %v4112_v48  ;;  %v6551_v20 = vsel %vm1725_vm4, %v8332_v36, %v4113_v0  ;;  %v6557_v60 = vsel %vm1725_vm4, %v1718_v35, %v4168_v23  ;;  %v1730_v11 = vsel %vm1725_vm4, %v6291_v59, %v4117_v63  ;;  %v8338_v39 = vld [vmem:[#allocation45_spill] sm:$0xff] }
 0x1d8   : > { %v4528_v45 = vunpack.i.h.bf16 %v4526_v44  ;;  %v4527_v8 = vunpack.i.l.bf16 %v4526_v44  ;;  %v6554_v44 = vsel %vm1725_vm4, %v1717_v29, %v4167_v4  ;;  %v4263_v19 = vunpack.i.h.bf16 %v8335_v42 }
 0x1d9   : > { %v6516_v62 = vpop.permute.xlu1 %4475  ;;  %v4262_v23 = vunpack.i.l.bf16 %v8335_v42  ;;  %v4343_v35 = vunpack.i.h.bf16 %v8336_v37  ;;  %v4342_v59 = vunpack.i.l.bf16 %v8336_v37  ;;  %v4188_v36 = vunpack.i.h.bf16 %v8338_v39 }
 0x1da   : > { %v6522_v56 = vsel %vm1890_vm9, %v6421_v54, %v4527_v8  ;;  %v6526_v55 = vsel %vm1890_vm9, %v6424_v30, %v4528_v45  ;;  %v1723_v54 = vsel %vm1692_vm3, %v8329_v34, %v4102_v3  ;;  %v1724_v30 = vsel %vm1692_vm3, %v8330_v50, %v4103_v18  ;;  %v8333_v3 = vld [vmem:[#allocation40_spill] sm:$0xff]  ;;  %v8334_v8 = vld [vmem:[#allocation41_spill] sm:$0xff] }
 0x1db   : > { %8328 = vst [vmem:[#allocation29_spill] sm:$0xff] %v6522_v56  ;;  %v6534_v21 = vpop.permute.xlu0 %4485  ;;  %v4197_v45 = vunpack.i.l.bf16 %v8333_v3  ;;  %v1731_v18 = vsel %vm1725_vm4, %v6287_v38, %v4118_v16  ;;  %v1756_v61 = vsel %vm1725_vm4, %v1723_v54, %v4182_v52  ;;  %v4198_v48 = vunpack.i.h.bf16 %v8333_v3  ;;  %v8337_v52 = vld [vmem:[#allocation19_spill] sm:$0xff]  ;;  %v8346_v56 = vld [vmem:[#allocation46_spill] sm:$0xff] }
 0x1dc   : > { %v1757_v0 = vsel %vm1725_vm4, %v1724_v30, %v4183_v26  ;;  %v4147_v38 = vunpack.i.l.bf16 %v8334_v8  ;;  %v4423_v26 = vunpack.i.h.bf16 %v8337_v52  ;;  %v4422_v54 = vunpack.i.l.bf16 %v8337_v52 }
 0x1dd   : > { %v6574_v16 = vsel %vm1758_vm2, %v1730_v11, %v4197_v45  ;;  %v6581_v30 = vsel %vm1758_vm2, %v1731_v18, %v4198_v48  ;;  %v4187_v45 = vunpack.i.l.bf16 %v8338_v39  ;;  %v1789_v11 = vsel %vm1758_vm2, %v1756_v61, %v4262_v23  ;;  %v8342_v23 = vld [vmem:[#allocation62_spill] sm:$0xff] }
 0x1de   : > { %v1822_v18 = vsel %vm1791_vm5, %v1789_v11, %v4342_v59 }
 0x1df   : > { %v4541_v4 = vpop.permute.xlu2 %4540 }
 0x1e0   : > { %v4543_v63 = vunpack.i.h.bf16 %v4541_v4  ;;  %v4542_v34 = vunpack.i.l.bf16 %v4541_v4  ;;  %v1790_v4 = vsel %vm1758_vm2, %v1757_v0, %v4263_v19  ;;  %v4348_v0 = vunpack.i.h.bf16 %v8342_v23 }
 0x1e1   : > { %v6578_v50 = vpop.permute.xlu1 %4490  ;;  %v1823_v48 = vsel %vm1791_vm5, %v1790_v4, %v4343_v35  ;;  %v4347_v19 = vunpack.i.l.bf16 %v8342_v23  ;;  %v8343_v35 = vld [vmem:[#allocation42_spill] sm:$0xff] }
 0x1e2   : > { %v6585_v3 = vsel %vm1890_vm9, %v1872_v57, %v4542_v34  ;;  %v6588_v42 = vsel %vm1890_vm9, %v1873_v40, %v4543_v63  ;;  %v8341_v34 = vld [vmem:[#allocation58_spill] sm:$0xff]  ;;  %v1855_v63 = vsel %vm1824_vm6, %v1822_v18, %v4422_v54  ;;  %v1856_v61 = vsel %vm1824_vm6, %v1823_v48, %v4423_v26  ;;  %v8344_v18 = vld [vmem:[#allocation43_spill] sm:$0xff] }
 0x1e3   : > { %8339 = vst [vmem:[#allocation28_spill] sm:$0xff] %v6585_v3  ;;  %v4501_v37 = vpop.permute.xlu0 %4500  ;;  %v4268_v29 = vunpack.i.h.bf16 %v8341_v34  ;;  %v4267_v40 = vunpack.i.l.bf16 %v8341_v34  ;;  %v4158_v11 = vunpack.i.h.bf16 %v8343_v35  ;;  %v4157_v4 = vunpack.i.l.bf16 %v8343_v35 }
 0x1e4   : > { %8340 = vst [vmem:[#allocation17_spill] sm:$0xff] %v6588_v42  ;;  %v4503_v9 = vunpack.i.h.bf16 %v4501_v37  ;;  %v4502_v57 = vunpack.i.l.bf16 %v4501_v37  ;;  %v4428_v37 = vunpack.i.h.bf16 %v6343_v43  ;;  %v4427_v54 = vunpack.i.l.bf16 %v6343_v43 }
 0x1e5   : > { %v4173_v26 = vunpack.i.h.bf16 %v8344_v18  ;;  %v4172_v48 = vunpack.i.l.bf16 %v8344_v18  ;;  %v1760_v34 = vsel %vm1758_vm2, %v6474_v12, %v4188_v36  ;;  %v4193_v12 = vunpack.i.h.bf16 %v8346_v56 }
 0x1e6   : > { %v6604_v39 = vsel %vm1857_vm7, %v1855_v63, %v4502_v57  ;;  %v6607_v59 = vsel %vm1857_vm7, %v1856_v61, %v4503_v9  ;;  %v1759_v57 = vsel %vm1758_vm2, %v6480_v6, %v4187_v45  ;;  %v8345_v9 = vld [vmem:[#allocation44_spill] sm:$0xff]  ;;  %v1793_v35 = vsel %vm1791_vm5, %v1760_v34, %v4268_v29 }
 0x1e7   : > { %v4228_v63 = vunpack.i.h.bf16 %v8345_v9  ;;  %v4227_v61 = vunpack.i.l.bf16 %v8345_v9  ;;  %v1792_v23 = vsel %vm1791_vm5, %v1759_v57, %v4267_v40  ;;  %v1826_v3 = vsel %vm1824_vm6, %v1793_v35, %v4348_v0  ;;  %v8347_v40 = vld [vmem:[#allocation47_spill] sm:$0xff]  ;;  %v8350_v35 = vld [vmem:[#allocation50_spill] sm:$0xff] }
 0x1e8   : > { %v1825_v43 = vsel %vm1824_vm6, %v1792_v23, %v4347_v19  ;;  %v4192_v36 = vunpack.i.l.bf16 %v8346_v56  ;;  %v1859_v45 = vsel %vm1857_vm7, %v1826_v3, %v4428_v37  ;;  %v4203_v57 = vunpack.i.h.bf16 %v8347_v40 }
 0x1e9   : > { %v4506_v52 = vpop.permute.xlu1 %4505  ;;  %v1858_v6 = vsel %vm1857_vm7, %v1825_v43, %v4427_v54  ;;  %v4202_v0 = vunpack.i.l.bf16 %v8347_v40  ;;  %v1742_v54 = vsel %vm1725_vm4, %v6492_v2, %v4147_v38  ;;  %v8349_v3 = vunpack.i.h.bf16 %v8334_v8  ;;  %v8354_v40 = vld [vmem:[#allocation64_spill] sm:$0xff] }
 0x1ea   : > { %v4508_v18 = vunpack.i.h.bf16 %v4506_v52  ;;  %v4507_v42 = vunpack.i.l.bf16 %v4506_v52  ;;  %v8348_v52 = vld [vmem:[#allocation48_spill] sm:$0xff]  ;;  %v4232_v43 = vunpack.i.l.bf16 %v8350_v35  ;;  %v6655_v2 = vsel %vm1725_vm4, %v6298_v5, %v4173_v26 }
 0x1eb   : > { %v6629_v9 = vpop.permute.xlu0 %4515  ;;  %v4273_v34 = vunpack.i.h.bf16 %v8348_v52  ;;  %v4272_v23 = vunpack.i.l.bf16 %v8348_v52  ;;  %v1743_v37 = vsel %vm1725_vm4, %v6488_v27, %v8349_v3  ;;  %v6659_v8 = vsel %vm1725_vm4, %v6302_v49, %v4172_v48 }
 0x1ec   : > { %v1891_v29 = vsel %vm1890_vm9, %v1858_v6, %v4507_v42  ;;  %v1892_v19 = vsel %vm1890_vm9, %v1859_v45, %v4508_v18  ;;  %v4233_v42 = vunpack.i.h.bf16 %v8350_v35  ;;  %v8351_v18 = vld [vmem:[#allocation10_spill] sm:$0xff]  ;;  %v6651_v45 = vsel %vm1725_vm4, %v6268_v46, %v4157_v4 }
 0x1ed   : > { %v1923_v56 = vpack.c.bf16 %v1892_v19, %v1891_v29  ;;  %v6647_v6 = vsel %vm1725_vm4, %v8351_v18, %v4158_v11  ;;  %v1775_v27 = vsel %vm1758_vm2, %v1742_v54, %v4227_v61  ;;  %v1776_v38 = vsel %vm1758_vm2, %v1743_v37, %v4228_v63 }
 0x1ee   : > { %v1761_v11 = vsel %vm1758_vm2, %v6547_v10, %v4192_v36  ;;  %v1762_v46 = vsel %vm1758_vm2, %v6551_v20, %v4193_v12  ;;  %v6670_v5 = vsel %vm1758_vm2, %v6495_v15, %v4203_v57  ;;  %v6674_v49 = vsel %vm1758_vm2, %v6498_v7, %v4202_v0  ;;  %v8352_v15 = vld [vmem:[#allocation52_spill] sm:$0xff]  ;;  %v8353_v7 = vld [vmem:[#allocation53_spill] sm:$0xff]  ;;  %v8355_v0 = vld [vmem:[#allocation71_spill] sm:$0xff] }
 0x1ef   : > { %3881 = vmatmul.msk.bf16.vlgmr.msra.gmra.mxu0 %vm1963_vm10, %v1923_v56  ;;  %v1794_v4 = vsel %vm1791_vm5, %v1761_v11, %v4272_v23  ;;  %v1795_v26 = vsel %vm1791_vm5, %v1762_v46, %v4273_v34  ;;  %v6682_v10 = vsel %vm1758_vm2, %v6531_v24, %v4232_v43  ;;  %v6686_v20 = vsel %vm1758_vm2, %v6543_v31, %v4233_v42  ;;  %v8356_v23 = vld [vmem:[#allocation59_spill] sm:$0xff]  ;;  %v8357_v46 = vld [vmem:[#allocation13_spill] sm:$0xff] }
 0x1f0   : > { %v4248_v12 = vunpack.i.h.bf16 %v8353_v7  ;;  %v4247_v36 = vunpack.i.l.bf16 %v8353_v7  ;;  %v4308_v57 = vunpack.i.h.bf16 %v8354_v40  ;;  %v4307_v29 = vunpack.i.l.bf16 %v8354_v40 }
 0x1f1   : > { %v6678_v48 = vpop.permute.xlu1 %4520  ;;  %v4353_v24 = vunpack.i.h.bf16 %v8355_v0  ;;  %v4352_v52 = vunpack.i.l.bf16 %v8355_v0  ;;  %v4278_v56 = vunpack.i.h.bf16 %v8356_v23  ;;  %v4277_v54 = vunpack.i.l.bf16 %v8356_v23 }
 0x1f2   : > { %v4433_v3 = vunpack.i.h.bf16 %v6368_v47  ;;  %v4432_v37 = vunpack.i.l.bf16 %v6368_v47  ;;  %v4513_v35 = vunpack.i.h.bf16 %v6442_v32  ;;  %v4512_v42 = vunpack.i.l.bf16 %v6442_v32  ;;  %v8358_v32 = vld [vmem:[#allocation66_spill] sm:$0xff] }
 0x1f3   : > { %v4531_v19 = vpop.permute.xlu0 %4530  ;;  %v1808_v11 = vsel %vm1791_vm5, %v1775_v27, %v4307_v29  ;;  %v4388_v7 = vunpack.i.h.bf16 %v8357_v46  ;;  %v4387_v40 = vunpack.i.l.bf16 %v8357_v46  ;;  %v4313_v0 = vunpack.i.h.bf16 %v8358_v32 }
 0x1f4   : > { %v4533_v34 = vunpack.i.h.bf16 %v4531_v19  ;;  %v4532_v31 = vunpack.i.l.bf16 %v4531_v19  ;;  %v1809_v19 = vsel %vm1791_vm5, %v1776_v38, %v4308_v57  ;;  %v4312_v57 = vunpack.i.l.bf16 %v8358_v32 }
 0x1f6   : > { %v6704_v43 = vsel %vm1890_vm9, %v6272_v14, %v4532_v31  ;;  %v6708_v18 = vsel %vm1890_vm9, %v6275_v22, %v4533_v34  ;;  %v1827_v14 = vsel %vm1824_vm6, %v1794_v4, %v4352_v52  ;;  %v1828_v31 = vsel %vm1824_vm6, %v1795_v26, %v4353_v24  ;;  %v8359_v4 = vld [vmem:[#allocation68_spill] sm:$0xff] }
 0x1f7   : > { %v4468_v22 = vunpack.i.h.bf16 %v6316_v28  ;;  %v4467_v34 = vunpack.i.l.bf16 %v6316_v28  ;;  %v1860_v27 = vsel %vm1857_vm7, %v1827_v14, %v4432_v37  ;;  %v1861_v29 = vsel %vm1857_vm7, %v1828_v31, %v4433_v3 }
 0x1f8   : > { %v1893_v47 = vsel %vm1890_vm9, %v1860_v27, %v4512_v42  ;;  %v1894_v38 = vsel %vm1890_vm9, %v1861_v29, %v4513_v35  ;;  %v4328_v52 = vunpack.i.h.bf16 %v8359_v4  ;;  %v1841_v26 = vsel %vm1824_vm6, %v1808_v11, %v4387_v40  ;;  %v8360_v40 = vld [vmem:[#allocation69_spill] sm:$0xff] }
 0x1f9   : > { %v4536_v23 = vpop.permute.xlu1 %4535  ;;  %v1842_v24 = vsel %vm1824_vm6, %v1809_v19, %v4388_v7  ;;  %v1874_v35 = vsel %vm1857_vm7, %v1841_v26, %v4467_v34  ;;  %v1924_v14 = vpack.c.bf16 %v1894_v38, %v1893_v47  ;;  %v4327_v7 = vunpack.i.l.bf16 %v8359_v4  ;;  %v8361_v34 = vld [vmem:[#allocation55_spill] sm:$0xff] }
 0x1fa   : > { %v4538_v46 = vunpack.i.h.bf16 %v4536_v23  ;;  %v4537_v63 = vunpack.i.l.bf16 %v4536_v23  ;;  %v1875_v32 = vsel %vm1857_vm7, %v1842_v24, %v4468_v22  ;;  %v4392_v19 = vunpack.i.l.bf16 %v8360_v40  ;;  %v8362_v23 = vld [vmem:[#allocation57_spill] sm:$0xff] }
 0x1fb   : > { %v4546_v28 = vpop.permute.xlu0 %4545  ;;  %v4393_v22 = vunpack.i.h.bf16 %v8360_v40  ;;  %v4253_v27 = vunpack.i.h.bf16 %v8361_v34  ;;  %v4252_v29 = vunpack.i.l.bf16 %v8361_v34  ;;  %v4317_v38 = vunpack.i.l.bf16 %v8362_v23 }
 0x1fc   : > { %v4548_v61 = vunpack.i.h.bf16 %v4546_v28  ;;  %v4547_v37 = vunpack.i.l.bf16 %v4546_v28  ;;  %v6731_v3 = vsel %vm1890_vm9, %v6433_v33, %v4537_v63  ;;  %v6735_v42 = vsel %vm1890_vm9, %v6436_v25, %v4538_v46 }
 0x1fd   : > { %v1783_v25 = vsel %vm1758_vm2, %v6554_v44, %v4247_v36  ;;  %v1784_v63 = vsel %vm1758_vm2, %v6557_v60, %v4248_v12  ;;  %v4318_v46 = vunpack.i.h.bf16 %v8362_v23  ;;  %v1797_v44 = vsel %vm1791_vm5, %v6581_v30, %v4278_v56  ;;  %v8363_v60 = vld [vmem:[#allocation60_spill] sm:$0xff]  ;;  %v8364_v30 = vld [vmem:[#allocation73_spill] sm:$0xff] }
 0x1fe   : > { %v1907_v31 = vsel %vm1890_vm9, %v1874_v35, %v4547_v37  ;;  %v1908_v33 = vsel %vm1890_vm9, %v1875_v32, %v4548_v61  ;;  %v1796_v61 = vsel %vm1791_vm5, %v6574_v16, %v4277_v54  ;;  %v4333_v12 = vunpack.i.h.bf16 %v8363_v60  ;;  %v8365_v37 = vld [vmem:[#allocation72_spill] sm:$0xff] }
 0x1ff   : > { %3882 = vmatmul.msk.bf16.gmra.mxu0 %vm1963_vm10, %v1924_v14  ;;  %v1931_v47 = vpack.c.bf16 %v1908_v33, %v1907_v31  ;;  %v1810_v36 = vsel %vm1791_vm5, %v6682_v10, %v4312_v57  ;;  %v1811_v26 = vsel %vm1791_vm5, %v6686_v20, %v4313_v0  ;;  %v1816_v24 = vsel %vm1791_vm5, %v1783_v25, %v4327_v7  ;;  %v8366_v14 = vld [vmem:[#allocation9_spill] sm:$0xff] }
 0x200   : > { %v1817_v28 = vsel %vm1791_vm5, %v1784_v63, %v4328_v52  ;;  %v1843_v16 = vsel %vm1824_vm6, %v1810_v36, %v4392_v19  ;;  %v1844_v54 = vsel %vm1824_vm6, %v1811_v26, %v4393_v22  ;;  %v4358_v56 = vunpack.i.h.bf16 %v8364_v30 }
 0x201   : > { %v4551_v4 = vpop.permute.xlu1 %4550  ;;  %3889 = vmatmul.msk.bf16.vlgmr.msra.gmra.mxu2 %vm1963_vm10, %v1931_v47  ;;  %v4408_v35 = vunpack.i.h.bf16 %v8365_v37  ;;  %v4407_v10 = vunpack.i.l.bf16 %v8365_v37  ;;  %v4357_v32 = vunpack.i.l.bf16 %v8364_v30  ;;  %v4438_v40 = vunpack.i.h.bf16 %v8366_v14 }
 0x202   : > { %v4437_v7 = vunpack.i.l.bf16 %v8366_v14  ;;  %v4473_v52 = vunpack.i.h.bf16 %v6468_v58  ;;  %v4472_v19 = vunpack.i.l.bf16 %v6468_v58  ;;  %v4488_v31 = vunpack.i.h.bf16 %v6534_v21 }
 0x203   : > { %v4561_v57 = vpop.permute.xlu0 %4560  ;;  %v4518_v33 = vunpack.i.h.bf16 %v6629_v9  ;;  %v4517_v25 = vunpack.i.l.bf16 %v6629_v9  ;;  %v4487_v47 = vunpack.i.l.bf16 %v6534_v21  ;;  %v4553_v36 = vunpack.i.h.bf16 %v4551_v4 }
 0x204   : > { %v4563_v20 = vunpack.i.h.bf16 %v4561_v57  ;;  %v4562_v0 = vunpack.i.l.bf16 %v4561_v57  ;;  %v4552_v26 = vunpack.i.l.bf16 %v4551_v4  ;;  %v1829_v30 = vsel %vm1824_vm6, %v1796_v61, %v4357_v32  ;;  %v6799_v4 = vpop.permute.xlu2 %4555 }
 0x205   : > { %v1830_v37 = vsel %vm1824_vm6, %v1797_v44, %v4358_v56  ;;  %v1849_v9 = vsel %vm1824_vm6, %v1816_v24, %v4407_v10  ;;  %v1862_v57 = vsel %vm1857_vm7, %v1829_v30, %v4437_v7  ;;  %v1876_v14 = vsel %vm1857_vm7, %v1843_v16, %v4472_v19  ;;  %v8367_v7 = vld [vmem:[#allocation61_spill] sm:$0xff] }
 0x206   : > { %v6782_v63 = vsel %vm1890_vm9, %v6373_v51, %v4562_v0  ;;  %v6786_v22 = vsel %vm1890_vm9, %v6376_v17, %v4563_v20  ;;  %v1850_v51 = vsel %vm1824_vm6, %v1817_v28, %v4408_v35  ;;  %v1863_v17 = vsel %vm1857_vm7, %v1830_v37, %v4438_v40 }
 0x207   : > { %v1934_v58 = vpack.c.bf16 %v6786_v22, %v6782_v63  ;;  %v1877_v21 = vsel %vm1857_vm7, %v1844_v54, %v4473_v52  ;;  %v1895_v61 = vsel %vm1890_vm9, %v1862_v57, %v4517_v25  ;;  %v1896_v44 = vsel %vm1890_vm9, %v1863_v17, %v4518_v33 }
 0x208   : > { %v1882_v24 = vsel %vm1857_vm7, %v1849_v9, %v4487_v47  ;;  %v1883_v28 = vsel %vm1857_vm7, %v1850_v51, %v4488_v31  ;;  %v1909_v35 = vsel %vm1890_vm9, %v1876_v14, %v4552_v26  ;;  %v1910_v16 = vsel %vm1890_vm9, %v1877_v21, %v4553_v36  ;;  %v8368_v31 = vld [vmem:[#allocation65_spill] sm:$0xff] }
 0x209   : > { %v4566_v20 = vpop.permute.xlu1 %4565  ;;  %v4282_v52 = vunpack.i.l.bf16 %v8367_v7  ;;  %v4332_v19 = vunpack.i.l.bf16 %v8363_v60  ;;  %v1925_v33 = vpack.c.bf16 %v1896_v44, %v1895_v61  ;;  %v4283_v47 = vunpack.i.h.bf16 %v8367_v7 }
 0x20a   : > { %v4568_v0 = vunpack.i.h.bf16 %v4566_v20  ;;  %v4567_v11 = vunpack.i.l.bf16 %v4566_v20  ;;  %v4362_v30 = vunpack.i.l.bf16 %v8368_v31  ;;  %v4363_v9 = vunpack.i.h.bf16 %v8368_v31 }
 0x20b   : > { %v4576_v56 = vpop.permute.xlu0 %4575  ;;  %v1932_v51 = vpack.c.bf16 %v1910_v16, %v1909_v35  ;;  %v8370_v57 = vunpack.i.h.bf16 %v8352_v15  ;;  %v1786_v17 = vsel %vm1758_vm2, %v6655_v2, %v4253_v27  ;;  %v1799_v2 = vsel %vm1791_vm5, %v6670_v5, %v4283_v47 }
 0x20c   : > { %v4578_v10 = vunpack.i.h.bf16 %v4576_v56  ;;  %v4577_v54 = vunpack.i.l.bf16 %v4576_v56  ;;  %v1915_v32 = vsel %vm1890_vm9, %v1882_v24, %v4567_v11  ;;  %v1916_v40 = vsel %vm1890_vm9, %v1883_v28, %v4568_v0  ;;  %v4571_v0 = vpop.permute.xlu2 %4570 }
 0x20d   : > { %v1935_v25 = vpack.c.bf16 %v1916_v40, %v1915_v32  ;;  %v8369_v11 = vunpack.i.l.bf16 %v8352_v15  ;;  %v4413_v60 = vunpack.i.h.bf16 %v6293_v1  ;;  %v4443_v61 = vunpack.i.h.bf16 %v6381_v13 }
 0x20e   : > { %v6815_v26 = vsel %vm1890_vm9, %v6408_v53, %v4577_v54  ;;  %v6819_v36 = vsel %vm1890_vm9, %v6411_v41, %v4578_v10  ;;  %v1780_v41 = vsel %vm1758_vm2, %v6647_v6, %v8370_v57  ;;  %v1798_v6 = vsel %vm1791_vm5, %v6674_v49, %v4282_v52  ;;  %v8372_v57 = vld [vmem:[#allocation29_spill] sm:$0xff] }
 0x20f   : > { %v1779_v37 = vsel %vm1758_vm2, %v6651_v45, %v8369_v11  ;;  %3883 = vmatmul.msk.bf16.gmra.mxu0 %vm1963_vm10, %v1925_v33  ;;  %3893 = vmatmul.msk.bf16.vlgmr.msra.gmra.mxu3 %vm1963_vm10, %v1935_v25  ;;  %v1937_v53 = vpack.c.bf16 %v6819_v36, %v6815_v26  ;;  %v1785_v45 = vsel %vm1758_vm2, %v6659_v8, %v4252_v29  ;;  %v4442_v24 = vunpack.i.l.bf16 %v6381_v13 }
 0x210   : > { %v1812_v14 = vsel %vm1791_vm5, %v1779_v37, %v4317_v38  ;;  %v1813_v15 = vsel %vm1791_vm5, %v1780_v41, %v4318_v46  ;;  %v1818_v21 = vsel %vm1791_vm5, %v1785_v45, %v4332_v19  ;;  %v1819_v8 = vsel %vm1791_vm5, %v1786_v17, %v4333_v12  ;;  %v8371_v38 = vld [vmem:[#allocation11_spill] sm:$0xff] }
 0x211   : > { %v4581_v34 = vpop.permute.xlu1 %4580  ;;  %3890 = vmatmul.msk.bf16.gmra.mxu2 %vm1963_vm10, %v1932_v51  ;;  %v1831_v27 = vsel %vm1824_vm6, %v1798_v6, %v4362_v30  ;;  %v1832_v46 = vsel %vm1824_vm6, %v1799_v2, %v4363_v9  ;;  %v4398_v49 = vunpack.i.h.bf16 %v8371_v38  ;;  %v4397_v20 = vunpack.i.l.bf16 %v8371_v38  ;;  %v2257_v6 = vld [vmem:[#allocation3 + $0x1] sm:$0xff] }
 0x212   : > { %v4583_v29 = vunpack.i.h.bf16 %v4581_v34  ;;  %v4582_v23 = vunpack.i.l.bf16 %v4581_v34  ;;  %v4412_v12 = vunpack.i.l.bf16 %v6293_v1  ;;  %v4493_v28 = vunpack.i.h.bf16 %v6578_v50 }
 0x213   : > { %v4492_v56 = vunpack.i.l.bf16 %v6578_v50  ;;  %v4523_v16 = vunpack.i.h.bf16 %v6678_v48  ;;  %v4522_v10 = vunpack.i.l.bf16 %v6678_v48  ;;  %v4573_v1 = vunpack.i.h.bf16 %v4571_v0 }
 0x214   : > { %v1921_v5 = vsel %vm1890_vm9, %v6604_v39, %v4582_v23  ;;  %v1922_v44 = vsel %vm1890_vm9, %v6607_v59, %v4583_v29  ;;  %v4572_v54 = vunpack.i.l.bf16 %v4571_v0  ;;  %v1845_v32 = vsel %vm1824_vm6, %v1812_v14, %v4397_v20 }
 0x215   : > { %v1938_v35 = vpack.c.bf16 %v1922_v44, %v1921_v5  ;;  %v1846_v39 = vsel %vm1824_vm6, %v1813_v15, %v4398_v49  ;;  %v4478_v40 = vunpack.i.h.bf16 %v6516_v62  ;;  %v4477_v59 = vunpack.i.l.bf16 %v6516_v62 }
 0x216   : > { %v1851_v13 = vsel %vm1824_vm6, %v1818_v21, %v4412_v12  ;;  %v1852_v7 = vsel %vm1824_vm6, %v1819_v8, %v4413_v60  ;;  %v4558_v50 = vunpack.i.h.bf16 %v6799_v4  ;;  %v4557_v52 = vunpack.i.l.bf16 %v6799_v4 }
 0x217   : > { %v1864_v48 = vsel %vm1857_vm7, %v1831_v27, %v4442_v24  ;;  %v1865_v19 = vsel %vm1857_vm7, %v1832_v46, %v4443_v61  ;;  %v1884_v33 = vsel %vm1857_vm7, %v1851_v13, %v4492_v56  ;;  %v1885_v25 = vsel %vm1857_vm7, %v1852_v7, %v4493_v28 }
 0x218   : > { %v1897_v47 = vsel %vm1890_vm9, %v1864_v48, %v4522_v10  ;;  %v1898_v62 = vsel %vm1890_vm9, %v1865_v19, %v4523_v16  ;;  %v1917_v31 = vsel %vm1890_vm9, %v1884_v33, %v4572_v54  ;;  %v1918_v30 = vsel %vm1890_vm9, %v1885_v25, %v4573_v1 }
 0x219   : > { %v1878_v26 = vsel %vm1857_vm7, %v1845_v32, %v4477_v59  ;;  %v1879_v4 = vsel %vm1857_vm7, %v1846_v39, %v4478_v40  ;;  %v1926_v37 = vpack.c.bf16 %v1898_v62, %v1897_v47  ;;  %v1936_v9 = vpack.c.bf16 %v1918_v30, %v1917_v31 }
 0x21a   : > { %v1911_v36 = vsel %vm1890_vm9, %v1878_v26, %v4557_v52  ;;  %v1912_v11 = vsel %vm1890_vm9, %v1879_v4, %v4558_v50  ;;  %v8373_v41 = vpack.c.bf16 %v6526_v55, %v8372_v57  ;;  %v8374_v45 = vpack.c.bf16 %v6708_v18, %v6704_v43  ;;  %v8377_v43 = vld [vmem:[#allocation17_spill] sm:$0xff]  ;;  %v8378_v18 = vld [vmem:[#allocation28_spill] sm:$0xff] }
 0x21b   : > { %v1933_v51 = vpack.c.bf16 %v1912_v11, %v1911_v36  ;;  %v8375_v17 = vpack.c.bf16 %v6735_v42, %v6731_v3  ;;  %v8376_v55 = vmov 0.0   ;;  %v8379_v3 = vpack.c.bf16 %v8377_v43, %v8378_v18  ;;  %v6955_v42 = vld [vmem:[%s8079_s2] ss:$0 sm:$0xff] }
 0x21c   : > { %2143 = vst.msk [vmem:[#allocation3 + $0x28] sm:$0x3] %vm2139_vm11, %v8376_v55 }
 0x21d   : > { %2140 = vst.msk [vmem:[#allocation3 + $0x10] sm:$0x3] %vm2139_vm11, %v8376_v55 }
 0x21e   : > { %2146 = vst.msk [vmem:[#allocation3 + $0x40] sm:$0x3] %vm2139_vm11, %v8376_v55 }
 0x21f   : > { %3884 = vmatmul.msk.bf16.gmra.mxu0 %vm1963_vm10, %v1926_v37  ;;  %3894 = vmatmul.msk.bf16.gmra.mxu3 %vm1963_vm10, %v1936_v9  ;;  %2149 = vst.msk [vmem:[#allocation3 + $0x58] sm:$0x3] %vm2139_vm11, %v8376_v55 }
 0x220   : > { %2152 = vst.msk [vmem:[#allocation3 + $0x70] sm:$0x3] %vm2139_vm11, %v8376_v55 }
 0x221   : > { %3891 = vmatmul.msk.bf16.gmra.mxu2 %vm1963_vm10, %v1933_v51  ;;  %2155 = vst.msk [vmem:[#allocation3 + $0x88] sm:$0x3] %vm2139_vm11, %v8376_v55 }
 0x222   : > { %2158 = vst.msk [vmem:[#allocation3 + $0xa0] sm:$0x3] %vm2139_vm11, %v8376_v55 }
 0x223   : > { %2161 = vst.msk [vmem:[#allocation3 + $0xb8] sm:$0x3] %vm2139_vm11, %v8376_v55 }
 0x224   : > { %2164 = vst.msk [vmem:[#allocation3 + $0xd0] sm:$0x3] %vm2139_vm11, %v8376_v55  ;;  %v2258_v21 = vld [vmem:[#allocation3 + $0x9] sm:$0xff] }
 0x225   : > { %2167 = vst.msk [vmem:[#allocation3 + $0xe8] sm:$0x3] %vm2139_vm11, %v8376_v55  ;;  %v4584_v8 = vpack.i.bf16 %v2258_v21, %v2257_v6 }
 0x226   : > { %2170 = vst.msk [vmem:[#allocation3 + $0x100] sm:$0x3] %vm2139_vm11, %v8376_v55 }
 0x227   : > { %2173 = vst.msk [vmem:[#allocation3 + $0x118] sm:$0x3] %vm2139_vm11, %v8376_v55  ;;  %4585 = vrot.lane.b32.xlu2 %v4584_v8, %s5165_s27 }
 0x228   : > { %2176 = vst.msk [vmem:[#allocation3 + $0x130] sm:$0x3] %vm2139_vm11, %v8376_v55 }
 0x229   : > { %2179 = vst.msk [vmem:[#allocation3 + $0x148] sm:$0x3] %vm2139_vm11, %v8376_v55 }
 0x22a   : > { %2182 = vst.msk [vmem:[#allocation3 + $0x160] sm:$0x3] %vm2139_vm11, %v8376_v55 }
 0x22b   : > { %2185 = vst.msk [vmem:[#allocation3 + $0x178] sm:$0x3] %vm2139_vm11, %v8376_v55 }
 0x22c   : > { %2188 = vst.msk [vmem:[#allocation3 + $0x190] sm:$0x3] %vm2139_vm11, %v8376_v55 }
 0x22d   : > { %2191 = vst.msk [vmem:[#allocation3 + $0x1a8] sm:$0x3] %vm2139_vm11, %v8376_v55 }
 0x22f   : > { %3885 = vmatmul.msk.bf16.gmra.mxu0 %vm1963_vm10, %v8373_v41  ;;  %3895 = vmatmul.msk.bf16.gmra.mxu3 %vm1963_vm10, %v1937_v53 }
 0x231   : > { %3892 = vmatmul.msk.bf16.gmra.mxu2 %vm1963_vm10, %v1934_v58 }
 0x23f   : > { %3886 = vmatmul.msk.bf16.gmra.mxu0 %vm1963_vm10, %v8374_v45  ;;  %3896 = vmatmul.msk.bf16.gmra.mxu3 %vm1963_vm10, %v1938_v35 }
 0x24f   : > { %3887 = vmatmul.msk.bf16.gmra.mxu0 %vm1963_vm10, %v8375_v17 }
 0x25f   : > { %3888 = vmatmul.msk.bf16.gmra.mxu0 %vm1963_vm10, %v8379_v3 }
 0x26c   : > { %v2025_v63 = vpop.f32.mrf.mxu0 }
 0x26d   : > { %v2026_v22 = vadd.f32 %v6955_v42, %v2025_v63 }
 0x26f   : > { %v2105_v58 = vmax.f32 %v2026_v22, 0.0 }
 0x271   : > { %2193 = vst.msk [vmem:[#allocation3 + $0x19] sm:$0xff] %vm1758_vm2, %v2105_v58 }
 0x274   : > { %v2027_v53 = vpop.f32.mrf.mxu0 }
 0x275   : > { %v2028_v14 = vadd.f32 %v6955_v42, %v2027_v53 }
 0x277   : > { %v2106_v15 = vmax.f32 %v2028_v14, 0.0 }
 0x278   : > { %v2259_v29 = vld [vmem:[#allocation3 + $0x19] sm:$0xff] }
 0x279   : > { %2194 = vst.msk [vmem:[#allocation3 + $0x21] sm:$0xff] %vm1758_vm2, %v2106_v15 }
 0x27c   : > { %v2030_v34 = vpop.f32.mrf.mxu0 }
 0x27d   : > { %v2031_v2 = vadd.f32 %v6955_v42, %v2030_v34 }
 0x27f   : > { %v2107_v27 = vmax.f32 %v2031_v2, 0.0 }
 0x280   : > { %v2260_v23 = vld [vmem:[#allocation3 + $0x21] sm:$0xff] }
 0x281   : > { %2195 = vst.msk [vmem:[#allocation3 + $0x31] sm:$0xff] %vm1758_vm2, %v2107_v27  ;;  %v6966_v46 = vpack.i.bf16 %v2260_v23, %v2259_v29 }
 0x283   : > { %4590 = vrot.lane.b32.xlu0 %v6966_v46, %s5165_s27 }
 0x284   : > { %v2032_v38 = vpop.f32.mrf.mxu0  ;;  %v2065_v49 = vpop.f32.mrf.mxu2 }
 0x285   : > { %v2033_v20 = vadd.f32 %v6955_v42, %v2032_v38  ;;  %v2066_v60 = vadd.f32 %v6955_v42, %v2065_v49 }
 0x287   : > { %v2108_v0 = vmax.f32 %v2033_v20, 0.0  ;;  %v2121_v12 = vmax.f32 %v2066_v60, 0.0 }
 0x288   : > { %v2261_v35 = vld [vmem:[#allocation3 + $0x31] sm:$0xff] }
 0x289   : > { %2196 = vst.msk [vmem:[#allocation3 + $0x39] sm:$0xff] %vm1758_vm2, %v2108_v0 }
 0x28a   : > { %2209 = vst.msk [vmem:[#allocation3 + $0xd9] sm:$0xff] %vm1758_vm2, %v2121_v12 }
 0x28c   : > { %v2035_v61 = vpop.f32.mrf.mxu0  ;;  %v2067_v5 = vpop.f32.mrf.mxu2 }
 0x28d   : > { %v2036_v44 = vadd.f32 %v6955_v42, %v2035_v61  ;;  %v2068_v24 = vadd.f32 %v6955_v42, %v2067_v5 }
 0x28f   : > { %v2109_v28 = vmax.f32 %v2036_v44, 0.0  ;;  %v2122_v56 = vmax.f32 %v2068_v24, 0.0 }
 0x290   : > { %v2262_v16 = vld [vmem:[#allocation3 + $0x39] sm:$0xff] }
 0x291   : > { %2197 = vst.msk [vmem:[#allocation3 + $0x49] sm:$0xff] %vm1758_vm2, %v2109_v28  ;;  %v6977_v10 = vpack.i.bf16 %v2262_v16, %v2261_v35  ;;  %v2275_v53 = vld [vmem:[#allocation3 + $0xd9] sm:$0xff] }
 0x292   : > { %2210 = vst.msk [vmem:[#allocation3 + $0xe1] sm:$0xff] %vm1758_vm2, %v2122_v56  ;;  %v2085_v1 = vpop.f32.mrf.mxu3 }
 0x293   : > { %v2086_v54 = vadd.f32 %v6955_v42, %v2085_v1  ;;  %4595 = vrot.lane.b32.xlu1 %v6977_v10, %s5165_s27 }
 0x294   : > { %v2037_v32 = vpop.f32.mrf.mxu0  ;;  %v2070_v39 = vpop.f32.mrf.mxu2 }
 0x295   : > { %v2129_v40 = vmax.f32 %v2086_v54, 0.0  ;;  %v2038_v59 = vadd.f32 %v6955_v42, %v2037_v32  ;;  %v2071_v13 = vadd.f32 %v6955_v42, %v2070_v39 }
 0x297   : > { %2217 = vst.msk [vmem:[#allocation3 + $0x139] sm:$0xff] %vm1758_vm2, %v2129_v40  ;;  %v2110_v7 = vmax.f32 %v2038_v59, 0.0  ;;  %v2123_v50 = vmax.f32 %v2071_v13, 0.0 }
 0x298   : > { %v2263_v9 = vld [vmem:[#allocation3 + $0x49] sm:$0xff] }
 0x299   : > { %2198 = vst.msk [vmem:[#allocation3 + $0x51] sm:$0xff] %vm1758_vm2, %v2110_v7  ;;  %v6987_v52 = vld [vmem:[#allocation3 + $0xda] sm:$0xff]  ;;  %v6989_v48 = vld [vmem:[#allocation3 + $0xe2] sm:$0xff] }
 0x29a   : > { %2211 = vst.msk [vmem:[#allocation3 + $0xf1] sm:$0xff] %vm1758_vm2, %v2123_v50  ;;  %v2087_v19 = vpop.f32.mrf.mxu3  ;;  %v3654_v33 = vpack.c.bf16 %v6989_v48, %v6987_v52  ;;  %v4709_v25 = vpack.i.bf16 %v6989_v48, %v6987_v52  ;;  %v2276_v63 = vld [vmem:[#allocation3 + $0xe1] sm:$0xff]  ;;  %v7195_v48 = vld [vmem:[#allocation3 + $0x38] sm:$0xff] }
 0x29b   : > { %v2088_v47 = vadd.f32 %v6955_v42, %v2087_v19  ;;  %v7012_v14 = vpack.i.bf16 %v2276_v63, %v2275_v53  ;;  %v7282_v27 = vld [vmem:[#allocation3 + $0xe0] sm:$0xff] }
 0x29c   : > { %v2040_v62 = vpop.f32.mrf.mxu0  ;;  %v2072_v31 = vpop.f32.mrf.mxu2  ;;  %v3719_v30 = vsel %vm1758_vm2, %v3654_v33, 0 }
 0x29d   : > { %v2130_v26 = vmax.f32 %v2088_v47, 0.0  ;;  %v2041_v4 = vadd.f32 %v6955_v42, %v2040_v62  ;;  %v2073_v36 = vadd.f32 %v6955_v42, %v2072_v31  ;;  %3759 = vmatpush.bf16.xpose.msrb.mxu2 %v3719_v30 }
 0x29f   : > { %2218 = vst.msk [vmem:[#allocation3 + $0x141] sm:$0xff] %vm1758_vm2, %v2130_v26  ;;  %v2111_v11 = vmax.f32 %v2041_v4, 0.0  ;;  %v2124_v37 = vmax.f32 %v2073_v36, 0.0  ;;  %v2283_v36 = vld [vmem:[#allocation3 + $0x139] sm:$0xff] }
 0x2a0   : > { %v2264_v51 = vld [vmem:[#allocation3 + $0x51] sm:$0xff] }
 0x2a1   : > { %2199 = vst.msk [vmem:[#allocation3 + $0x61] sm:$0xff] %vm1758_vm2, %v2111_v11  ;;  %v7002_v57 = vpack.i.bf16 %v2264_v51, %v2263_v9  ;;  %v2277_v32 = vld [vmem:[#allocation3 + $0xf1] sm:$0xff] }
 0x2a2   : > { %2212 = vst.msk [vmem:[#allocation3 + $0xf9] sm:$0xff] %vm1758_vm2, %v2124_v37  ;;  %v2090_v41 = vpop.f32.mrf.mxu3 }
 0x2a3   : > { %v2091_v45 = vadd.f32 %v6955_v42, %v2090_v41  ;;  %4600 = vrot.lane.b32.xlu2 %v7002_v57, %s5165_s27 }
 0x2a4   : > { %v2042_v17 = vpop.f32.mrf.mxu0  ;;  %v2075_v55 = vpop.f32.mrf.mxu2 }
 0x2a5   : > { %v2131_v43 = vmax.f32 %v2091_v45, 0.0  ;;  %v2043_v18 = vadd.f32 %v6955_v42, %v2042_v17  ;;  %v2076_v3 = vadd.f32 %v6955_v42, %v2075_v55 }
 0x2a6   : > { %v2284_v30 = vld [vmem:[#allocation3 + $0x141] sm:$0xff] }
 0x2a7   : > { %2219 = vst.msk [vmem:[#allocation3 + $0x151] sm:$0xff] %vm1758_vm2, %v2131_v43  ;;  %v2112_v22 = vmax.f32 %v2043_v18, 0.0  ;;  %v2125_v58 = vmax.f32 %v2076_v3, 0.0  ;;  %v7054_v9 = vpack.i.bf16 %v2284_v30, %v2283_v36 }
 0x2a8   : > { %v2265_v60 = vld [vmem:[#allocation3 + $0x61] sm:$0xff] }
 0x2a9   : > { %2200 = vst.msk [vmem:[#allocation3 + $0x69] sm:$0xff] %vm1758_vm2, %v2112_v22  ;;  %v7015_v6 = vld [vmem:[#allocation3 + $0xf2] sm:$0xff]  ;;  %v7020_v8 = vld [vmem:[#allocation3 + $0xfa] sm:$0xff] }
 0x2aa   : > { %2213 = vst.msk [vmem:[#allocation3 + $0x109] sm:$0xff] %vm1758_vm2, %v2125_v58  ;;  %v2092_v15 = vpop.f32.mrf.mxu3  ;;  %v2278_v16 = vld [vmem:[#allocation3 + $0xf9] sm:$0xff] }
 0x2ab   : > { %8380 = vst [vmem:[#allocation16_spill] sm:$0xff] %v7015_v6  ;;  %v2093_v21 = vadd.f32 %v6955_v42, %v2092_v15  ;;  %4615 = vrot.lane.b32.xlu2 %v7012_v14, %s5165_s27  ;;  %v7038_v39 = vpack.i.bf16 %v2278_v16, %v2277_v32 }
 0x2ac   : > { %8381 = vst [vmem:[#allocation15_spill] sm:$0xff] %v7020_v8  ;;  %v2045_v34 = vpop.f32.mrf.mxu0  ;;  %v2077_v2 = vpop.f32.mrf.mxu2 }
 0x2ad   : > { %v2132_v29 = vmax.f32 %v2093_v21, 0.0  ;;  %v2046_v23 = vadd.f32 %v6955_v42, %v2045_v34  ;;  %v2078_v38 = vadd.f32 %v6955_v42, %v2077_v2  ;;  %v7286_v2 = vld [vmem:[#allocation3 + $0xf8] sm:$0xff] }
 0x2af   : > { %2220 = vst.msk [vmem:[#allocation3 + $0x159] sm:$0xff] %vm1758_vm2, %v2132_v29  ;;  %v2113_v49 = vmax.f32 %v2046_v23, 0.0  ;;  %v2126_v20 = vmax.f32 %v2078_v38, 0.0 }
 0x2b0   : > { %v2266_v0 = vld [vmem:[#allocation3 + $0x69] sm:$0xff] }
 0x2b1   : > { %2201 = vst.msk [vmem:[#allocation3 + $0x79] sm:$0xff] %vm1758_vm2, %v2113_v49  ;;  %v7028_v12 = vpack.i.bf16 %v2266_v0, %v2265_v60  ;;  %v2279_v63 = vld [vmem:[#allocation3 + $0x109] sm:$0xff]  ;;  %v2285_v0 = vld [vmem:[#allocation3 + $0x151] sm:$0xff] }
 0x2b2   : > { %2214 = vst.msk [vmem:[#allocation3 + $0x111] sm:$0xff] %vm1758_vm2, %v2126_v20  ;;  %v2095_v61 = vpop.f32.mrf.mxu3 }
 0x2b3   : > { %v2096_v5 = vadd.f32 %v6955_v42, %v2095_v61  ;;  %4605 = vrot.lane.b32.xlu0 %v7028_v12, %s5165_s27 }
 0x2b4   : > { %v2047_v44 = vpop.f32.mrf.mxu0  ;;  %v2080_v24 = vpop.f32.mrf.mxu2 }
 0x2b5   : > { %v2133_v28 = vmax.f32 %v2096_v5, 0.0  ;;  %v2048_v56 = vadd.f32 %v6955_v42, %v2047_v44  ;;  %v2081_v35 = vadd.f32 %v6955_v42, %v2080_v24 }
 0x2b6   : > { %v2286_v38 = vld [vmem:[#allocation3 + $0x159] sm:$0xff] }
 0x2b7   : > { %2221 = vst.msk [vmem:[#allocation3 + $0x169] sm:$0xff] %vm1758_vm2, %v2133_v28  ;;  %v2114_v1 = vmax.f32 %v2048_v56, 0.0  ;;  %v2127_v54 = vmax.f32 %v2081_v35, 0.0  ;;  %v7083_v5 = vpack.i.bf16 %v2286_v38, %v2285_v0  ;;  %v2291_v56 = vld [vmem:[#allocation3 + $0x1a] sm:$0xff]  ;;  %v2292_v35 = vld [vmem:[#allocation3 + $0x22] sm:$0xff] }
 0x2b8   : > { %v2267_v11 = vld [vmem:[#allocation3 + $0x79] sm:$0xff]  ;;  %v7093_v32 = vpack.i.bf16 %v2292_v35, %v2291_v56  ;;  %v7290_v56 = vld [vmem:[#allocation3 + $0x108] sm:$0xff] }
 0x2b9   : > { %2202 = vst.msk [vmem:[#allocation3 + $0x81] sm:$0xff] %vm1758_vm2, %v2114_v1  ;;  %v7041_v59 = vld [vmem:[#allocation3 + $0x10a] sm:$0xff]  ;;  %v7043_v13 = vld [vmem:[#allocation3 + $0x112] sm:$0xff] }
 0x2ba   : > { %2215 = vst.msk [vmem:[#allocation3 + $0x121] sm:$0xff] %vm1758_vm2, %v2127_v54  ;;  %v2097_v40 = vpop.f32.mrf.mxu3  ;;  %v2280_v18 = vld [vmem:[#allocation3 + $0x111] sm:$0xff] }
 0x2bb   : > { %8382 = vst [vmem:[#allocation14_spill] sm:$0xff] %v7041_v59  ;;  %v2098_v7 = vadd.f32 %v6955_v42, %v2097_v40  ;;  %4620 = vrot.lane.b32.xlu0 %v7038_v39, %s5165_s27  ;;  %v7067_v22 = vpack.i.bf16 %v2280_v18, %v2279_v63  ;;  %v7284_v50 = vld [vmem:[#allocation3 + $0x110] sm:$0xff]  ;;  %v7288_v35 = vld [vmem:[#allocation3 + $0xd8] sm:$0xff] }
 0x2bc   : > { %8383 = vst [vmem:[#allocation23_spill] sm:$0xff] %v7043_v13  ;;  %v2050_v19 = vpop.f32.mrf.mxu0  ;;  %v2082_v33 = vpop.f32.mrf.mxu2  ;;  %v7294_v6 = vpack.i.bf16 %v7282_v27, %v7288_v35 }
 0x2bd   : > { %v2134_v47 = vmax.f32 %v2098_v7, 0.0  ;;  %v2051_v62 = vadd.f32 %v6955_v42, %v2050_v19  ;;  %v2083_v31 = vadd.f32 %v6955_v42, %v2082_v33 }
 0x2be   : > { %8397 = vst [vmem:[#allocation31_spill] sm:$0xff] %v7294_v6 }
 0x2bf   : > { %2222 = vst.msk [vmem:[#allocation3 + $0x171] sm:$0xff] %vm1758_vm2, %v2134_v47  ;;  %v2115_v26 = vmax.f32 %v2051_v62, 0.0  ;;  %v2128_v4 = vmax.f32 %v2083_v31, 0.0  ;;  %v7100_v47 = vld [vmem:[#allocation3 + $0x62] sm:$0xff]  ;;  %v7102_v62 = vld [vmem:[#allocation3 + $0x6a] sm:$0xff] }
 0x2c0   : > { %v2268_v37 = vld [vmem:[#allocation3 + $0x81] sm:$0xff] }
 0x2c1   : > { %2203 = vst.msk [vmem:[#allocation3 + $0x91] sm:$0xff] %vm1758_vm2, %v2115_v26  ;;  %v7056_v51 = vpack.i.bf16 %v2268_v37, %v2267_v11  ;;  %v2281_v1 = vld [vmem:[#allocation3 + $0x121] sm:$0xff]  ;;  %v2287_v26 = vld [vmem:[#allocation3 + $0x169] sm:$0xff]  ;;  %v7111_v11 = vpack.i.bf16 %v7102_v62, %v7100_v47 }
 0x2c2   : > { %2216 = vst.msk [vmem:[#allocation3 + $0x129] sm:$0xff] %vm1758_vm2, %v2128_v4  ;;  %v2100_v41 = vpop.f32.mrf.mxu3 }
 0x2c3   : > { %v2101_v45 = vadd.f32 %v6955_v42, %v2100_v41  ;;  %4640 = vrot.lane.b32.xlu0 %v7054_v9, %s5165_s27  ;;  %4610 = vrot.lane.b32.xlu1 %v7056_v51, %s5165_s27  ;;  %v2289_v41 = vld [vmem:[#allocation3 + $0x2] sm:$0xff] }
 0x2c4   : > { %v2052_v17 = vpop.f32.mrf.mxu0 }
 0x2c5   : > { %v2135_v55 = vmax.f32 %v2101_v45, 0.0  ;;  %v2053_v43 = vadd.f32 %v6955_v42, %v2052_v17  ;;  %v2290_v45 = vld [vmem:[#allocation3 + $0xa] sm:$0xff] }
 0x2c6   : > { %v2288_v19 = vld [vmem:[#allocation3 + $0x171] sm:$0xff] }
 0x2c7   : > { %2223 = vst.msk [vmem:[#allocation3 + $0x181] sm:$0xff] %vm1758_vm2, %v2135_v55  ;;  %v2116_v3 = vmax.f32 %v2053_v43, 0.0  ;;  %v7107_v36 = vpack.i.bf16 %v2288_v19, %v2287_v26  ;;  %v7120_v55 = vld [vmem:[#allocation3 + $0x32] sm:$0xff]  ;;  %v7122_v43 = vld [vmem:[#allocation3 + $0x3a] sm:$0xff]  ;;  %v2311_v26 = vld [vmem:[#allocation3 + $0x10a] sm:$0xff] }
 0x2c8   : > { %v2269_v20 = vld [vmem:[#allocation3 + $0x91] sm:$0xff]  ;;  %v7127_v63 = vpack.i.bf16 %v7122_v43, %v7120_v55 }
 0x2c9   : > { %2204 = vst.msk [vmem:[#allocation3 + $0x99] sm:$0xff] %vm1758_vm2, %v2116_v3  ;;  %v7072_v15 = vld [vmem:[#allocation3 + $0x122] sm:$0xff]  ;;  %v7074_v21 = vld [vmem:[#allocation3 + $0x12a] sm:$0xff]  ;;  %v4659_v3 = vpack.i.bf16 %v2290_v45, %v2289_v41  ;;  %v2309_v41 = vld [vmem:[#allocation3 + $0xf2] sm:$0xff] }
 0x2ca   : > { %v2102_v58 = vpop.f32.mrf.mxu3  ;;  %8384 = vst [vmem:[#allocation22_spill] sm:$0xff] %v7072_v15  ;;  %v2282_v28 = vld [vmem:[#allocation3 + $0x129] sm:$0xff]  ;;  %v2310_v45 = vld [vmem:[#allocation3 + $0xfa] sm:$0xff] }
 0x2cb   : > { %v2103_v53 = vadd.f32 %v6955_v42, %v2102_v58  ;;  %4625 = vrot.lane.b32.xlu1 %v7067_v22, %s5165_s27  ;;  %8385 = vst [vmem:[#allocation21_spill] sm:$0xff] %v7074_v21  ;;  %v7091_v54 = vpack.i.bf16 %v2282_v28, %v2281_v1  ;;  %v7132_v58 = vld [vmem:[#allocation3 + $0x4a] sm:$0xff]  ;;  %v7310_v21 = vld [vmem:[#allocation3 + $0x158] sm:$0xff] }
 0x2cc   : > { %v2055_v34 = vpop.f32.mrf.mxu0  ;;  %v7308_v15 = vld [vmem:[#allocation3 + $0x128] sm:$0xff] }
 0x2cd   : > { %v2136_v29 = vmax.f32 %v2103_v53, 0.0  ;;  %v2056_v23 = vadd.f32 %v6955_v42, %v2055_v34  ;;  %v2299_v53 = vld [vmem:[#allocation3 + $0x7a] sm:$0xff]  ;;  %v2300_v34 = vld [vmem:[#allocation3 + $0x82] sm:$0xff]  ;;  %8398 = vst [vmem:[#allocation32_spill] sm:$0xff] %v7308_v15 }
 0x2ce   : > { %v7146_v0 = vpack.i.bf16 %v2300_v34, %v2299_v53 }
 0x2cf   : > { %2224 = vst.msk [vmem:[#allocation3 + $0x189] sm:$0xff] %vm1758_vm2, %v2136_v29  ;;  %v2117_v49 = vmax.f32 %v2056_v23, 0.0 }
 0x2d0   : > { %v2270_v60 = vld [vmem:[#allocation3 + $0x99] sm:$0xff] }
 0x2d1   : > { %2205 = vst.msk [vmem:[#allocation3 + $0xa9] sm:$0xff] %vm1758_vm2, %v2117_v49  ;;  %v7081_v61 = vpack.i.bf16 %v2270_v60, %v2269_v20  ;;  %v2301_v1 = vld [vmem:[#allocation3 + $0x92] sm:$0xff] }
 0x2d3   : > { %4630 = vrot.lane.b32.xlu2 %v7081_v61, %s5165_s27  ;;  %4645 = vrot.lane.b32.xlu1 %v7083_v5, %s5165_s27 }
 0x2d4   : > { %v2057_v44 = vpop.f32.mrf.mxu0 }
 0x2d5   : > { %v2058_v24 = vadd.f32 %v6955_v42, %v2057_v44 }
 0x2d7   : > { %v2118_v16 = vmax.f32 %v2058_v24, 0.0 }
 0x2d8   : > { %v2271_v31 = vld [vmem:[#allocation3 + $0xa9] sm:$0xff] }
 0x2d9   : > { %2206 = vst.msk [vmem:[#allocation3 + $0xb1] sm:$0xff] %vm1758_vm2, %v2118_v16 }
 0x2db   : > { %4635 = vrot.lane.b32.xlu2 %v7091_v54, %s5165_s27  ;;  %4665 = vrot.lane.b32.xlu1 %v7093_v32, %s5169_s6 }
 0x2dc   : > { %v2060_v40 = vpop.f32.mrf.mxu0 }
 0x2dd   : > { %v2061_v7 = vadd.f32 %v6955_v42, %v2060_v40  ;;  %v2302_v40 = vld [vmem:[#allocation3 + $0x9a] sm:$0xff] }
 0x2de   : > { %v7167_v19 = vpack.i.bf16 %v2302_v40, %v2301_v1 }
 0x2df   : > { %v2119_v33 = vmax.f32 %v2061_v7, 0.0 }
 0x2e0   : > { %v2272_v30 = vld [vmem:[#allocation3 + $0xb1] sm:$0xff] }
 0x2e1   : > { %2207 = vst.msk [vmem:[#allocation3 + $0xc1] sm:$0xff] %vm1758_vm2, %v2119_v33  ;;  %v7105_v4 = vpack.i.bf16 %v2272_v30, %v2271_v31  ;;  %v7136_v23 = vld [vmem:[#allocation3 + $0xaa] sm:$0xff]  ;;  %v7152_v28 = vld [vmem:[#allocation3 + $0xb2] sm:$0xff] }
 0x2e2   : > { %8386 = vst [vmem:[#allocation20_spill] sm:$0xff] %v7136_v23  ;;  %v3650_v7 = vpack.c.bf16 %v7152_v28, %v7136_v23  ;;  %v4699_v31 = vpack.i.bf16 %v7152_v28, %v7136_v23 }
 0x2e3   : > { %4655 = vrot.lane.b32.xlu0 %v7105_v4, %s5165_s27  ;;  %4650 = vrot.lane.b32.xlu2 %v7107_v36, %s5165_s27  ;;  %8389 = vst [vmem:[#allocation51_spill] sm:$0xff] %v7152_v28  ;;  %v7339_v28 = vld [vmem:[#allocation3 + $0x168] sm:$0xff] }
 0x2e4   : > { %4680 = vrot.lane.b32.xlu1 %v7111_v11, %s5169_s6  ;;  %v2062_v37 = vpop.f32.mrf.mxu0  ;;  %v3713_v30 = vsel %vm1758_vm2, %v3650_v7, 0  ;;  %v2318_v7 = vld [vmem:[#allocation3 + $0x15a] sm:$0xff]  ;;  %8405 = vst [vmem:[#allocation34_spill] sm:$0xff] %v7339_v28 }
 0x2e5   : > { %v2063_v17 = vadd.f32 %v6955_v42, %v2062_v37  ;;  %v7134_v42 = vld [vmem:[#allocation3 + $0x52] sm:$0xff] }
 0x2e6   : > { %v7140_v38 = vpack.i.bf16 %v7134_v42, %v7132_v58  ;;  %v2312_v37 = vld [vmem:[#allocation3 + $0x112] sm:$0xff] }
 0x2e7   : > { %v2120_v18 = vmax.f32 %v2063_v17, 0.0  ;;  %v3648_v17 = vpack.c.bf16 %v2302_v40, %v2301_v1  ;;  %v2316_v1 = vld [vmem:[#allocation3 + $0x142] sm:$0xff]  ;;  %v3646_v40 = vpack.c.bf16 %v2300_v34, %v2299_v53  ;;  %v2320_v53 = vld [vmem:[#allocation3 + $0x172] sm:$0xff] }
 0x2e8   : > { %v2273_v29 = vld [vmem:[#allocation3 + $0xc1] sm:$0xff] }
 0x2e9   : > { %2208 = vst.msk [vmem:[#allocation3 + $0xc9] sm:$0xff] %vm1758_vm2, %v2120_v18  ;;  %v4719_v18 = vpack.i.bf16 %v2312_v37, %v2311_v26  ;;  %v3707_v52 = vsel %vm1758_vm2, %v3646_v40, 0  ;;  %v7197_v34 = vld [vmem:[#allocation3 + $0x20] sm:$0xff]  ;;  %v3644_v37 = vpack.c.bf16 %v7102_v62, %v7100_v47  ;;  %v7218_v62 = vld [vmem:[#allocation3 + $0x50] sm:$0xff] }
 0x2eb   : > { %4660 = vrot.lane.b32.xlu0 %v4659_v3, %s5169_s6  ;;  %4670 = vrot.lane.b32.xlu2 %v7127_v63, %s5169_s6  ;;  %v4714_v3 = vpack.i.bf16 %v2310_v45, %v2309_v41  ;;  %v7201_v41 = vld [vmem:[#allocation3 + $0x30] sm:$0xff]  ;;  %v7203_v45 = vpop.permute.xlu2 %4585  ;;  %v3704_v47 = vsel %vm1758_vm2, %v3644_v37, 0 }
 0x2ec   : > { %v7251_v37 = vld [vmem:[#allocation3 + $0xb0] sm:$0xff] }
 0x2f0   : > { %v2274_v49 = vld [vmem:[#allocation3 + $0xc9] sm:$0xff] }
 0x2f1   : > { %v7142_v20 = vld [vmem:[#allocation3 + $0xc2] sm:$0xff]  ;;  %v7144_v60 = vld [vmem:[#allocation3 + $0xca] sm:$0xff]  ;;  %v7148_v44 = vpack.i.bf16 %v2274_v49, %v2273_v29  ;;  %v3710_v29 = vsel %vm1758_vm2, %v3648_v17, 0  ;;  %v2317_v49 = vld [vmem:[#allocation3 + $0x152] sm:$0xff] }
 0x2f2   : > { %8387 = vst [vmem:[#allocation27_spill] sm:$0xff] %v7142_v20  ;;  %v3652_v24 = vpack.c.bf16 %v7144_v60, %v7142_v20  ;;  %v4704_v33 = vpack.i.bf16 %v7144_v60, %v7142_v20  ;;  %v7205_v17 = vld [vmem:[#allocation3 + $0x18] sm:$0xff] }
 0x2f3   : > { %8388 = vst [vmem:[#allocation26_spill] sm:$0xff] %v7144_v60  ;;  %4675 = vrot.lane.b32.xlu0 %v7140_v38, %s5169_s6  ;;  %4685 = vrot.lane.b32.xlu2 %v7146_v0, %s5169_s6  ;;  %v2352_v60 = vld [vmem:[#allocation3 + $0x188] sm:$0xff] }
 0x2f4   : > { %v3716_v16 = vsel %vm1758_vm2, %v3652_v24, 0  ;;  %4695 = vrot.lane.b32.xlu1 %v7148_v44, %s5165_s27  ;;  %v2313_v24 = vld [vmem:[#allocation3 + $0x122] sm:$0xff] }
 0x2f5   : > { %3760 = vmatpush.bf16.xpose.msrb.mxu2 %v3716_v16  ;;  %v2314_v16 = vld [vmem:[#allocation3 + $0x12a] sm:$0xff] }
 0x2fb   : > { %4690 = vrot.lane.b32.xlu0 %v7167_v19, %s5169_s6  ;;  %4705 = vrot.lane.b32.xlu2 %v4704_v33, %s5169_s6  ;;  %v2315_v33 = vld [vmem:[#allocation3 + $0x13a] sm:$0xff] }
 0x2fc   : > { %4700 = vrot.lane.b32.xlu1 %v4699_v31, %s5169_s6  ;;  %v4724_v31 = vpack.i.bf16 %v2314_v16, %v2313_v24  ;;  %v7187_v26 = vpack.i.bf16 %v2316_v1, %v2315_v33  ;;  %v7222_v24 = vld [vmem:[#allocation3 + $0x68] sm:$0xff]  ;;  %v3642_v16 = vpack.c.bf16 %v7134_v42, %v7132_v58  ;;  %v7228_v33 = vld [vmem:[#allocation3 + $0x78] sm:$0xff] }
 0x2fd   : > { %3761 = vmatpush.bf16.xpose.msrb.mxu2 %v3713_v30  ;;  %v7185_v30 = vpack.i.bf16 %v2318_v7, %v2317_v49  ;;  %v7220_v49 = vld [vmem:[#allocation3 + $0x80] sm:$0xff]  ;;  %v7226_v7 = vld [vmem:[#allocation3 + $0x48] sm:$0xff]  ;;  %v7247_v42 = vld [vmem:[#allocation3 + $0x98] sm:$0xff] }
 0x2fe   : > { %8391 = vst [vmem:[#allocation63_spill] sm:$0xff] %v7187_v26  ;;  %v4754_v1 = vpack.i.bf16 %v7218_v62, %v7226_v7  ;;  %v7234_v40 = vpack.i.bf16 %v7220_v49, %v7228_v33  ;;  %v3701_v58 = vsel %vm1758_vm2, %v3642_v16, 0 }
 0x2ff   : > { %8390 = vst [vmem:[#allocation39_spill] sm:$0xff] %v7185_v30 }
 0x300   : > { %8393 = vst [vmem:[#allocation49_spill] sm:$0xff] %v7234_v40 }
 0x303   : > { %4710 = vrot.lane.b32.xlu0 %v4709_v25, %s5169_s6  ;;  %4720 = vrot.lane.b32.xlu2 %v4719_v18, %s5169_s6  ;;  %v2319_v25 = vld [vmem:[#allocation3 + $0x16a] sm:$0xff] }
 0x304   : > { %4715 = vrot.lane.b32.xlu1 %v4714_v3, %s5169_s6  ;;  %v7207_v18 = vpack.i.bf16 %v2320_v53, %v2319_v25  ;;  %v4749_v3 = vpack.i.bf16 %v7195_v48, %v7201_v41  ;;  %v7240_v25 = vpop.permute.xlu2 %4600  ;;  %v7249_v53 = vld [vmem:[#allocation3 + $0xc8] sm:$0xff] }
 0x305   : > { %3762 = vmatpush.bf16.xpose.msrb.mxu2 %v3710_v29  ;;  %v4744_v29 = vpack.i.bf16 %v7197_v34, %v7205_v17  ;;  %v4596_v13 = vpop.permute.xlu1 %4595 }
 0x306   : > { %8392 = vst [vmem:[#allocation67_spill] sm:$0xff] %v7207_v18  ;;  %v4598_v23 = vunpack.i.h.bf16 %v4596_v13 }
 0x30b   : > { %4725 = vrot.lane.b32.xlu0 %v4724_v31, %s5169_s6  ;;  %4735 = vrot.lane.b32.xlu2 %v7185_v30, %s5169_s6  ;;  %v7236_v31 = vld [vmem:[#allocation3 + $0x60] sm:$0xff]  ;;  %v4591_v30 = vpop.permute.xlu0 %4590 }
 0x30c   : > { %4730 = vrot.lane.b32.xlu1 %v7187_v26, %s5169_s6  ;;  %v7312_v26 = vld [vmem:[#allocation3 + $0x140] sm:$0xff] }
 0x30d   : > { %3763 = vmatpush.bf16.xpose.msrb.mxu2 %v3707_v52  ;;  %v4759_v52 = vpack.i.bf16 %v7222_v24, %v7236_v31  ;;  %8399 = vst [vmem:[#allocation6_spill] sm:$0xff] %v7312_v26 }
 0x313   : > { %4740 = vrot.lane.b32.xlu0 %v7207_v18, %s5169_s6  ;;  %4750 = vrot.lane.b32.xlu2 %v4749_v3, %s5170_s15  ;;  %v3640_v3 = vpack.c.bf16 %v7122_v43, %v7120_v55  ;;  %v7280_v43 = vpop.permute.xlu2 %4615 }
 0x314   : > { %4745 = vrot.lane.b32.xlu1 %v4744_v29, %s5170_s15  ;;  %v7255_v29 = vld [vmem:[#allocation3 + $0x90] sm:$0xff] }
 0x315   : > { %3764 = vmatpush.bf16.xpose.msrb.mxu2 %v3704_v47  ;;  %v7257_v47 = vld [vmem:[#allocation3 + $0xc0] sm:$0xff]  ;;  %v3698_v55 = vsel %vm1758_vm2, %v3640_v3, 0  ;;  %v4794_v3 = vpack.i.bf16 %v7284_v50, %v7290_v56 }
 0x316   : > { %v7265_v16 = vpack.i.bf16 %v7249_v53, %v7257_v47 }
 0x318   : > { %8395 = vst [vmem:[#allocation30_spill] sm:$0xff] %v7265_v16 }
 0x31b   : > { %4755 = vrot.lane.b32.xlu0 %v4754_v1, %s5170_s15  ;;  %4765 = vrot.lane.b32.xlu2 %v7234_v40, %s5170_s15  ;;  %v7261_v1 = vpack.i.bf16 %v7247_v42, %v7255_v29  ;;  %v7314_v40 = vld [vmem:[#allocation3 + $0x120] sm:$0xff] }
 0x31c   : > { %4760 = vrot.lane.b32.xlu1 %v4759_v52, %s5170_s15  ;;  %v7267_v52 = vld [vmem:[#allocation3 + $0xa8] sm:$0xff]  ;;  %8400 = vst [vmem:[#allocation18_spill] sm:$0xff] %v7314_v40 }
 0x31d   : > { %3765 = vmatpush.bf16.xpose.msrb.mxu2 %v3701_v58  ;;  %8394 = vst [vmem:[#allocation54_spill] sm:$0xff] %v7261_v1  ;;  %v7271_v58 = vpack.i.bf16 %v7251_v37, %v7267_v52 }
 0x31f   : > { %8396 = vst [vmem:[#allocation5_spill] sm:$0xff] %v7271_v58 }
 0x323   : > { %4770 = vrot.lane.b32.xlu0 %v7261_v1, %s5170_s15  ;;  %4780 = vrot.lane.b32.xlu2 %v7265_v16, %s5170_s15  ;;  %v7316_v1 = vld [vmem:[#allocation3 + $0x150] sm:$0xff] }
 0x324   : > { %4775 = vrot.lane.b32.xlu1 %v7271_v58, %s5170_s15  ;;  %v4799_v58 = vpack.i.bf16 %v7308_v15, %v7314_v40  ;;  %v7337_v15 = vld [vmem:[#allocation3 + $0x170] sm:$0xff] }
 0x325   : > { %3766 = vmatpush.bf16.xpose.msrb.mxu2 %v3698_v55  ;;  %v7298_v55 = vld [vmem:[#allocation3 + $0xf0] sm:$0xff]  ;;  %8404 = vst [vmem:[#allocation25_spill] sm:$0xff] %v7337_v15 }
 0x326   : > { %v4789_v8 = vpack.i.bf16 %v7286_v2, %v7298_v55 }
 0x32b   : > { %4785 = vrot.lane.b32.xlu0 %v7294_v6, %s5170_s15  ;;  %4795 = vrot.lane.b32.xlu2 %v4794_v3, %s5170_s15  ;;  %v7324_v3 = vld [vmem:[#allocation3 + $0x138] sm:$0xff]  ;;  %v4606_v6 = vpop.permute.xlu0 %4605 }
 0x32c   : > { %4790 = vrot.lane.b32.xlu1 %v4789_v8, %s5170_s15  ;;  %v7322_v8 = vpack.i.bf16 %v7310_v21, %v7316_v1  ;;  %8402 = vst [vmem:[#allocation75_spill] sm:$0xff] %v7324_v3  ;;  %v7328_v18 = vpack.i.bf16 %v7312_v26, %v7324_v3  ;;  %v7343_v3 = vpack.i.bf16 %v7337_v15, %v7339_v28  ;;  %v4597_v28 = vunpack.i.l.bf16 %v4596_v13 }
 0x32d   : > { %v7306_v59 = vpop.permute.xlu2 %4630  ;;  %v3415_v13 = vsel %vm1758_vm2, %v7195_v48, %v4598_v23 }
 0x32e   : > { %8401 = vst [vmem:[#allocation74_spill] sm:$0xff] %v7322_v8 }
 0x32f   : > { %8403 = vst [vmem:[#allocation24_spill] sm:$0xff] %v7328_v18 }
 0x330   : > { %8406 = vst [vmem:[#allocation33_spill] sm:$0xff] %v7343_v3 }
 0x333   : > { %4800 = vrot.lane.b32.xlu0 %v4799_v58, %s5170_s15  ;;  %4810 = vrot.lane.b32.xlu2 %v7322_v8, %s5170_s15  ;;  %v2351_v58 = vld [vmem:[#allocation3 + $0x180] sm:$0xff]  ;;  %v7357_v15 = vpop.permute.xlu0 %4620 }
 0x334   : > { %4805 = vrot.lane.b32.xlu1 %v7328_v18, %s5170_s15  ;;  %v7345_v26 = vpack.i.bf16 %v2352_v60, %v2351_v58 }
 0x335   : > { %v7335_v16 = vpop.permute.xlu2 %4635  ;;  %v4611_v40 = vpop.permute.xlu1 %4610 }
 0x336   : > { %8407 = vst [vmem:[#allocation35_spill] sm:$0xff] %v7345_v26  ;;  %v4612_v20 = vunpack.i.l.bf16 %v4611_v40 }
 0x33b   : > { %4815 = vrot.lane.b32.xlu0 %v7343_v3, %s5170_s15  ;;  %4825 = vrot.lane.b32.xlu2 %v6966_v46, %s5171_s16  ;;  %v7383_v23 = vpop.permute.xlu0 %4640 }
 0x33c   : > { %4820 = vrot.lane.b32.xlu1 %v7345_v26, %s5170_s15  ;;  %v3414_v26 = vsel %vm1758_vm2, %v7201_v41, %v4597_v28 }
 0x33d   : > { %v7353_v18 = vpop.permute.xlu2 %4650  ;;  %v7355_v8 = vpop.permute.xlu1 %4625 }
 0x33e   : > { %8408 = vst [vmem:[#allocation37_spill] sm:$0xff] %v7353_v18 }
 0x343   : > { %4830 = vrot.lane.b32.xlu0 %v6977_v10, %s5171_s16  ;;  %4840 = vrot.lane.b32.xlu2 %v7028_v12, %s5171_s16  ;;  %v4613_v12 = vunpack.i.h.bf16 %v4611_v40 }
 0x344   : > { %4835 = vrot.lane.b32.xlu1 %v7002_v57, %s5171_s16  ;;  %v4593_v57 = vunpack.i.h.bf16 %v4591_v30 }
 0x345   : > { %v4671_v46 = vpop.permute.xlu2 %4670  ;;  %v7365_v3 = vpop.permute.xlu1 %4645  ;;  %v3421_v40 = vsel %vm1758_vm2, %v7220_v49, %v4613_v12 }
 0x346   : > { %v4673_v60 = vunpack.i.h.bf16 %v4671_v46  ;;  %v4672_v58 = vunpack.i.l.bf16 %v4671_v46  ;;  %v4592_v46 = vunpack.i.l.bf16 %v4591_v30 }
 0x348   : > { %v7372_v18 = vsel %vm1890_vm9, %v3414_v26, %v4672_v58  ;;  %v7375_v10 = vsel %vm1890_vm9, %v3415_v13, %v4673_v60 }
 0x34b   : > { %4845 = vrot.lane.b32.xlu0 %v7056_v51, %s5171_s16  ;;  %4855 = vrot.lane.b32.xlu2 %v7105_v4, %s5171_s16  ;;  %v3420_v51 = vsel %vm1758_vm2, %v7228_v33, %v4612_v20  ;;  %v3412_v4 = vsel %vm1758_vm2, %v7205_v17, %v4592_v46  ;;  %v4608_v20 = vunpack.i.h.bf16 %v4606_v6 }
 0x34c   : > { %4850 = vrot.lane.b32.xlu1 %v7081_v61, %s5171_s16  ;;  %v3413_v61 = vsel %vm1758_vm2, %v7197_v34, %v4593_v57  ;;  %v4607_v34 = vunpack.i.l.bf16 %v4606_v6 }
 0x34d   : > { %v4686_v28 = vpop.permute.xlu2 %4685  ;;  %v4666_v41 = vpop.permute.xlu1 %4665 }
 0x34e   : > { %v4688_v26 = vunpack.i.h.bf16 %v4686_v28  ;;  %v4687_v48 = vunpack.i.l.bf16 %v4686_v28  ;;  %v4668_v60 = vunpack.i.h.bf16 %v4666_v41  ;;  %v4667_v58 = vunpack.i.l.bf16 %v4666_v41 }
 0x34f   : > { %v4588_v41 = vunpack.i.h.bf16 %v7203_v45 }
 0x350   : > { %v7394_v30 = vsel %vm1890_vm9, %v3420_v51, %v4687_v48  ;;  %v7397_v13 = vsel %vm1890_vm9, %v3421_v40, %v4688_v26  ;;  %v7400_v28 = vsel %vm1890_vm9, %v3413_v61, %v4668_v60  ;;  %v7403_v49 = vsel %vm1890_vm9, %v3412_v4, %v4667_v58  ;;  %v2383_v58 = vld [vmem:[#allocation3 + $0x181] sm:$0xff] }
 0x351   : > { %v3418_v26 = vsel %vm1758_vm2, %v7236_v31, %v4607_v34  ;;  %v3419_v48 = vsel %vm1758_vm2, %v7222_v24, %v4608_v20  ;;  %v4587_v40 = vunpack.i.l.bf16 %v7203_v45  ;;  %v4628_v51 = vunpack.i.h.bf16 %v7355_v8  ;;  %v2225_v24 = vld [vmem:[#allocation3] sm:$0xff]  ;;  %v2226_v31 = vld [vmem:[#allocation3 + $0x8] sm:$0xff] }
 0x352   : > { %v4627_v60 = vunpack.i.l.bf16 %v7355_v8 }
 0x353   : > { %4860 = vrot.lane.b32.xlu0 %v7148_v44, %s5171_s16  ;;  %4870 = vrot.lane.b32.xlu2 %v7038_v39, %s5171_s16 }
 0x354   : > { %4865 = vrot.lane.b32.xlu1 %v7012_v14, %s5171_s16  ;;  %v2384_v14 = vld [vmem:[#allocation3 + $0x189] sm:$0xff] }
 0x355   : > { %v7411_v17 = vpop.permute.xlu0 %4655  ;;  %v7413_v33 = vpop.permute.xlu2 %4705  ;;  %v7435_v20 = vpack.i.bf16 %v2384_v14, %v2383_v58 }
 0x356   : > { %v4681_v12 = vpop.permute.xlu1 %4680 }
 0x357   : > { %v4683_v57 = vunpack.i.h.bf16 %v4681_v12  ;;  %v4682_v46 = vunpack.i.l.bf16 %v4681_v12 }
 0x359   : > { %v7420_v39 = vsel %vm1890_vm9, %v3419_v48, %v4683_v57  ;;  %v7423_v6 = vsel %vm1890_vm9, %v3418_v26, %v4682_v46  ;;  %v3411_v57 = vsel %vm1758_vm2, %v2226_v31, %v4588_v41  ;;  %v3432_v46 = vsel %vm1758_vm2, %v7290_v56, %v4627_v60 }
 0x35a   : > { %v4603_v41 = vunpack.i.h.bf16 %v7240_v25  ;;  %v4647_v56 = vunpack.i.l.bf16 %v7365_v3 }
 0x35b   : > { %4875 = vrot.lane.b32.xlu0 %v7067_v22, %s5171_s16  ;;  %4885 = vrot.lane.b32.xlu2 %v7054_v9, %s5171_s16  ;;  %v3410_v22 = vsel %vm1758_vm2, %v2225_v24, %v4587_v40  ;;  %v3433_v9 = vsel %vm1758_vm2, %v7284_v50, %v4628_v51  ;;  %v4602_v40 = vunpack.i.l.bf16 %v7240_v25  ;;  %v4648_v50 = vunpack.i.h.bf16 %v7365_v3 }
 0x35c   : > { %4880 = vrot.lane.b32.xlu1 %v7091_v54, %s5171_s16  ;;  %v3417_v60 = vsel %vm1758_vm2, %v7218_v62, %v4603_v41  ;;  %v3438_v3 = vsel %vm1758_vm2, %v7316_v1, %v4647_v56 }
 0x35d   : > { %v4661_v4 = vpop.permute.xlu0 %4660  ;;  %v4721_v61 = vpop.permute.xlu2 %4720  ;;  %v3416_v51 = vsel %vm1758_vm2, %v7226_v7, %v4602_v40  ;;  %v3439_v25 = vsel %vm1758_vm2, %v7310_v21, %v4648_v50  ;;  %v4707_v7 = vunpack.i.l.bf16 %v7413_v33  ;;  %v4658_v40 = vunpack.i.h.bf16 %v7411_v17 }
 0x35e   : > { %v4663_v45 = vunpack.i.h.bf16 %v4661_v4  ;;  %v4662_v34 = vunpack.i.l.bf16 %v4661_v4  ;;  %v4723_v12 = vunpack.i.h.bf16 %v4721_v61  ;;  %v4722_v8 = vunpack.i.l.bf16 %v4721_v61 }
 0x35f   : > { %v4657_v50 = vunpack.i.l.bf16 %v7411_v17 }
 0x360   : > { %v7444_v54 = vsel %vm1890_vm9, %v3411_v57, %v4663_v45  ;;  %v7447_v26 = vsel %vm1890_vm9, %v3410_v22, %v4662_v34  ;;  %v7450_v48 = vsel %vm1890_vm9, %v3432_v46, %v4722_v8  ;;  %v7453_v14 = vsel %vm1890_vm9, %v3433_v9, %v4723_v12 }
 0x361   : > { %v4633_v57 = vunpack.i.h.bf16 %v7306_v59  ;;  %v4632_v22 = vunpack.i.l.bf16 %v7306_v59 }
 0x363   : > { %4890 = vrot.lane.b32.xlu0 %v7083_v5, %s5171_s16  ;;  %4900 = vrot.lane.b32.xlu2 %v7435_v20, %s5171_s16  ;;  %v3423_v59 = vsel %vm1758_vm2, %v7247_v42, %v4633_v57 }
 0x364   : > { %4895 = vrot.lane.b32.xlu1 %v7107_v36, %s5171_s16  ;;  %v4708_v36 = vunpack.i.h.bf16 %v7413_v33 }
 0x365   : > { %v4676_v24 = vpop.permute.xlu0 %4675  ;;  %v4736_v5 = vpop.permute.xlu2 %4735 }
 0x366   : > { %v4678_v31 = vunpack.i.h.bf16 %v4676_v24  ;;  %v4677_v58 = vunpack.i.l.bf16 %v4676_v24  ;;  %v4738_v4 = vunpack.i.h.bf16 %v4736_v5  ;;  %v4737_v61 = vunpack.i.l.bf16 %v4736_v5  ;;  %v4696_v45 = vpop.permute.xlu1 %4695 }
 0x367   : > { %v4698_v34 = vunpack.i.h.bf16 %v4696_v45  ;;  %v4697_v12 = vunpack.i.l.bf16 %v4696_v45  ;;  %v4622_v45 = vunpack.i.l.bf16 %v7357_v15 }
 0x368   : > { %v7476_v62 = vsel %vm1890_vm9, %v3416_v51, %v4677_v58  ;;  %v7479_v21 = vsel %vm1890_vm9, %v3417_v60, %v4678_v31  ;;  %v7482_v1 = vsel %vm1890_vm9, %v3438_v3, %v4737_v61  ;;  %v7485_v8 = vsel %vm1890_vm9, %v3439_v25, %v4738_v4 }
 0x369   : > { %v3427_v33 = vsel %vm1758_vm2, %v7249_v53, %v4698_v34  ;;  %v3426_v9 = vsel %vm1758_vm2, %v7257_v47, %v4697_v12  ;;  %v3422_v53 = vsel %vm1758_vm2, %v7255_v29, %v4632_v22  ;;  %v4623_v61 = vunpack.i.h.bf16 %v7357_v15 }
 0x36a   : > { %v7494_v46 = vsel %vm1890_vm9, %v3426_v9, %v4707_v7  ;;  %v7497_v41 = vsel %vm1890_vm9, %v3427_v33, %v4708_v36 }
 0x36b   : > { %4905 = vrot.lane.b32.xlu0 %v7093_v32, %s5172_s17  ;;  %4915 = vrot.lane.b32.xlu2 %v7140_v38, %s5172_s17  ;;  %v3425_v38 = vsel %vm1758_vm2, %v7251_v37, %v4658_v40  ;;  %v4618_v37 = vunpack.i.h.bf16 %v7280_v43 }
 0x36c   : > { %4910 = vrot.lane.b32.xlu1 %v7127_v63, %s5172_s17  ;;  %v3424_v63 = vsel %vm1758_vm2, %v7267_v52, %v4657_v50  ;;  %v4617_v52 = vunpack.i.l.bf16 %v7280_v43 }
 0x36d   : > { %v4691_v47 = vpop.permute.xlu0 %4690  ;;  %v4751_v56 = vpop.permute.xlu2 %4750  ;;  %v3429_v43 = vsel %vm1758_vm2, %v7282_v27, %v4618_v37 }
 0x36e   : > { %v4693_v17 = vunpack.i.h.bf16 %v4691_v47  ;;  %v4692_v51 = vunpack.i.l.bf16 %v4691_v47  ;;  %v4753_v60 = vunpack.i.h.bf16 %v4751_v56  ;;  %v4752_v25 = vunpack.i.l.bf16 %v4751_v56  ;;  %v4701_v32 = vpop.permute.xlu1 %4700  ;;  %v8410_v56 = vld [vmem:[#allocation20_spill] sm:$0xff] }
 0x36f   : > { %v4703_v3 = vunpack.i.h.bf16 %v4701_v32  ;;  %v4702_v24 = vunpack.i.l.bf16 %v4701_v32  ;;  %v4637_v47 = vunpack.i.l.bf16 %v7335_v16  ;;  %v8416_v32 = vld [vmem:[#allocation6_spill] sm:$0xff] }
 0x370   : > { %v7516_v42 = vsel %vm1890_vm9, %v3422_v53, %v4692_v51  ;;  %v7519_v29 = vsel %vm1890_vm9, %v3423_v59, %v4693_v17  ;;  %v7523_v5 = vsel %vm3474_vm12, %v7403_v49, %v4752_v25  ;;  %v7527_v31 = vsel %vm3474_vm12, %v7400_v28, %v4753_v60  ;;  %v2465_v59 = vld [vmem:[#allocation3 + $0xe1] sm:$0xff]  ;;  %v2464_v25 = vld [vmem:[#allocation3 + $0xd9] sm:$0xff] }
 0x371   : > { %v3457_v58 = vsel %vm1890_vm9, %v3425_v38, %v4703_v3  ;;  %v3456_v4 = vsel %vm1890_vm9, %v3424_v63, %v4702_v24  ;;  %v3428_v28 = vsel %vm1758_vm2, %v7288_v35, %v4617_v52  ;;  %v4638_v53 = vunpack.i.h.bf16 %v7335_v16  ;;  %v8414_v51 = vld [vmem:[#allocation26_spill] sm:$0xff]  ;;  %v8417_v63 = vld [vmem:[#allocation75_spill] sm:$0xff] }
 0x372   : > { %v4949_v37 = vpack.i.bf16 %v2465_v59, %v2464_v25  ;;  %v8423_v25 = vld [vmem:[#allocation34_spill] sm:$0xff] }
 0x373   : > { %4920 = vrot.lane.b32.xlu0 %v7111_v11, %s5172_s17  ;;  %4930 = vrot.lane.b32.xlu2 %v7167_v19, %s5172_s17  ;;  %v3431_v11 = vsel %vm1758_vm2, %v7286_v2, %v4623_v61  ;;  %v3430_v19 = vsel %vm1758_vm2, %v7298_v55, %v4622_v45  ;;  %v4643_v2 = vunpack.i.h.bf16 %v7383_v23  ;;  %v4642_v55 = vunpack.i.l.bf16 %v7383_v23  ;;  %v8413_v23 = vld [vmem:[#allocation51_spill] sm:$0xff] }
 0x374   : > { %4925 = vrot.lane.b32.xlu1 %v7146_v0, %s5172_s17  ;;  %v8415_v60 = vpack.i.bf16 %v8413_v23, %v8414_v51  ;;  %v2481_v23 = vld [vmem:[#allocation3 + $0x1a1] sm:$0xff]  ;;  %v8422_v51 = vld [vmem:[#allocation25_spill] sm:$0xff] }
 0x375   : > { %v4711_v49 = vpop.permute.xlu0 %4710  ;;  %v4766_v36 = vpop.permute.xlu2 %4765  ;;  %v3437_v38 = vsel %vm1758_vm2, %v8416_v32, %v4643_v2  ;;  %v3436_v16 = vsel %vm1758_vm2, %v8417_v63, %v4642_v55  ;;  %v8420_v55 = vld [vmem:[#allocation37_spill] sm:$0xff] }
 0x376   : > { %v4713_v7 = vunpack.i.h.bf16 %v4711_v49  ;;  %v4712_v34 = vunpack.i.l.bf16 %v4711_v49  ;;  %v4768_v15 = vunpack.i.h.bf16 %v4766_v36  ;;  %v4767_v12 = vunpack.i.l.bf16 %v4766_v36  ;;  %v4716_v57 = vpop.permute.xlu1 %4715  ;;  %v8418_v49 = vld [vmem:[#allocation32_spill] sm:$0xff] }
 0x377   : > { %v4718_v0 = vunpack.i.h.bf16 %v4716_v57  ;;  %v4717_v22 = vunpack.i.l.bf16 %v4716_v57  ;;  %v3435_v36 = vsel %vm1758_vm2, %v8418_v49, %v4638_v53  ;;  %v2415_v57 = vld [vmem:[#allocation3 + $0x182] sm:$0xff]  ;;  %v4653_v59 = vunpack.i.h.bf16 %v8420_v55 }
 0x378   : > { %v7550_v27 = vsel %vm1890_vm9, %v3428_v28, %v4712_v34  ;;  %v7553_v35 = vsel %vm1890_vm9, %v3429_v43, %v4713_v7  ;;  %v7557_v33 = vsel %vm3474_vm12, %v7423_v6, %v4767_v12  ;;  %v7561_v9 = vsel %vm3474_vm12, %v7420_v39, %v4768_v15  ;;  %v8409_v6 = vld [vmem:[#allocation27_spill] sm:$0xff]  ;;  %v8419_v7 = vld [vmem:[#allocation18_spill] sm:$0xff] }
 0x379   : > { %v3463_v40 = vsel %vm1890_vm9, %v3431_v11, %v4718_v0  ;;  %v3462_v50 = vsel %vm1890_vm9, %v3430_v19, %v4717_v22  ;;  %v8411_v17 = vpack.i.bf16 %v8409_v6, %v8410_v56  ;;  %v8412_v39 = vld [vmem:[#allocation31_spill] sm:$0xff]  ;;  %v3434_v34 = vsel %vm1758_vm2, %v8419_v7, %v4637_v47 }
 0x37a   : > { %v2416_v11 = vld [vmem:[#allocation3 + $0x18a] sm:$0xff]  ;;  %v4652_v53 = vunpack.i.l.bf16 %v8420_v55 }
 0x37b   : > { %4935 = vrot.lane.b32.xlu0 %v8411_v17, %s5172_s17  ;;  %4945 = vrot.lane.b32.xlu2 %v8412_v39, %s5173_s20  ;;  %v4954_v56 = vpack.i.bf16 %v2416_v11, %v2415_v57  ;;  %v8421_v17 = vld [vmem:[#allocation30_spill] sm:$0xff] }
 0x37c   : > { %4940 = vrot.lane.b32.xlu1 %v8415_v60, %s5172_s17  ;;  %v2480_v39 = vld [vmem:[#allocation3 + $0x199] sm:$0xff]  ;;  %v3441_v60 = vsel %vm1758_vm2, %v8422_v51, %v4653_v59  ;;  %v3440_v32 = vsel %vm1758_vm2, %v8423_v25, %v4652_v53 }
 0x37d   : > { %v4726_v3 = vpop.permute.xlu0 %4725  ;;  %v4781_v24 = vpop.permute.xlu2 %4780 }
 0x37e   : > { %v4728_v52 = vunpack.i.h.bf16 %v4726_v3  ;;  %v4727_v61 = vunpack.i.l.bf16 %v4726_v3  ;;  %v4783_v45 = vunpack.i.h.bf16 %v4781_v24  ;;  %v4782_v43 = vunpack.i.l.bf16 %v4781_v24  ;;  %v4731_v28 = vpop.permute.xlu1 %4730 }
 0x37f   : > { %v4733_v15 = vunpack.i.h.bf16 %v4731_v28  ;;  %v4732_v12 = vunpack.i.l.bf16 %v4731_v28  ;;  %v4974_v28 = vpack.i.bf16 %v2481_v23, %v2480_v39  ;;  %v8424_v23 = vld [vmem:[#allocation67_spill] sm:$0xff] }
 0x380   : > { %v7588_v19 = vsel %vm1890_vm9, %v3434_v34, %v4727_v61  ;;  %v7591_v0 = vsel %vm1890_vm9, %v3435_v36, %v4728_v52  ;;  %v7594_v22 = vsel %vm3474_vm12, %v3456_v4, %v4782_v43  ;;  %v7597_v2 = vsel %vm3474_vm12, %v3457_v58, %v4783_v45  ;;  %v2448_v4 = vld [vmem:[#allocation3 + $0x198] sm:$0xff]  ;;  %v2449_v58 = vld [vmem:[#allocation3 + $0x1a0] sm:$0xff] }
 0x381   : > { %v3469_v47 = vsel %vm1890_vm9, %v3437_v38, %v4733_v15  ;;  %v3468_v6 = vsel %vm1890_vm9, %v3436_v16, %v4732_v12  ;;  %v4964_v43 = vpack.i.bf16 %v2449_v58, %v2448_v4 }
 0x383   : > { %4950 = vrot.lane.b32.xlu0 %v4949_v37, %s5174_s21  ;;  %4960 = vrot.lane.b32.xlu2 %v8421_v17, %s5173_s20 }
 0x384   : > { %4955 = vrot.lane.b32.xlu1 %v4954_v56, %s5172_s17 }
 0x385   : > { %v4741_v38 = vpop.permute.xlu0 %4740  ;;  %v4796_v63 = vpop.permute.xlu2 %4795 }
 0x386   : > { %v4743_v16 = vunpack.i.h.bf16 %v4741_v38  ;;  %v4742_v3 = vunpack.i.l.bf16 %v4741_v38  ;;  %v4798_v24 = vunpack.i.h.bf16 %v4796_v63  ;;  %v4797_v37 = vunpack.i.l.bf16 %v4796_v63  ;;  %v4746_v52 = vpop.permute.xlu1 %4745  ;;  %v2461_v38 = vld [vmem:[#allocation3 + $0xb1] sm:$0xff] }
 0x387   : > { %v4748_v61 = vunpack.i.h.bf16 %v4746_v52  ;;  %v4747_v45 = vunpack.i.l.bf16 %v4746_v52  ;;  %v2460_v52 = vld [vmem:[#allocation3 + $0xa9] sm:$0xff] }
 0x388   : > { %v7612_v49 = vsel %vm1890_vm9, %v3440_v32, %v4742_v3  ;;  %v7615_v36 = vsel %vm1890_vm9, %v3441_v60, %v4743_v16  ;;  %v7618_v7 = vsel %vm3474_vm12, %v3462_v50, %v4797_v37  ;;  %v7621_v34 = vsel %vm3474_vm12, %v3463_v40, %v4798_v24 }
 0x389   : > { %v3476_v15 = vsel %vm3474_vm12, %v7444_v54, %v4748_v61  ;;  %v3475_v12 = vsel %vm3474_vm12, %v7447_v26, %v4747_v45 }
 0x38b   : > { %4965 = vrot.lane.b32.xlu0 %v4964_v43, %s5173_s20  ;;  %4975 = vrot.lane.b32.xlu2 %v4974_v28, %s5174_s21 }
 0x38c   : > { %4970 = vrot.lane.b32.xlu1 %v7148_v44, %s5174_s21 }
 0x38d   : > { %v4756_v57 = vpop.permute.xlu0 %4755  ;;  %v4811_v11 = vpop.permute.xlu2 %4810 }
 0x38e   : > { %v4758_v50 = vunpack.i.h.bf16 %v4756_v57  ;;  %v4757_v55 = vunpack.i.l.bf16 %v4756_v57  ;;  %v4813_v59 = vunpack.i.h.bf16 %v4811_v11  ;;  %v4812_v40 = vunpack.i.l.bf16 %v4811_v11  ;;  %v4761_v53 = vpop.permute.xlu1 %4760 }
 0x38f   : > { %v4763_v56 = vunpack.i.h.bf16 %v4761_v53  ;;  %v4762_v17 = vunpack.i.l.bf16 %v4761_v53 }
 0x390   : > { %v7633_v54 = vsel %vm3474_vm12, %v7372_v18, %v4757_v55  ;;  %v7637_v26 = vsel %vm3474_vm12, %v7375_v10, %v4758_v50  ;;  %v7640_v4 = vsel %vm3474_vm12, %v3468_v6, %v4812_v40  ;;  %v7643_v44 = vsel %vm3474_vm12, %v3469_v47, %v4813_v59  ;;  %v8425_v18 = vld [vmem:[#allocation35_spill] sm:$0xff]  ;;  %v8426_v10 = vld [vmem:[#allocation5_spill] sm:$0xff] }
 0x391   : > { %v3482_v58 = vsel %vm3474_vm12, %v7479_v21, %v4763_v56  ;;  %v3481_v39 = vsel %vm3474_vm12, %v7476_v62, %v4762_v17  ;;  %v2459_v50 = vld [vmem:[#allocation3 + $0x99] sm:$0xff]  ;;  %v2458_v56 = vld [vmem:[#allocation3 + $0x91] sm:$0xff] }
 0x393   : > { %4980 = vrot.lane.b32.xlu0 %v8424_v23, %s5172_s17  ;;  %4990 = vrot.lane.b32.xlu2 %v8425_v18, %s5173_s20  ;;  %v5019_v18 = vpack.i.bf16 %v2459_v50, %v2458_v56 }
 0x394   : > { %4985 = vrot.lane.b32.xlu1 %v8426_v10, %s5173_s20 }
 0x395   : > { %v4771_v6 = vpop.permute.xlu0 %4770  ;;  %v4826_v51 = vpop.permute.xlu2 %4825 }
 0x396   : > { %v4773_v47 = vunpack.i.h.bf16 %v4771_v6  ;;  %v4772_v60 = vunpack.i.l.bf16 %v4771_v6  ;;  %v4828_v25 = vunpack.i.h.bf16 %v4826_v51  ;;  %v4827_v32 = vunpack.i.l.bf16 %v4826_v51  ;;  %v4776_v21 = vpop.permute.xlu1 %4775 }
 0x397   : > { %v4778_v63 = vunpack.i.h.bf16 %v4776_v21  ;;  %v4777_v62 = vunpack.i.l.bf16 %v4776_v21 }
 0x398   : > { %v7657_v16 = vsel %vm3474_vm12, %v7394_v30, %v4772_v60  ;;  %v7661_v3 = vsel %vm3474_vm12, %v7397_v13, %v4773_v47  ;;  %v7664_v24 = vsel %vm3507_vm13, %v3475_v12, %v4827_v32  ;;  %v7667_v37 = vsel %vm3507_vm13, %v3476_v15, %v4828_v25  ;;  %v8427_v13 = vld [vmem:[#allocation39_spill] sm:$0xff]  ;;  %v2477_v47 = vld [vmem:[#allocation3 + $0x171] sm:$0xff] }
 0x399   : > { %v7671_v61 = vsel %vm3474_vm12, %v7519_v29, %v4778_v63  ;;  %v7675_v45 = vsel %vm3474_vm12, %v7516_v42, %v4777_v62  ;;  %v4994_v30 = vpack.i.bf16 %v2461_v38, %v2460_v52  ;;  %v2476_v32 = vld [vmem:[#allocation3 + $0x169] sm:$0xff]  ;;  %v8430_v62 = vld [vmem:[#allocation49_spill] sm:$0xff] }
 0x39a   : > { %v5024_v63 = vpack.i.bf16 %v2477_v47, %v2476_v32 }
 0x39b   : > { %4995 = vrot.lane.b32.xlu0 %v4994_v30, %s5174_s21  ;;  %5005 = vrot.lane.b32.xlu2 %v8427_v13, %s5172_s17 }
 0x39c   : > { %5000 = vrot.lane.b32.xlu1 %v7435_v20, %s5174_s21 }
 0x39d   : > { %v4786_v43 = vpop.permute.xlu0 %4785  ;;  %v4841_v28 = vpop.permute.xlu2 %4840 }
 0x39e   : > { %v4788_v15 = vunpack.i.h.bf16 %v4786_v43  ;;  %v4787_v12 = vunpack.i.l.bf16 %v4786_v43  ;;  %v4843_v57 = vunpack.i.h.bf16 %v4841_v28  ;;  %v4842_v29 = vunpack.i.l.bf16 %v4841_v28  ;;  %v4791_v11 = vpop.permute.xlu1 %4790 }
 0x39f   : > { %v4793_v55 = vunpack.i.h.bf16 %v4791_v11  ;;  %v4792_v42 = vunpack.i.l.bf16 %v4791_v11 }
 0x3a0   : > { %v7684_v59 = vsel %vm3474_vm12, %v7494_v46, %v4787_v12  ;;  %v7688_v40 = vsel %vm3474_vm12, %v7497_v41, %v4788_v15  ;;  %v7691_v20 = vsel %vm3507_vm13, %v3481_v39, %v4842_v29  ;;  %v7694_v53 = vsel %vm3507_vm13, %v3482_v58, %v4843_v57  ;;  %v8428_v46 = vld [vmem:[#allocation54_spill] sm:$0xff]  ;;  %v8429_v41 = vld [vmem:[#allocation33_spill] sm:$0xff] }
 0x3a1   : > { %v3494_v17 = vsel %vm3474_vm12, %v7553_v35, %v4793_v55  ;;  %v3493_v23 = vsel %vm3474_vm12, %v7550_v27, %v4792_v42  ;;  %v2474_v42 = vld [vmem:[#allocation3 + $0x151] sm:$0xff] }
 0x3a3   : > { %5010 = vrot.lane.b32.xlu0 %v8428_v46, %s5173_s20  ;;  %5020 = vrot.lane.b32.xlu2 %v5019_v18, %s5174_s21  ;;  %v2456_v46 = vld [vmem:[#allocation3 + $0x79] sm:$0xff] }
 0x3a4   : > { %5015 = vrot.lane.b32.xlu1 %v8429_v41, %s5173_s20 }
 0x3a5   : > { %v4801_v39 = vpop.permute.xlu0 %4800  ;;  %v7705_v10 = vpop.permute.xlu2 %4855 }
 0x3a6   : > { %v4803_v58 = vunpack.i.h.bf16 %v4801_v39  ;;  %v4802_v6 = vunpack.i.l.bf16 %v4801_v39  ;;  %v4806_v51 = vpop.permute.xlu1 %4805 }
 0x3a7   : > { %v4808_v35 = vunpack.i.h.bf16 %v4806_v51  ;;  %v4807_v60 = vunpack.i.l.bf16 %v4806_v51 }
 0x3a8   : > { %v7709_v27 = vsel %vm3474_vm12, %v7450_v48, %v4802_v6  ;;  %v7713_v25 = vsel %vm3474_vm12, %v7453_v14, %v4803_v58  ;;  %v8431_v48 = vld [vmem:[#allocation63_spill] sm:$0xff] }
 0x3a9   : > { %v3500_v21 = vsel %vm3474_vm12, %v7591_v0, %v4808_v35  ;;  %v3499_v38 = vsel %vm3474_vm12, %v7588_v19, %v4807_v60  ;;  %v2475_v0 = vld [vmem:[#allocation3 + $0x159] sm:$0xff]  ;;  %v2457_v19 = vld [vmem:[#allocation3 + $0x81] sm:$0xff] }
 0x3aa   : > { %v5044_v41 = vpack.i.bf16 %v2457_v19, %v2456_v46  ;;  %v2423_v35 = vld [vmem:[#allocation3 + $0x68] sm:$0xff] }
 0x3ab   : > { %5025 = vrot.lane.b32.xlu0 %v5024_v63, %s5174_s21  ;;  %5035 = vrot.lane.b32.xlu2 %v8430_v62, %s5173_s20 }
 0x3ac   : > { %5030 = vrot.lane.b32.xlu1 %v8431_v48, %s5172_s17 }
 0x3ad   : > { %v4816_v52 = vpop.permute.xlu0 %4815  ;;  %v4871_v30 = vpop.permute.xlu2 %4870 }
 0x3ae   : > { %v4818_v14 = vunpack.i.h.bf16 %v4816_v52  ;;  %v4817_v13 = vunpack.i.l.bf16 %v4816_v52  ;;  %v4873_v43 = vunpack.i.h.bf16 %v4871_v30  ;;  %v4872_v28 = vunpack.i.l.bf16 %v4871_v30  ;;  %v4821_v15 = vpop.permute.xlu1 %4820  ;;  %v5147_v30 = vld [vmem:[#allocation3 + $0x122] sm:$0xff] }
 0x3af   : > { %v4823_v12 = vunpack.i.h.bf16 %v4821_v15  ;;  %v4822_v57 = vunpack.i.l.bf16 %v4821_v15 }
 0x3b0   : > { %v7726_v29 = vsel %vm3474_vm12, %v7482_v1, %v4817_v13  ;;  %v7730_v11 = vsel %vm3474_vm12, %v7485_v8, %v4818_v14  ;;  %v7733_v50 = vsel %vm3507_vm13, %v3493_v23, %v4872_v28  ;;  %v7736_v55 = vsel %vm3507_vm13, %v3494_v17, %v4873_v43  ;;  %v8432_v8 = vld [vmem:[#allocation74_spill] sm:$0xff]  ;;  %v5148_v14 = vld [vmem:[#allocation3 + $0x12a] sm:$0xff] }
 0x3b1   : > { %v7740_v56 = vsel %vm3474_vm12, %v7615_v36, %v4823_v12  ;;  %v7744_v18 = vsel %vm3474_vm12, %v7612_v49, %v4822_v57  ;;  %v5049_v1 = vpack.i.bf16 %v2475_v0, %v2474_v42  ;;  %v2422_v13 = vld [vmem:[#allocation3 + $0x60] sm:$0xff]  ;;  %v2455_v0 = vld [vmem:[#allocation3 + $0x69] sm:$0xff] }
 0x3b2   : > { %v5059_v43 = vpack.i.bf16 %v2423_v35, %v2422_v13  ;;  %v2473_v57 = vld [vmem:[#allocation3 + $0x141] sm:$0xff] }
 0x3b3   : > { %5040 = vrot.lane.b32.xlu0 %v8432_v8, %s5173_s20  ;;  %5050 = vrot.lane.b32.xlu2 %v5049_v1, %s5174_s21  ;;  %v2454_v1 = vld [vmem:[#allocation3 + $0x61] sm:$0xff] }
 0x3b4   : > { %5045 = vrot.lane.b32.xlu1 %v5044_v41, %s5174_s21  ;;  %v5069_v8 = vpack.i.bf16 %v2455_v0, %v2454_v1  ;;  %v2420_v13 = vld [vmem:[#allocation3 + $0x48] sm:$0xff]  ;;  %v2419_v1 = vld [vmem:[#allocation3 + $0x38] sm:$0xff] }
 0x3b5   : > { %v4831_v17 = vpop.permute.xlu0 %4830  ;;  %v4886_v23 = vpop.permute.xlu2 %4885 }
 0x3b6   : > { %v4833_v39 = vunpack.i.h.bf16 %v4831_v17  ;;  %v4832_v58 = vunpack.i.l.bf16 %v4831_v17  ;;  %v4888_v36 = vunpack.i.h.bf16 %v4886_v23  ;;  %v4887_v6 = vunpack.i.l.bf16 %v4886_v23  ;;  %v4836_v51 = vpop.permute.xlu1 %4835  ;;  %v5149_v17 = vld [vmem:[#allocation3 + $0x10a] sm:$0xff]  ;;  %v5150_v23 = vld [vmem:[#allocation3 + $0x112] sm:$0xff] }
 0x3b7   : > { %v4838_v47 = vunpack.i.h.bf16 %v4836_v51  ;;  %v4837_v49 = vunpack.i.l.bf16 %v4836_v51  ;;  %v2421_v51 = vld [vmem:[#allocation3 + $0x50] sm:$0xff] }
 0x3b8   : > { %v7752_v60 = vsel %vm3507_vm13, %v7523_v5, %v4832_v58  ;;  %v7756_v32 = vsel %vm3507_vm13, %v7527_v31, %v4833_v39  ;;  %v7759_v63 = vsel %vm3507_vm13, %v3499_v38, %v4887_v6  ;;  %v7762_v62 = vsel %vm3507_vm13, %v3500_v21, %v4888_v36  ;;  %v8433_v31 = vld [vmem:[#allocation24_spill] sm:$0xff]  ;;  %v2472_v58 = vld [vmem:[#allocation3 + $0x139] sm:$0xff] }
 0x3b9   : > { %v3512_v48 = vsel %vm3507_vm13, %v7633_v54, %v4837_v49  ;;  %v3513_v52 = vsel %vm3507_vm13, %v7637_v26, %v4838_v47  ;;  %v5054_v5 = vpack.i.bf16 %v5148_v14, %v5147_v30  ;;  %v5079_v39 = vpack.i.bf16 %v5150_v23, %v5149_v17  ;;  %v2453_v47 = vld [vmem:[#allocation3 + $0x51] sm:$0xff]  ;;  %v2439_v30 = vld [vmem:[#allocation3 + $0x128] sm:$0xff] }
 0x3bb   : > { %5055 = vrot.lane.b32.xlu0 %v5054_v5, %s5172_s17  ;;  %5065 = vrot.lane.b32.xlu2 %v8433_v31, %s5173_s20 }
 0x3bc   : > { %5060 = vrot.lane.b32.xlu1 %v5059_v43, %s5173_s20  ;;  %v2452_v43 = vld [vmem:[#allocation3 + $0x49] sm:$0xff] }
 0x3bd   : > { %v4846_v21 = vpop.permute.xlu0 %4845  ;;  %v7772_v38 = vpop.permute.xlu2 %4900 }
 0x3be   : > { %v4848_v28 = vunpack.i.h.bf16 %v4846_v21  ;;  %v4847_v54 = vunpack.i.l.bf16 %v4846_v21  ;;  %v4851_v15 = vpop.permute.xlu1 %4850 }
 0x3bf   : > { %v4853_v26 = vunpack.i.h.bf16 %v4851_v15  ;;  %v4852_v12 = vunpack.i.l.bf16 %v4851_v15  ;;  %v2438_v15 = vld [vmem:[#allocation3 + $0x120] sm:$0xff] }
 0x3c0   : > { %v7776_v19 = vsel %vm3507_vm13, %v7557_v33, %v4847_v54  ;;  %v7780_v42 = vsel %vm3507_vm13, %v7561_v9, %v4848_v28  ;;  %v5074_v33 = vpack.i.bf16 %v2473_v57, %v2472_v58  ;;  %v5084_v28 = vpack.i.bf16 %v2421_v51, %v2420_v13  ;;  %v2471_v57 = vld [vmem:[#allocation3 + $0x129] sm:$0xff]  ;;  %v5152_v51 = vld [vmem:[#allocation3 + $0xfa] sm:$0xff] }
 0x3c1   : > { %v7784_v46 = vsel %vm3507_vm13, %v7657_v16, %v4852_v12  ;;  %v7788_v41 = vsel %vm3507_vm13, %v7661_v3, %v4853_v26  ;;  %v5094_v54 = vpack.i.bf16 %v2453_v47, %v2452_v43  ;;  %v5089_v0 = vpack.i.bf16 %v2439_v30, %v2438_v15  ;;  %v2418_v58 = vld [vmem:[#allocation3 + $0x30] sm:$0xff]  ;;  %v2451_v13 = vld [vmem:[#allocation3 + $0x39] sm:$0xff] }
 0x3c2   : > { %v2469_v30 = vld [vmem:[#allocation3 + $0x111] sm:$0xff]  ;;  %v2468_v15 = vld [vmem:[#allocation3 + $0x109] sm:$0xff] }
 0x3c3   : > { %5070 = vrot.lane.b32.xlu0 %v5069_v8, %s5174_s21  ;;  %5080 = vrot.lane.b32.xlu2 %v5079_v39, %s5172_s17  ;;  %v2470_v39 = vld [vmem:[#allocation3 + $0x121] sm:$0xff] }
 0x3c4   : > { %5075 = vrot.lane.b32.xlu1 %v5074_v33, %s5174_s21 }
 0x3c5   : > { %v7793_v9 = vpop.permute.xlu0 %4860  ;;  %v4916_v16 = vpop.permute.xlu2 %4915 }
 0x3c6   : > { %v4918_v36 = vunpack.i.h.bf16 %v4916_v16  ;;  %v4917_v6 = vunpack.i.l.bf16 %v4916_v16  ;;  %v4866_v3 = vpop.permute.xlu1 %4865 }
 0x3c7   : > { %v4868_v49 = vunpack.i.h.bf16 %v4866_v3  ;;  %v4867_v35 = vunpack.i.l.bf16 %v4866_v3  ;;  %v5151_v3 = vld [vmem:[#allocation3 + $0xf2] sm:$0xff] }
 0x3c8   : > { %v7796_v14 = vsel %vm3540_vm14, %v3512_v48, %v4917_v6  ;;  %v7799_v5 = vsel %vm3540_vm14, %v3513_v52, %v4918_v36  ;;  %v5099_v36 = vpack.i.bf16 %v2471_v57, %v2470_v39  ;;  %v5109_v6 = vpack.i.bf16 %v2419_v1, %v2418_v58  ;;  %v2467_v39 = vld [vmem:[#allocation3 + $0xf9] sm:$0xff] }
 0x3c9   : > { %v7803_v31 = vsel %vm3507_vm13, %v7684_v59, %v4867_v35  ;;  %v7807_v21 = vsel %vm3507_vm13, %v7688_v40, %v4868_v49 }
 0x3cb   : > { %5085 = vrot.lane.b32.xlu0 %v5084_v28, %s5173_s20  ;;  %5095 = vrot.lane.b32.xlu2 %v5094_v54, %s5174_s21  ;;  %v2436_v54 = vld [vmem:[#allocation3 + $0x108] sm:$0xff] }
 0x3cc   : > { %5090 = vrot.lane.b32.xlu1 %v5089_v0, %s5173_s20 }
 0x3cd   : > { %v4876_v48 = vpop.permute.xlu0 %4875  ;;  %v7812_v52 = vpop.permute.xlu2 %4930 }
 0x3ce   : > { %v4878_v26 = vunpack.i.h.bf16 %v4876_v48  ;;  %v4877_v59 = vunpack.i.l.bf16 %v4876_v48  ;;  %v4881_v12 = vpop.permute.xlu1 %4880  ;;  %v5124_v48 = vpack.i.bf16 %v2469_v30, %v2468_v15  ;;  %v2434_v30 = vld [vmem:[#allocation3 + $0xf0] sm:$0xff] }
 0x3cf   : > { %v4883_v40 = vunpack.i.h.bf16 %v4881_v12  ;;  %v4882_v8 = vunpack.i.l.bf16 %v4881_v12 }
 0x3d0   : > { %v7816_v17 = vsel %vm3507_vm13, %v7618_v7, %v4877_v59  ;;  %v7820_v23 = vsel %vm3507_vm13, %v7621_v34, %v4878_v26  ;;  %v5104_v7 = vpack.i.bf16 %v5152_v51, %v5151_v3  ;;  %v2450_v26 = vld [vmem:[#allocation3 + $0x31] sm:$0xff] }
 0x3d1   : > { %v7824_v33 = vsel %vm3507_vm13, %v7709_v27, %v4882_v8  ;;  %v7828_v16 = vsel %vm3507_vm13, %v7713_v25, %v4883_v40  ;;  %v2437_v25 = vld [vmem:[#allocation3 + $0x110] sm:$0xff]  ;;  %v5119_v59 = vpack.i.bf16 %v2451_v13, %v2450_v26  ;;  %v2402_v8 = vld [vmem:[#allocation3 + $0xe2] sm:$0xff] }
 0x3d2   : > { %v5114_v0 = vpack.i.bf16 %v2437_v25, %v2436_v54 }
 0x3d3   : > { %5100 = vrot.lane.b32.xlu0 %v5099_v36, %s5174_s21  ;;  %5110 = vrot.lane.b32.xlu2 %v5109_v6, %s5173_s20  ;;  %v2435_v6 = vld [vmem:[#allocation3 + $0xf8] sm:$0xff] }
 0x3d4   : > { %5105 = vrot.lane.b32.xlu1 %v5104_v7, %s5172_s17  ;;  %v2466_v7 = vld [vmem:[#allocation3 + $0xf1] sm:$0xff]  ;;  %v5134_v13 = vpack.i.bf16 %v2435_v6, %v2434_v30  ;;  %v4858_v6 = vunpack.i.h.bf16 %v7705_v10 }
 0x3d5   : > { %v4891_v34 = vpop.permute.xlu0 %4890  ;;  %v7833_v47 = vpop.permute.xlu2 %4945  ;;  %v5139_v25 = vpack.i.bf16 %v2467_v39, %v2466_v7 }
 0x3d6   : > { %v4893_v27 = vunpack.i.h.bf16 %v4891_v34  ;;  %v4892_v49 = vunpack.i.l.bf16 %v4891_v34  ;;  %v7835_v35 = vpop.permute.xlu1 %4895 }
 0x3d8   : > { %v7839_v43 = vsel %vm3507_vm13, %v7640_v4, %v4892_v49  ;;  %v7843_v28 = vsel %vm3507_vm13, %v7643_v44, %v4893_v27  ;;  %v2401_v44 = vld [vmem:[#allocation3 + $0xda] sm:$0xff] }
 0x3d9   : > { %v5129_v49 = vpack.i.bf16 %v2402_v8, %v2401_v44  ;;  %v4948_v44 = vunpack.i.h.bf16 %v7833_v47  ;;  %v4947_v8 = vunpack.i.l.bf16 %v7833_v47 }
 0x3db   : > { %5115 = vrot.lane.b32.xlu0 %v5114_v0, %s5173_s20  ;;  %5125 = vrot.lane.b32.xlu2 %v5124_v48, %s5174_s21  ;;  %v4862_v0 = vunpack.i.l.bf16 %v7793_v9 }
 0x3dc   : > { %5120 = vrot.lane.b32.xlu1 %v5119_v59, %s5174_s21 }
 0x3dd   : > { %v4906_v12 = vpop.permute.xlu0 %4905  ;;  %v7848_v57 = vpop.permute.xlu2 %4960 }
 0x3de   : > { %v4908_v4 = vunpack.i.h.bf16 %v4906_v12  ;;  %v4907_v1 = vunpack.i.l.bf16 %v4906_v12  ;;  %v4911_v40 = vpop.permute.xlu1 %4910  ;;  %v3522_v12 = vsel %vm3507_vm13, %v7594_v22, %v4862_v0  ;;  %v4857_v22 = vunpack.i.l.bf16 %v7705_v10 }
 0x3df   : > { %v4913_v58 = vunpack.i.h.bf16 %v4911_v40  ;;  %v4912_v36 = vunpack.i.l.bf16 %v4911_v40 }
 0x3e0   : > { %v7852_v3 = vsel %vm3540_vm14, %v7664_v24, %v4907_v1  ;;  %v7856_v51 = vsel %vm3540_vm14, %v7667_v37, %v4908_v4  ;;  %v3520_v10 = vsel %vm3507_vm13, %v7675_v45, %v4857_v22  ;;  %v4962_v45 = vunpack.i.l.bf16 %v7848_v57 }
 0x3e1   : > { %v7860_v34 = vsel %vm3540_vm14, %v7752_v60, %v4912_v36  ;;  %v7864_v27 = vsel %vm3540_vm14, %v7756_v32, %v4913_v58  ;;  %v4863_v32 = vunpack.i.h.bf16 %v7793_v9 }
 0x3e3   : > { %5130 = vrot.lane.b32.xlu0 %v5129_v49, %s5172_s17  ;;  %5140 = vrot.lane.b32.xlu2 %v5139_v25, %s5174_s21  ;;  %v3523_v4 = vsel %vm3507_vm13, %v7597_v2, %v4863_v32  ;;  %v4903_v49 = vunpack.i.h.bf16 %v7772_v38  ;;  %v4902_v25 = vunpack.i.l.bf16 %v7772_v38 }
 0x3e4   : > { %5135 = vrot.lane.b32.xlu1 %v5134_v13, %s5173_s20 }
 0x3e5   : > { %v7869_v24 = vpop.permute.xlu0 %4920  ;;  %v4976_v60 = vpop.permute.xlu2 %4975  ;;  %v3538_v38 = vsel %vm3507_vm13, %v7744_v18, %v4902_v25 }
 0x3e6   : > { %v7871_v37 = vpop.permute.xlu1 %4925 }
 0x3ed   : > { %v4936_v54 = vpop.permute.xlu0 %4935  ;;  %v7875_v59 = vpop.permute.xlu2 %4990 }
 0x3ee   : > { %v4941_v15 = vpop.permute.xlu1 %4940  ;;  %v4938_v48 = vunpack.i.h.bf16 %v4936_v54  ;;  %v4937_v13 = vunpack.i.l.bf16 %v4936_v54  ;;  %v4978_v54 = vunpack.i.h.bf16 %v4976_v60 }
 0x3ef   : > { %v4942_v26 = vunpack.i.l.bf16 %v4941_v15  ;;  %v4943_v32 = vunpack.i.h.bf16 %v4941_v15  ;;  %v4977_v15 = vunpack.i.l.bf16 %v4976_v60 }
 0x3f0   : > { %v3555_v1 = vsel %vm3540_vm14, %v3522_v12, %v4938_v48 }
 0x3f1   : > { %v3556_v40 = vsel %vm3540_vm14, %v3523_v4, %v4942_v26  ;;  %v3588_v2 = vsel %vm3573_vm15, %v3555_v1, %v4947_v8  ;;  %v3521_v4 = vsel %vm3507_vm13, %v7671_v61, %v4858_v6  ;;  %v3539_v1 = vsel %vm3507_vm13, %v7740_v56, %v4903_v49 }
 0x3f2   : > { %v3589_v7 = vsel %vm3573_vm15, %v3556_v40, %v4948_v44  ;;  %v3553_v40 = vsel %vm3540_vm14, %v3520_v10, %v4937_v13  ;;  %v3554_v44 = vsel %vm3540_vm14, %v3521_v4, %v4943_v32  ;;  %v4897_v10 = vunpack.i.l.bf16 %v7835_v35 }
 0x3f3   : > { %v3586_v60 = vsel %vm3573_vm15, %v3553_v40, %v4962_v45  ;;  %v4933_v4 = vunpack.i.h.bf16 %v7812_v52 }
 0x3f5   : > { %v4951_v9 = vpop.permute.xlu0 %4950  ;;  %v7893_v48 = vpop.permute.xlu2 %5005 }
 0x3f6   : > { %v4953_v39 = vunpack.i.h.bf16 %v4951_v9  ;;  %v4952_v58 = vunpack.i.l.bf16 %v4951_v9  ;;  %v4956_v36 = vpop.permute.xlu1 %4955  ;;  %v4963_v9 = vunpack.i.h.bf16 %v7848_v57 }
 0x3f7   : > { %v4958_v26 = vunpack.i.h.bf16 %v4956_v36  ;;  %v4957_v12 = vunpack.i.l.bf16 %v4956_v36 }
 0x3f8   : > { %v3621_v30 = vsel %vm3606_vm0, %v3588_v2, %v4952_v58  ;;  %v3622_v47 = vsel %vm3606_vm0, %v3589_v7, %v4953_v39  ;;  %v3587_v22 = vsel %vm3573_vm15, %v3554_v44, %v4963_v9 }
 0x3f9   : > { %v3653_v0 = vpack.c.bf16 %v3622_v47, %v3621_v30  ;;  %v3571_v36 = vsel %vm3540_vm14, %v3538_v38, %v4957_v12  ;;  %v3572_v18 = vsel %vm3540_vm14, %v3539_v1, %v4958_v26  ;;  %v4898_v12 = vunpack.i.h.bf16 %v7835_v35 }
 0x3fa   : > { %v4932_v38 = vunpack.i.l.bf16 %v7812_v52  ;;  %v3552_v35 = vsel %vm3540_vm14, %v7788_v41, %v4933_v4 }
 0x3fb   : > { %3745 = vmatpush.bf16.xpose.msra.mxu1 %v3653_v0 }
 0x3fc   : > { %v3551_v9 = vsel %vm3540_vm14, %v7784_v46, %v4932_v38 }
 0x3fd   : > { %v4966_v8 = vpop.permute.xlu0 %4965  ;;  %v5021_v32 = vpop.permute.xlu2 %5020 }
 0x3fe   : > { %v4968_v39 = vunpack.i.h.bf16 %v4966_v8  ;;  %v4967_v58 = vunpack.i.l.bf16 %v4966_v8  ;;  %v4971_v61 = vpop.permute.xlu1 %4970  ;;  %v3537_v8 = vsel %vm3507_vm13, %v7730_v11, %v4898_v12  ;;  %v5023_v38 = vunpack.i.h.bf16 %v5021_v32 }
 0x3ff   : > { %v4973_v6 = vunpack.i.h.bf16 %v4971_v61  ;;  %v4972_v56 = vunpack.i.l.bf16 %v4971_v61  ;;  %v4992_v61 = vunpack.i.l.bf16 %v7875_v59 }
 0x400   : > { %v3604_v2 = vsel %vm3573_vm15, %v3571_v36, %v4967_v58  ;;  %v3605_v7 = vsel %vm3573_vm15, %v3572_v18, %v4968_v39  ;;  %v4993_v58 = vunpack.i.h.bf16 %v7875_v59 }
 0x401   : > { %v3619_v49 = vsel %vm3606_vm0, %v3586_v60, %v4972_v56  ;;  %v3620_v57 = vsel %vm3606_vm0, %v3587_v22, %v4973_v6  ;;  %v3637_v25 = vsel %vm3606_vm0, %v3604_v2, %v4977_v15  ;;  %v3638_v30 = vsel %vm3606_vm0, %v3605_v7, %v4978_v54 }
 0x402   : > { %v3651_v47 = vpack.c.bf16 %v3620_v57, %v3619_v49  ;;  %v3669_v13 = vpack.c.bf16 %v3638_v30, %v3637_v25  ;;  %v3536_v54 = vsel %vm3507_vm13, %v7726_v29, %v4897_v10  ;;  %v4928_v30 = vunpack.i.h.bf16 %v7871_v37 }
 0x404   : > { %3746 = vmatpush.bf16.xpose.msra.mxu1 %v3651_v47  ;;  %3773 = vmatpush.bf16.xpose.msrb.mxu3 %v3669_v13  ;;  %v4927_v47 = vunpack.i.l.bf16 %v7871_v37  ;;  %v3550_v4 = vsel %vm3540_vm14, %v7780_v42, %v4928_v30 }
 0x405   : > { %v4981_v0 = vpop.permute.xlu0 %4980  ;;  %v7933_v6 = vpop.permute.xlu2 %5035 }
 0x406   : > { %v4986_v26 = vpop.permute.xlu1 %4985  ;;  %v4983_v1 = vunpack.i.h.bf16 %v4981_v0  ;;  %v4982_v40 = vunpack.i.l.bf16 %v4981_v0  ;;  %v3549_v10 = vsel %vm3540_vm14, %v7776_v19, %v4927_v47 }
 0x407   : > { %v4988_v15 = vunpack.i.h.bf16 %v4986_v26  ;;  %v4987_v44 = vunpack.i.l.bf16 %v4986_v26 }
 0x408   : > { %v3569_v45 = vsel %vm3540_vm14, %v3536_v54, %v4982_v40  ;;  %v3570_v52 = vsel %vm3540_vm14, %v3537_v8, %v4983_v1  ;;  %v5022_v1 = vunpack.i.l.bf16 %v5021_v32  ;;  %v5008_v8 = vunpack.i.h.bf16 %v7893_v48 }
 0x409   : > { %v3584_v46 = vsel %vm3573_vm15, %v3551_v9, %v4987_v44  ;;  %v3585_v41 = vsel %vm3573_vm15, %v3552_v35, %v4988_v15  ;;  %v3602_v2 = vsel %vm3573_vm15, %v3569_v45, %v4992_v61  ;;  %v3603_v7 = vsel %vm3573_vm15, %v3570_v52, %v4993_v58 }
 0x40a   : > { %v5007_v9 = vunpack.i.l.bf16 %v7893_v48  ;;  %v3568_v52 = vsel %vm3540_vm14, %v7843_v28, %v5008_v8  ;;  %v5038_v28 = vunpack.i.h.bf16 %v7933_v6 }
 0x40c   : > { %v3567_v32 = vsel %vm3540_vm14, %v7839_v43, %v5007_v9 }
 0x40d   : > { %v4996_v39 = vpop.permute.xlu0 %4995  ;;  %v5051_v44 = vpop.permute.xlu2 %5050 }
 0x40e   : > { %v4998_v36 = vunpack.i.h.bf16 %v4996_v39  ;;  %v4997_v29 = vunpack.i.l.bf16 %v4996_v39  ;;  %v5001_v18 = vpop.permute.xlu1 %5000 }
 0x40f   : > { %v5003_v11 = vunpack.i.h.bf16 %v5001_v18  ;;  %v5002_v56 = vunpack.i.l.bf16 %v5001_v18 }
 0x410   : > { %v3617_v60 = vsel %vm3606_vm0, %v3584_v46, %v4997_v29  ;;  %v3618_v22 = vsel %vm3606_vm0, %v3585_v41, %v4998_v36 }
 0x411   : > { %v3649_v59 = vpack.c.bf16 %v3618_v22, %v3617_v60  ;;  %v3635_v49 = vsel %vm3606_vm0, %v3602_v2, %v5002_v56  ;;  %v3636_v57 = vsel %vm3606_vm0, %v3603_v7, %v5003_v11  ;;  %v4923_v11 = vunpack.i.h.bf16 %v7869_v24 }
 0x412   : > { %v3667_v25 = vpack.c.bf16 %v3636_v57, %v3635_v49  ;;  %v4922_v56 = vunpack.i.l.bf16 %v7869_v24  ;;  %v5037_v22 = vunpack.i.l.bf16 %v7933_v6  ;;  %v5053_v49 = vunpack.i.h.bf16 %v5051_v44 }
 0x413   : > { %3747 = vmatpush.bf16.xpose.msra.mxu1 %v3649_v59  ;;  %v3548_v7 = vsel %vm3540_vm14, %v7694_v53, %v4923_v11  ;;  %v5052_v57 = vunpack.i.l.bf16 %v5051_v44 }
 0x414   : > { %3774 = vmatpush.bf16.xpose.msrb.mxu3 %v3667_v25  ;;  %v3547_v2 = vsel %vm3540_vm14, %v7691_v20, %v4922_v56  ;;  %v3581_v20 = vsel %vm3573_vm15, %v3548_v7, %v5038_v28 }
 0x415   : > { %v5011_v13 = vpop.permute.xlu0 %5010  ;;  %v5066_v43 = vpop.permute.xlu2 %5065 }
 0x416   : > { %v5013_v0 = vunpack.i.h.bf16 %v5011_v13  ;;  %v5012_v26 = vunpack.i.l.bf16 %v5011_v13  ;;  %v5016_v12 = vpop.permute.xlu1 %5015 }
 0x417   : > { %v5018_v19 = vunpack.i.h.bf16 %v5016_v12  ;;  %v5017_v45 = vunpack.i.l.bf16 %v5016_v12 }
 0x418   : > { %v3582_v40 = vsel %vm3573_vm15, %v3549_v10, %v5012_v26  ;;  %v3583_v15 = vsel %vm3573_vm15, %v3550_v4, %v5013_v0  ;;  %v3580_v26 = vsel %vm3573_vm15, %v3547_v2, %v5037_v22 }
 0x419   : > { %v3615_v37 = vsel %vm3606_vm0, %v3582_v40, %v5022_v1  ;;  %v3616_v54 = vsel %vm3606_vm0, %v3583_v15, %v5023_v38  ;;  %v3600_v36 = vsel %vm3573_vm15, %v3567_v32, %v5017_v45  ;;  %v3601_v29 = vsel %vm3573_vm15, %v3568_v52, %v5018_v19 }
 0x41a   : > { %v3647_v35 = vpack.c.bf16 %v3616_v54, %v3615_v37  ;;  %v5067_v32 = vunpack.i.l.bf16 %v5066_v43 }
 0x41c   : > { %3748 = vmatpush.bf16.xpose.msra.mxu1 %v3647_v35 }
 0x41d   : > { %v5026_v42 = vpop.permute.xlu0 %5025  ;;  %v5081_v40 = vpop.permute.xlu2 %5080 }
 0x41e   : > { %v5028_v39 = vunpack.i.h.bf16 %v5026_v42  ;;  %v5027_v58 = vunpack.i.l.bf16 %v5026_v42  ;;  %v5031_v61 = vpop.permute.xlu1 %5030  ;;  %v5068_v42 = vunpack.i.h.bf16 %v5066_v43 }
 0x41f   : > { %v5033_v41 = vunpack.i.h.bf16 %v5031_v61  ;;  %v5032_v60 = vunpack.i.l.bf16 %v5031_v61 }
 0x420   : > { %v3633_v48 = vsel %vm3606_vm0, %v3600_v36, %v5027_v58  ;;  %v3634_v18 = vsel %vm3606_vm0, %v3601_v29, %v5028_v39 }
 0x421   : > { %v3665_v46 = vpack.c.bf16 %v3634_v18, %v3633_v48  ;;  %v3565_v47 = vsel %vm3540_vm14, %v7759_v63, %v5032_v60  ;;  %v3566_v13 = vsel %vm3540_vm14, %v7762_v62, %v5033_v41 }
 0x423   : > { %3775 = vmatpush.bf16.xpose.msrb.mxu3 %v3665_v46 }
 0x425   : > { %v5041_v59 = vpop.permute.xlu0 %5040  ;;  %v5096_v61 = vpop.permute.xlu2 %5095 }
 0x426   : > { %v5043_v25 = vunpack.i.h.bf16 %v5041_v59  ;;  %v5042_v24 = vunpack.i.l.bf16 %v5041_v59  ;;  %v5046_v30 = vpop.permute.xlu1 %5045  ;;  %v5098_v2 = vunpack.i.h.bf16 %v5096_v61  ;;  %v5097_v7 = vunpack.i.l.bf16 %v5096_v61 }
 0x427   : > { %v5048_v0 = vunpack.i.h.bf16 %v5046_v30  ;;  %v5047_v6 = vunpack.i.l.bf16 %v5046_v30  ;;  %v5083_v30 = vunpack.i.h.bf16 %v5081_v40 }
 0x428   : > { %v3598_v53 = vsel %vm3573_vm15, %v3565_v47, %v5042_v24  ;;  %v3599_v12 = vsel %vm3573_vm15, %v3566_v13, %v5043_v25  ;;  %v5082_v47 = vunpack.i.l.bf16 %v5081_v40  ;;  %v2513_v40 = vld [vmem:[#allocation3 + $0x1a2] sm:$0xff] }
 0x429   : > { %v3613_v10 = vsel %vm3606_vm0, %v3580_v26, %v5047_v6  ;;  %v3614_v4 = vsel %vm3606_vm0, %v3581_v20, %v5048_v0  ;;  %v3631_v38 = vsel %vm3606_vm0, %v3598_v53, %v5052_v57  ;;  %v3632_v63 = vsel %vm3606_vm0, %v3599_v12, %v5053_v49 }
 0x42a   : > { %v3645_v1 = vpack.c.bf16 %v3614_v4, %v3613_v10  ;;  %v3663_v62 = vpack.c.bf16 %v3632_v63, %v3631_v38  ;;  %v3561_v20 = vsel %vm3540_vm14, %v7816_v17, %v5082_v47 }
 0x42c   : > { %3749 = vmatpush.bf16.xpose.msra.mxu1 %v3645_v1  ;;  %3776 = vmatpush.bf16.xpose.msrb.mxu3 %v3663_v62  ;;  %v2512_v62 = vld [vmem:[#allocation3 + $0x19a] sm:$0xff] }
 0x42d   : > { %v5056_v15 = vpop.permute.xlu0 %5055  ;;  %v5111_v57 = vpop.permute.xlu2 %5110 }
 0x42e   : > { %v5061_v44 = vpop.permute.xlu1 %5060  ;;  %v5058_v37 = vunpack.i.h.bf16 %v5056_v15  ;;  %v5057_v54 = vunpack.i.l.bf16 %v5056_v15 }
 0x42f   : > { %v5063_v8 = vunpack.i.h.bf16 %v5061_v44  ;;  %v5062_v9 = vunpack.i.l.bf16 %v5061_v44 }
 0x430   : > { %v3563_v35 = vsel %vm3540_vm14, %v7824_v33, %v5057_v54  ;;  %v3564_v19 = vsel %vm3540_vm14, %v7828_v16, %v5058_v37  ;;  %v5113_v37 = vunpack.i.h.bf16 %v5111_v57 }
 0x431   : > { %v3578_v48 = vsel %vm3573_vm15, %v7796_v14, %v5062_v9  ;;  %v3579_v18 = vsel %vm3573_vm15, %v7799_v5, %v5063_v8  ;;  %v3596_v16 = vsel %vm3573_vm15, %v3563_v35, %v5067_v32  ;;  %v3597_v56 = vsel %vm3573_vm15, %v3564_v19, %v5068_v42 }
 0x432   : > { %v3670_v8 = vpack.c.bf16 %v2513_v40, %v2512_v62  ;;  %v2505_v62 = vld [vmem:[#allocation3 + $0x142] sm:$0xff]  ;;  %v3673_v40 = vld [vmem:[%s8081_s4] sm:$0xff] }
 0x435   : > { %v5071_v45 = vpop.permute.xlu0 %5070  ;;  %v5126_v15 = vpop.permute.xlu2 %5125 }
 0x436   : > { %v5073_v52 = vunpack.i.h.bf16 %v5071_v45  ;;  %v5072_v39 = vunpack.i.l.bf16 %v5071_v45  ;;  %v5076_v58 = vpop.permute.xlu1 %5075  ;;  %v5128_v9 = vunpack.i.h.bf16 %v5126_v15  ;;  %v5127_v35 = vunpack.i.l.bf16 %v5126_v15  ;;  %v3674_v15 = vld [vmem:[%s8081_s4 + $0x8] sm:$0xff] }
 0x437   : > { %v5078_v36 = vunpack.i.h.bf16 %v5076_v58  ;;  %v5077_v29 = vunpack.i.l.bf16 %v5076_v58 }
 0x438   : > { %v3611_v33 = vsel %vm3606_vm0, %v3578_v48, %v5072_v39  ;;  %v3612_v11 = vsel %vm3606_vm0, %v3579_v18, %v5073_v52 }
 0x439   : > { %v3643_v46 = vpack.c.bf16 %v3612_v11, %v3611_v33  ;;  %v3629_v43 = vsel %vm3606_vm0, %v3596_v16, %v5077_v29  ;;  %v3630_v41 = vsel %vm3606_vm0, %v3597_v56, %v5078_v36  ;;  %v3575_v36 = vsel %vm3573_vm15, %v7856_v51, %v5113_v37  ;;  %v2511_v51 = vld [vmem:[#allocation3 + $0x18a] sm:$0xff] }
 0x43a   : > { %v3661_v60 = vpack.c.bf16 %v3630_v41, %v3629_v43  ;;  %v3743_v56 = vsel %vm1758_vm2, %v3670_v8, 0  ;;  %v3913_v41 = vld [vmem:[%s8080_s3 + $0x4] sm:$0xf] }
 0x43b   : > { %3750 = vmatpush.bf16.xpose.msra.mxu1 %v3643_v46 }
 0x43c   : > { %3777 = vmatpush.bf16.xpose.msrb.mxu3 %v3661_v60  ;;  %v3901_v60 = vld [vmem:[%s8080_s3 + $0x8] sm:$0xf0] }
 0x43d   : > { %v5086_v14 = vpop.permute.xlu0 %5085  ;;  %v5141_v46 = vpop.permute.xlu2 %5140 }
 0x43e   : > { %v5088_v28 = vunpack.i.h.bf16 %v5086_v14  ;;  %v5087_v22 = vunpack.i.l.bf16 %v5086_v14  ;;  %v5091_v5 = vpop.permute.xlu1 %5090  ;;  %v3899_v14 = vld [vmem:[%s8080_s3] sm:$0xf] }
 0x43f   : > { %v5093_v0 = vunpack.i.h.bf16 %v5091_v5  ;;  %v5092_v6 = vunpack.i.l.bf16 %v5091_v5 }
 0x440   : > { %v3576_v59 = vsel %vm3573_vm15, %v7860_v34, %v5087_v22  ;;  %v3577_v49 = vsel %vm3573_vm15, %v7864_v27, %v5088_v28  ;;  %v3562_v34 = vsel %vm3540_vm14, %v7820_v23, %v5083_v30  ;;  %v5112_v23 = vunpack.i.l.bf16 %v5111_v57 }
 0x441   : > { %v3609_v25 = vsel %vm3606_vm0, %v3576_v59, %v5097_v7  ;;  %v3610_v24 = vsel %vm3606_vm0, %v3577_v49, %v5098_v2  ;;  %v3594_v10 = vsel %vm3573_vm15, %v3561_v20, %v5092_v6  ;;  %v3595_v4 = vsel %vm3573_vm15, %v3562_v34, %v5093_v0  ;;  %v3914_v7 = vld [vmem:[%s8080_s3 + $0x4] sm:$0xf0] }
 0x442   : > { %v3641_v13 = vpack.c.bf16 %v3610_v24, %v3609_v25  ;;  %v3574_v61 = vsel %vm3573_vm15, %v7852_v3, %v5112_v23  ;;  %v2510_v3 = vld [vmem:[#allocation3 + $0x182] sm:$0xff]  ;;  %v3904_v2 = vor.u32 %v3913_v41, %v3901_v60  ;;  %v3900_v25 = vor.u32 %v3914_v7, %v3899_v14  ;;  %v8434_v23 = vld [vmem:[#allocation21_spill] sm:$0xff] }
 0x443   : > { %v3668_v57 = vpack.c.bf16 %v2511_v51, %v2510_v3  ;;  %v5143_v24 = vunpack.i.h.bf16 %v5141_v46  ;;  %v5142_v30 = vunpack.i.l.bf16 %v5141_v46 }
 0x444   : > { %3751 = vmatpush.bf16.xpose.msra.mxu1 %v3641_v13  ;;  %3905 = vmatmul.msk.bf16.vlgmr.msrb.gmra.mxu2 %vm1758_vm2, %v3904_v2 }
 0x445   : > { %v5101_v26 = vpop.permute.xlu0 %5100 }
 0x446   : > { %v5103_v53 = vunpack.i.h.bf16 %v5101_v26  ;;  %v5102_v27 = vunpack.i.l.bf16 %v5101_v26  ;;  %v5106_v12 = vpop.permute.xlu1 %5105 }
 0x447   : > { %v5108_v44 = vunpack.i.h.bf16 %v5106_v12  ;;  %v5107_v17 = vunpack.i.l.bf16 %v5106_v12 }
 0x448   : > { %v3627_v38 = vsel %vm3606_vm0, %v3594_v10, %v5102_v27  ;;  %v3628_v63 = vsel %vm3606_vm0, %v3595_v4, %v5103_v53  ;;  %v3740_v53 = vsel %vm1758_vm2, %v3668_v57, 0  ;;  %v2509_v27 = vld [vmem:[#allocation3 + $0x172] sm:$0xff]  ;;  %v2507_v4 = vld [vmem:[#allocation3 + $0x15a] sm:$0xff] }
 0x449   : > { %v3659_v1 = vpack.c.bf16 %v3628_v63, %v3627_v38  ;;  %v3559_v32 = vsel %vm3540_vm14, %v7733_v50, %v5107_v17  ;;  %v3560_v52 = vsel %vm3540_vm14, %v7736_v55, %v5108_v44  ;;  %v2506_v10 = vld [vmem:[#allocation3 + $0x152] sm:$0xff]  ;;  %v5175_v44 = vmov 0  }
 0x44a   : > { %v3664_v38 = vpack.c.bf16 %v2507_v4, %v2506_v10  ;;  %5145 = vset.pattern.permute.xlu1 %v5175_v44  ;;  %5144 = vset.pattern.permute.xlu0 %v5175_v44 }
 0x44b   : > { %3778 = vmatpush.bf16.xpose.msrb.mxu3 %v3659_v1  ;;  %v2504_v1 = vld [vmem:[#allocation3 + $0x13a] sm:$0xff]  ;;  %3677 = vperm.xlu0 %5144, %v3673_v40  }
 0x44c   : > { %v3734_v63 = vsel %vm1758_vm2, %v3664_v38, 0  ;;  %3682 = vperm.xlu1 %5145, %v3674_v15   ;;  %v3662_v17 = vpack.c.bf16 %v2505_v62, %v2504_v1 }
 0x44d   : > { %v5116_v54 = vpop.permute.xlu0 %5115 }
 0x44e   : > { %v5118_v19 = vunpack.i.h.bf16 %v5116_v54  ;;  %v5117_v45 = vunpack.i.l.bf16 %v5116_v54  ;;  %v5121_v42 = vpop.permute.xlu1 %5120  ;;  %v3731_v37 = vsel %vm1758_vm2, %v3662_v17, 0  ;;  %v8435_v54 = vld [vmem:[#allocation22_spill] sm:$0xff] }
 0x44f   : > { %v5123_v39 = vunpack.i.h.bf16 %v5121_v42  ;;  %v5122_v58 = vunpack.i.l.bf16 %v5121_v42  ;;  %v8436_v8 = vpack.c.bf16 %v8434_v23, %v8435_v54 }
 0x450   : > { %v3592_v29 = vsel %vm3573_vm15, %v3559_v32, %v5117_v45  ;;  %v3593_v48 = vsel %vm3573_vm15, %v3560_v52, %v5118_v19  ;;  %v8438_v19 = vld [vmem:[#allocation14_spill] sm:$0xff]  ;;  %v8440_v32 = vld [vmem:[#allocation15_spill] sm:$0xff]  ;;  %v8441_v52 = vld [vmem:[#allocation16_spill] sm:$0xff] }
 0x451   : > { %v3607_v18 = vsel %vm3606_vm0, %v3574_v61, %v5122_v58  ;;  %v3608_v33 = vsel %vm3606_vm0, %v3575_v36, %v5123_v39  ;;  %v3625_v50 = vsel %vm3606_vm0, %v3592_v29, %v5127_v35  ;;  %v3626_v55 = vsel %vm3606_vm0, %v3593_v48, %v5128_v9  ;;  %v8437_v35 = vld [vmem:[#allocation23_spill] sm:$0xff] }
 0x452   : > { %v3639_v11 = vpack.c.bf16 %v3608_v33, %v3607_v18  ;;  %v3657_v16 = vpack.c.bf16 %v3626_v55, %v3625_v50  ;;  %v3728_v9 = vsel %vm1758_vm2, %v8436_v8, 0  ;;  %v8439_v45 = vpack.c.bf16 %v8437_v35, %v8438_v19 }
 0x453   : > { %v8442_v39 = vpack.c.bf16 %v8440_v32, %v8441_v52 }
 0x454   : > { %3752 = vmatpush.bf16.xpose.msra.mxu1 %v3639_v11  ;;  %3779 = vmatpush.bf16.xpose.msrb.mxu3 %v3657_v16  ;;  %v3725_v42 = vsel %vm1758_vm2, %v8439_v45, 0 }
 0x455   : > { %v5131_v43 = vpop.permute.xlu0 %5130  ;;  %v3722_v58 = vsel %vm1758_vm2, %v8442_v39, 0 }
 0x456   : > { %v5133_v28 = vunpack.i.h.bf16 %v5131_v43  ;;  %v5132_v22 = vunpack.i.l.bf16 %v5131_v43  ;;  %v5136_v5 = vpop.permute.xlu1 %5135 }
 0x457   : > { %v5138_v59 = vunpack.i.h.bf16 %v5136_v5  ;;  %v5137_v49 = vunpack.i.l.bf16 %v5136_v5 }
 0x458   : > { %v3557_v47 = vsel %vm3540_vm14, %v7803_v31, %v5132_v22  ;;  %v3558_v13 = vsel %vm3540_vm14, %v7807_v21, %v5133_v28  ;;  %v2508_v31 = vld [vmem:[#allocation3 + $0x16a] sm:$0xff] }
 0x459   : > { %v3590_v0 = vsel %vm3573_vm15, %v3557_v47, %v5137_v49  ;;  %v3591_v6 = vsel %vm3573_vm15, %v3558_v13, %v5138_v59  ;;  %v3666_v12 = vpack.c.bf16 %v2509_v27, %v2508_v31 }
 0x45a   : > { %v3623_v26 = vsel %vm3606_vm0, %v3590_v0, %v5142_v30  ;;  %v3624_v20 = vsel %vm3606_vm0, %v3591_v6, %v5143_v24 }
 0x45b   : > { %v3655_v34 = vpack.c.bf16 %v3624_v20, %v3623_v26  ;;  %3753 = vmatmul.bf16.vlgmr.msra.gmra.mxu1 %v3900_v25  ;;  %v3737_v21 = vsel %vm1758_vm2, %v3666_v12, 0 }
 0x45c   : > { %3787 = vmatpush.bf16.xpose.msrb.mxu1 %v3743_v56 }
 0x45d   : > { %3780 = vmatpush.bf16.xpose.msrb.mxu3 %v3655_v34 }
 0x464   : > { %3788 = vmatpush.bf16.xpose.msrb.mxu1 %v3740_v53  ;;  %3781 = vmatmul.bf16.vlgmr.msrb.gmra.mxu3 %v3900_v25 }
 0x46c   : > { %3789 = vmatpush.bf16.xpose.msrb.mxu1 %v3737_v21 }
 0x474   : > { %3790 = vmatpush.bf16.xpose.msrb.mxu1 %v3734_v63 }
 0x47c   : > { %3791 = vmatpush.bf16.xpose.msrb.mxu1 %v3731_v37 }
 0x484   : > { %3792 = vmatpush.bf16.xpose.msrb.mxu1 %v3728_v9 }
 0x48c   : > { %3793 = vmatpush.bf16.xpose.msrb.mxu1 %v3725_v42 }
 0x494   : > { %3794 = vmatpush.bf16.xpose.msrb.mxu1 %v3722_v58 }
 0x49b   : > { %3906 = vmatmul.msk.bf16.vlgmr.msrb.gmra.mxu1 %vm1758_vm2, %v3904_v2 }
 0x4bd   : > { %v3678_v48 = vpop.permute.xlu0 %3677 }
 0x4be   : > { %v3683_v18 = vpop.permute.xlu1 %3682 }
 0x4c7   : > { %v3768_v36 = vpop.f32.mrf.mxu2 }
 0x4cf   : > { %v3770_v55 = vpop.f32.mrf.mxu2 }
 0x4d8   : > { %v3754_v61 = vpop.f32.mrf.mxu1 }
 0x4d9   : > { %v3755_v33 = vadd.f32 %v3754_v61, %v3678_v48 }
 0x4db   : > { %v3769_v11 = vadd.f32 %v3768_v36, %v3755_v33 }
 0x4dd   : > { %v3801_v56 = vmax.f32 %v3769_v11, 0.0 }
 0x4df   : > { %3805 = vst [vmem:[%s224_s12] sm:$0xff] %v3801_v56 }
 0x4e0   : > { %v3756_v29 = vpop.f32.mrf.mxu1 }
 0x4e1   : > { %v3757_v50 = vadd.f32 %v3756_v29, %v3683_v18 }
 0x4e3   : > { %v3771_v16 = vadd.f32 %v3770_v55, %v3757_v50 }
 0x4e5   : > { %v3803_v3 = vmax.f32 %v3771_v16, 0.0 }
 0x4e7   : > { %3807 = vst [vmem:[%s224_s12 + $0x10] sm:$0xff] %v3803_v3  ;;  %v3782_v51 = vpop.f32.mrf.mxu3 }
 0x4e8   : > { %v3783_v46 = vadd.f32 %v3782_v51, %v3678_v48 }
 0x4ef   : > { %v3784_v14 = vpop.f32.mrf.mxu3 }
 0x4f0   : > { %v3785_v28 = vadd.f32 %v3784_v14, %v3683_v18 }
 0x518   : > { %v3796_v43 = vpop.f32.mrf.mxu1 }
 0x519   : > { %v3797_v41 = vadd.f32 %v3796_v43, %v3783_v46 }
 0x51b   : > { %v3802_v60 = vmax.f32 %v3797_v41, 0.0 }
 0x51d   : > { %3806 = vst [vmem:[%s224_s12 + $0x8] sm:$0xff] %v3802_v60 }
 0x520   : > { %v3798_v22 = vpop.f32.mrf.mxu1 }
 0x521   : > { %v3799_v5 = vadd.f32 %v3798_v22, %v3785_v28 }
 0x523   : > { %v3804_v2 = vmax.f32 %v3799_v5, 0.0 }
 0x525   : > { %3808 = vst [vmem:[%s224_s12 + $0x18] sm:$0xff] %v3804_v2 }
 0x526 PF: > { %s15_s18 = sadd.s32 1, %s5159_s18  }
 0x527   : > { %p12_p4 = scmp.ge.s32.totalorder %s15_s18, 4  }
 0x529   :  { %14 = sbr.rel (!%p12_p4) target bundleno = 1 (0x1), region = 74 }

</bundles_post_ra>
